<compile_context>
chip_gen: v7x
topology: tpu7x:2x2x1
jax: 0.10.0
libtpu: 0.0.40
codegen_flags: <defaults>
</compile_context>

<pallas_src>
import jax
import jax.numpy as jnp
from jax.experimental import pallas as pl
from jax.experimental.pallas import tpu as pltpu

# bitsandbytes NF4 codebook (16 values).
NF4_LUT = (
    -1.0, -0.6961928009986877, -0.5250730514526367, -0.39491748809814453,
    -0.28444138169288635, -0.18477343022823334, -0.09105003625154495, 0.0,
    0.07958029955625534, 0.16093020141124725, 0.2461123913526535,
    0.33791524171829224, 0.44070982933044434, 0.5626170039176941,
    0.7229568362236023, 1.0,
)

QUANT_BLOCK = 64  # bnb default 4-bit blocksize


def _nf4_decode(codes):
    """codes: int32 array with values in [0, 16) -> f32 NF4 values.
    Bit-sliced binary select tree: 4 bit tests + 15 selects (all VPU)."""
    b0 = (codes & 1) != 0
    b1 = (codes & 2) != 0
    b2 = (codes & 4) != 0
    b3 = (codes & 8) != 0
    lvl = [jnp.where(b0, jnp.float32(NF4_LUT[2 * j + 1]),
                     jnp.float32(NF4_LUT[2 * j])) for j in range(8)]
    lvl = [jnp.where(b1, lvl[2 * j + 1], lvl[2 * j]) for j in range(4)]
    lvl = [jnp.where(b2, lvl[2 * j + 1], lvl[2 * j]) for j in range(2)]
    return jnp.where(b3, lvl[1], lvl[0])


def _linear4bit_kernel(x_ref, packed_ref, absmax_ref, bias_ref, o_ref, acc_ref):
    k = pl.program_id(2)

    @pl.when(k == 0)
    def _():
        acc_ref[...] = jnp.zeros_like(acc_ref)

    tkp, tn = packed_ref.shape             # packed k-rows per tile, n-tile width
    tk = 2 * tkp                           # original k values covered per tile
    nblk = tk // QUANT_BLOCK               # absmax rows covered by this k tile
    nblk_h = nblk // 2                     # absmax rows per packed half

    # ---- unpack 2 NF4 codes / byte ----
    p = packed_ref[...].astype(jnp.int32)              # (tkp, tn)
    lo_codes = p & 0xF                                 # k rows [0, tkp)
    hi_codes = (p >> 4) & 0xF                          # k rows [tkp, tk)

    # per-block scales for this k tile (sublane-dim slice, start is 8-aligned)
    scales = absmax_ref[pl.ds(k * nblk, nblk), :]      # (nblk, tn) f32

    def dequant(codes, s):
        w = _nf4_decode(codes)                         # (tkp, tn) f32 in [-1, 1]
        # blockwise absmax scaling: split the sublane (k) dim into 64-blocks
        w = w.reshape(nblk_h, QUANT_BLOCK, tn) * s[:, None, :]
        return w.reshape(tkp, tn).astype(jnp.bfloat16)

    w_lo = dequant(lo_codes, scales[:nblk_h])
    w_hi = dequant(hi_codes, scales[nblk_h:])

    # ---- bf16 MXU contraction, f32 accumulation ----
    x = x_ref[...].astype(jnp.bfloat16)                # (tm, tk)
    acc_ref[...] += (
        jnp.dot(x[:, :tkp], w_lo, preferred_element_type=jnp.float32)
        + jnp.dot(x[:, tkp:], w_hi, preferred_element_type=jnp.float32))

    @pl.when(k == pl.num_programs(2) - 1)
    def _():
        out = acc_ref[...] + bias_ref[...].astype(jnp.float32)   # (tm,tn)+(1,tn)
        o_ref[...] = out.astype(o_ref.dtype)


def linear4bit(x, packed_codes, absmax_t, bias, *, tk=512, tn=256, tm=None):
    """NF4 Linear4bit forward: out = x @ dequant(W).T + bias (in x.dtype).

    x:            (..., K)
    packed_codes: (K//2, N) uint8, two NF4 codes per byte (pack_nf4_for_kernel)
    absmax_t:     (K//64, N) f32 per-block scales, transposed layout
    bias:         (N,) or None
    """
    orig_shape = x.shape
    K = orig_shape[-1]
    N = packed_codes.shape[1]
    assert packed_codes.shape[0] * 2 == K
    assert K % tk == 0 and tk % (8 * QUANT_BLOCK) == 0, (K, tk)
    assert N % tn == 0 and tn % 128 == 0, (N, tn)

    x2d = x.reshape(-1, K)
    M = x2d.shape[0]
    M_pad = -(-M // 8) * 8
    if tm is None:
        tm = M_pad if M_pad <= 256 else 256
    M_pad = -(-M_pad // tm) * tm
    if M_pad != M:
        x2d = jnp.pad(x2d, ((0, M_pad - M), (0, 0)))

    bias2d = (jnp.zeros((1, N), jnp.float32) if bias is None
              else bias.reshape(1, N))

    grid = (M_pad // tm, N // tn, K // tk)
    out2d = pl.pallas_call(
        _linear4bit_kernel,
        out_shape=jax.ShapeDtypeStruct((M_pad, N), x.dtype),
        grid_spec=pltpu.PrefetchScalarGridSpec(
            num_scalar_prefetch=0,
            grid=grid,
            in_specs=[
                pl.BlockSpec((tm, tk), lambda m, n, k: (m, k)),            # x
                pl.BlockSpec((tk // 2, tn), lambda m, n, k: (k, n)),       # packed W codes
                pl.BlockSpec((K // QUANT_BLOCK, tn), lambda m, n, k: (0, n)),  # absmax
                pl.BlockSpec((1, tn), lambda m, n, k: (0, n)),             # bias
            ],
            out_specs=pl.BlockSpec((tm, tn), lambda m, n, k: (m, n)),
            scratch_shapes=[pltpu.VMEM((tm, tn), jnp.float32)],
        ),
        compiler_params=pltpu.CompilerParams(
            dimension_semantics=("parallel", "parallel", "arbitrary")),
    )(x2d, packed_codes, absmax_t, bias2d)

    if M_pad != M:
        out2d = out2d[:M]
    return out2d.reshape(*orig_shape[:-1], N)


# ---------------- setup glue: synthetic NF4 quantization + packing ----------
def nf4_quantize(w, blocksize=QUANT_BLOCK):
    """Blockwise NF4 quantization of w (N, K), row-major blocks of `blocksize`."""
    N, K = w.shape
    flat = w.reshape(-1, blocksize).astype(jnp.float32)
    absmax = jnp.max(jnp.abs(flat), axis=1)
    absmax = jnp.where(absmax == 0, 1.0, absmax)
    normed = flat / absmax[:, None]
    lut = jnp.asarray(NF4_LUT, jnp.float32)
    codes = jnp.argmin(jnp.abs(normed[:, :, None] - lut[None, None, :]), axis=-1)
    return codes.astype(jnp.uint8).reshape(N, K), absmax.reshape(N, K // blocksize)


def nf4_dequantize(codes, absmax, blocksize=QUANT_BLOCK):
    lut = jnp.asarray(NF4_LUT, jnp.float32)
    N, K = codes.shape
    vals = lut[codes.astype(jnp.int32).reshape(-1, blocksize)]
    return (vals * absmax.reshape(-1)[:, None]).reshape(N, K)


def pack_nf4_for_kernel(codes, absmax, *, tk):
    """(N, K) codes / (N, K//64) absmax -> kernel layout:
    packed (K//2, N) uint8 where, within each tk-sized K tile, byte row j holds
    code(k-row j) in the low nibble and code(k-row j + tk//2) in the high
    nibble; absmax transposed to (K//64, N) f32."""
    N, K = codes.shape
    assert K % tk == 0 and tk % 2 == 0
    tkp = tk // 2
    codes_t = codes.T.astype(jnp.int32)                      # (K, N)
    c = codes_t.reshape(K // tk, 2, tkp, N)
    packed = (c[:, 0] | (c[:, 1] << 4)).astype(jnp.uint8).reshape(K // 2, N)
    return packed, absmax.T.astype(jnp.float32)              # (K//2, N), (K//64, N)


if __name__ == "__main__":
    key = jax.random.PRNGKey(0)
    k_w, k_b, k_x = jax.random.split(key, 3)

    batch, seq = 2, 4
    in_features, out_features = 1024, 512
    tk, tn = 512, 256

    # deterministic "checkpoint" params (Params4bit source + bias)
    weight = jax.random.normal(k_w, (out_features, in_features), jnp.float32) * 0.02
    bias = (jax.random.normal(k_b, (out_features,), jnp.float32) * 0.1).astype(jnp.bfloat16)

    codes, absmax = nf4_quantize(weight)                     # 4-bit codes + scales
    packed, absmax_t = pack_nf4_for_kernel(codes, absmax, tk=tk)

    x = jax.random.normal(k_x, (batch, seq, in_features), jnp.float32).astype(jnp.bfloat16)

    out = linear4bit(x, packed, absmax_t, bias, tk=tk, tn=tn)
    out = jax.block_until_ready(out)

    # reference: dequantized-weight matmul in fp32
    w_dq = nf4_dequantize(codes, absmax)
    ref = (x.reshape(-1, in_features).astype(jnp.float32) @ w_dq.T
           + bias.astype(jnp.float32)[None, :]).reshape(batch, seq, out_features)

    assert out.shape == (batch, seq, out_features)
    assert out.dtype == x.dtype
    err = float(jnp.max(jnp.abs(out.astype(jnp.float32) - ref)))
    assert err < 5e-2, f"max abs err {err}"
    print("KERNEL_OK")
</pallas_src>

<mosaic_0001>
module attributes {stable_mosaic.version = 11 : i64} {
  func.func @_linear4bit_kernel(%arg0: i32, %arg1: i32, %arg2: i32, %arg3: memref<8x512xbf16, #tpu.memory_space<vmem>>, %arg4: memref<256x256xi8, #tpu.memory_space<vmem>>, %arg5: memref<16x256xf32, #tpu.memory_space<vmem>>, %arg6: memref<1x256xbf16, #tpu.memory_space<vmem>>, %arg7: memref<8x256xbf16, #tpu.memory_space<vmem>>, %arg8: memref<8x256xf32, #tpu.memory_space<vmem>>) attributes {dimension_semantics = [#tpu.dimension_semantics<parallel>, #tpu.dimension_semantics<parallel>, #tpu.dimension_semantics<arbitrary>], iteration_bounds = array<i64: 1, 2, 2>, scalar_prefetch = 0 : i64, scratch_operands = 1 : i64, tpu.core_type = #tpu.core_type<tc>, window_params = [{transform_indices = @transform_0, window_bounds = array<i64: 8, 512>}, {transform_indices = @transform_1, window_bounds = array<i64: 256, 256>}, {transform_indices = @transform_2, window_bounds = array<i64: 16, 256>}, {transform_indices = @transform_3, window_bounds = array<i64: 1, 256>}, {transform_indices = @transform_4, window_bounds = array<i64: 8, 256>}]} {
    %c0_i32 = arith.constant 0 : i32
    %0 = arith.cmpi eq, %arg2, %c0_i32 : i32
    %1 = arith.extui %0 : i1 to i32
    %c0_i32_0 = arith.constant 0 : i32
    %2 = arith.cmpi ne, %1, %c0_i32_0 : i32
    scf.if %2 {
      %cst_59 = arith.constant 0.000000e+00 : f32
      %134 = vector.broadcast %cst_59 : f32 to vector<8x256xf32>
      %c0_60 = arith.constant 0 : index
      %c0_61 = arith.constant 0 : index
      %135 = vector.load %arg8[%c0_60, %c0_61] : memref<8x256xf32, #tpu.memory_space<vmem>>, vector<8x256xf32>
      tpu.vector_store %arg8[%c0_60, %c0_61], %134 {strides = array<i32>} : memref<8x256xf32, #tpu.memory_space<vmem>>, vector<8x256xf32>,
    } else {
    }
    %c0 = arith.constant 0 : index
    %c0_1 = arith.constant 0 : index
    %3 = vector.load %arg4[%c0, %c0_1] : memref<256x256xi8, #tpu.memory_space<vmem>>, vector<256x256xi8>
    %4 = arith.extui %3 : vector<256x256xi8> to vector<256x256xi32>
    %c15_i32 = arith.constant 15 : i32
    %5 = vector.broadcast %c15_i32 : i32 to vector<256x256xi32>
    %6 = arith.andi %4, %5 : vector<256x256xi32>
    %c4_i32 = arith.constant 4 : i32
    %7 = vector.broadcast %c4_i32 : i32 to vector<256x256xi32>
    %8 = arith.shrsi %4, %7 : vector<256x256xi32>
    %c15_i32_2 = arith.constant 15 : i32
    %9 = vector.broadcast %c15_i32_2 : i32 to vector<256x256xi32>
    %10 = arith.andi %8, %9 : vector<256x256xi32>
    %c8_i32 = arith.constant 8 : i32
    %11 = arith.muli %arg2, %c8_i32 : i32
    %12 = arith.index_cast %11 : i32 to index
    %c0_3 = arith.constant 0 : index
    %13 = vector.load %arg5[%12, %c0_3] : memref<16x256xf32, #tpu.memory_space<vmem>>, vector<8x256xf32>
    %14 = vector.extract_strided_slice %13 {offsets = [0, 0], sizes = [4, 256], strides = [1, 1]} : vector<8x256xf32> to vector<4x256xf32>
    %c1_i32 = arith.constant 1 : i32
    %15 = vector.broadcast %c1_i32 : i32 to vector<256x256xi32>
    %16 = arith.andi %6, %15 : vector<256x256xi32>
    %c0_i32_4 = arith.constant 0 : i32
    %17 = vector.broadcast %c0_i32_4 : i32 to vector<256x256xi32>
    %18 = arith.cmpi ne, %16, %17 : vector<256x256xi32>
    %c2_i32 = arith.constant 2 : i32
    %19 = vector.broadcast %c2_i32 : i32 to vector<256x256xi32>
    %20 = arith.andi %6, %19 : vector<256x256xi32>
    %c0_i32_5 = arith.constant 0 : i32
    %21 = vector.broadcast %c0_i32_5 : i32 to vector<256x256xi32>
    %22 = arith.cmpi ne, %20, %21 : vector<256x256xi32>
    %c4_i32_6 = arith.constant 4 : i32
    %23 = vector.broadcast %c4_i32_6 : i32 to vector<256x256xi32>
    %24 = arith.andi %6, %23 : vector<256x256xi32>
    %c0_i32_7 = arith.constant 0 : i32
    %25 = vector.broadcast %c0_i32_7 : i32 to vector<256x256xi32>
    %26 = arith.cmpi ne, %24, %25 : vector<256x256xi32>
    %c8_i32_8 = arith.constant 8 : i32
    %27 = vector.broadcast %c8_i32_8 : i32 to vector<256x256xi32>
    %28 = arith.andi %6, %27 : vector<256x256xi32>
    %c0_i32_9 = arith.constant 0 : i32
    %29 = vector.broadcast %c0_i32_9 : i32 to vector<256x256xi32>
    %30 = arith.cmpi ne, %28, %29 : vector<256x256xi32>
    %cst = arith.constant -0.6961928 : f32
    %cst_10 = arith.constant -1.000000e+00 : f32
    %31 = vector.broadcast %cst : f32 to vector<256x256xf32>
    %32 = vector.broadcast %cst_10 : f32 to vector<256x256xf32>
    %33 = arith.select %18, %31, %32 : vector<256x256xi1>, vector<256x256xf32>
    %cst_11 = arith.constant -0.394917488 : f32
    %cst_12 = arith.constant -0.525073051 : f32
    %34 = vector.broadcast %cst_11 : f32 to vector<256x256xf32>
    %35 = vector.broadcast %cst_12 : f32 to vector<256x256xf32>
    %36 = arith.select %18, %34, %35 : vector<256x256xi1>, vector<256x256xf32>
    %cst_13 = arith.constant -0.18477343 : f32
    %cst_14 = arith.constant -0.284441382 : f32
    %37 = vector.broadcast %cst_13 : f32 to vector<256x256xf32>
    %38 = vector.broadcast %cst_14 : f32 to vector<256x256xf32>
    %39 = arith.select %18, %37, %38 : vector<256x256xi1>, vector<256x256xf32>
    %cst_15 = arith.constant 0.000000e+00 : f32
    %cst_16 = arith.constant -0.0910500362 : f32
    %40 = vector.broadcast %cst_15 : f32 to vector<256x256xf32>
    %41 = vector.broadcast %cst_16 : f32 to vector<256x256xf32>
    %42 = arith.select %18, %40, %41 : vector<256x256xi1>, vector<256x256xf32>
    %cst_17 = arith.constant 0.160930201 : f32
    %cst_18 = arith.constant 0.0795802995 : f32
    %43 = vector.broadcast %cst_17 : f32 to vector<256x256xf32>
    %44 = vector.broadcast %cst_18 : f32 to vector<256x256xf32>
    %45 = arith.select %18, %43, %44 : vector<256x256xi1>, vector<256x256xf32>
    %cst_19 = arith.constant 0.337915242 : f32
    %cst_20 = arith.constant 0.246112391 : f32
    %46 = vector.broadcast %cst_19 : f32 to vector<256x256xf32>
    %47 = vector.broadcast %cst_20 : f32 to vector<256x256xf32>
    %48 = arith.select %18, %46, %47 : vector<256x256xi1>, vector<256x256xf32>
    %cst_21 = arith.constant 5.626170e-01 : f32
    %cst_22 = arith.constant 0.440709829 : f32
    %49 = vector.broadcast %cst_21 : f32 to vector<256x256xf32>
    %50 = vector.broadcast %cst_22 : f32 to vector<256x256xf32>
    %51 = arith.select %18, %49, %50 : vector<256x256xi1>, vector<256x256xf32>
    %cst_23 = arith.constant 1.000000e+00 : f32
    %cst_24 = arith.constant 0.722956836 : f32
    %52 = vector.broadcast %cst_23 : f32 to vector<256x256xf32>
    %53 = vector.broadcast %cst_24 : f32 to vector<256x256xf32>
    %54 = arith.select %18, %52, %53 : vector<256x256xi1>, vector<256x256xf32>
    %55 = arith.select %22, %36, %33 : vector<256x256xi1>, vector<256x256xf32>
    %56 = arith.select %22, %42, %39 : vector<256x256xi1>, vector<256x256xf32>
    %57 = arith.select %22, %48, %45 : vector<256x256xi1>, vector<256x256xf32>
    %58 = arith.select %22, %54, %51 : vector<256x256xi1>, vector<256x256xf32>
    %59 = arith.select %26, %56, %55 : vector<256x256xi1>, vector<256x256xf32>
    %60 = arith.select %26, %58, %57 : vector<256x256xi1>, vector<256x256xf32>
    %61 = arith.select %30, %60, %59 : vector<256x256xi1>, vector<256x256xf32>
    %62 = vector.shape_cast %61 : vector<256x256xf32> to vector<4x64x256xf32>
    %63 = vector.shape_cast %14 : vector<4x256xf32> to vector<4x1x256xf32>
    %64 = vector.broadcast %63 : vector<4x1x256xf32> to vector<4x64x256xf32>
    %65 = arith.mulf %62, %64 : vector<4x64x256xf32>
    %66 = vector.shape_cast %65 : vector<4x64x256xf32> to vector<256x256xf32>
    %67 = arith.truncf %66 : vector<256x256xf32> to vector<256x256xbf16>
    %68 = vector.extract_strided_slice %13 {offsets = [4, 0], sizes = [4, 256], strides = [1, 1]} : vector<8x256xf32> to vector<4x256xf32>
    %c1_i32_25 = arith.constant 1 : i32
    %69 = vector.broadcast %c1_i32_25 : i32 to vector<256x256xi32>
    %70 = arith.andi %10, %69 : vector<256x256xi32>
    %c0_i32_26 = arith.constant 0 : i32
    %71 = vector.broadcast %c0_i32_26 : i32 to vector<256x256xi32>
    %72 = arith.cmpi ne, %70, %71 : vector<256x256xi32>
    %c2_i32_27 = arith.constant 2 : i32
    %73 = vector.broadcast %c2_i32_27 : i32 to vector<256x256xi32>
    %74 = arith.andi %10, %73 : vector<256x256xi32>
    %c0_i32_28 = arith.constant 0 : i32
    %75 = vector.broadcast %c0_i32_28 : i32 to vector<256x256xi32>
    %76 = arith.cmpi ne, %74, %75 : vector<256x256xi32>
    %c4_i32_29 = arith.constant 4 : i32
    %77 = vector.broadcast %c4_i32_29 : i32 to vector<256x256xi32>
    %78 = arith.andi %10, %77 : vector<256x256xi32>
    %c0_i32_30 = arith.constant 0 : i32
    %79 = vector.broadcast %c0_i32_30 : i32 to vector<256x256xi32>
    %80 = arith.cmpi ne, %78, %79 : vector<256x256xi32>
    %c8_i32_31 = arith.constant 8 : i32
    %81 = vector.broadcast %c8_i32_31 : i32 to vector<256x256xi32>
    %82 = arith.andi %10, %81 : vector<256x256xi32>
    %c0_i32_32 = arith.constant 0 : i32
    %83 = vector.broadcast %c0_i32_32 : i32 to vector<256x256xi32>
    %84 = arith.cmpi ne, %82, %83 : vector<256x256xi32>
    %cst_33 = arith.constant -0.6961928 : f32
    %cst_34 = arith.constant -1.000000e+00 : f32
    %85 = vector.broadcast %cst_33 : f32 to vector<256x256xf32>
    %86 = vector.broadcast %cst_34 : f32 to vector<256x256xf32>
    %87 = arith.select %72, %85, %86 : vector<256x256xi1>, vector<256x256xf32>
    %cst_35 = arith.constant -0.394917488 : f32
    %cst_36 = arith.constant -0.525073051 : f32
    %88 = vector.broadcast %cst_35 : f32 to vector<256x256xf32>
    %89 = vector.broadcast %cst_36 : f32 to vector<256x256xf32>
    %90 = arith.select %72, %88, %89 : vector<256x256xi1>, vector<256x256xf32>
    %cst_37 = arith.constant -0.18477343 : f32
    %cst_38 = arith.constant -0.284441382 : f32
    %91 = vector.broadcast %cst_37 : f32 to vector<256x256xf32>
    %92 = vector.broadcast %cst_38 : f32 to vector<256x256xf32>
    %93 = arith.select %72, %91, %92 : vector<256x256xi1>, vector<256x256xf32>
    %cst_39 = arith.constant 0.000000e+00 : f32
    %cst_40 = arith.constant -0.0910500362 : f32
    %94 = vector.broadcast %cst_39 : f32 to vector<256x256xf32>
    %95 = vector.broadcast %cst_40 : f32 to vector<256x256xf32>
    %96 = arith.select %72, %94, %95 : vector<256x256xi1>, vector<256x256xf32>
    %cst_41 = arith.constant 0.160930201 : f32
    %cst_42 = arith.constant 0.0795802995 : f32
    %97 = vector.broadcast %cst_41 : f32 to vector<256x256xf32>
    %98 = vector.broadcast %cst_42 : f32 to vector<256x256xf32>
    %99 = arith.select %72, %97, %98 : vector<256x256xi1>, vector<256x256xf32>
    %cst_43 = arith.constant 0.337915242 : f32
    %cst_44 = arith.constant 0.246112391 : f32
    %100 = vector.broadcast %cst_43 : f32 to vector<256x256xf32>
    %101 = vector.broadcast %cst_44 : f32 to vector<256x256xf32>
    %102 = arith.select %72, %100, %101 : vector<256x256xi1>, vector<256x256xf32>
    %cst_45 = arith.constant 5.626170e-01 : f32
    %cst_46 = arith.constant 0.440709829 : f32
    %103 = vector.broadcast %cst_45 : f32 to vector<256x256xf32>
    %104 = vector.broadcast %cst_46 : f32 to vector<256x256xf32>
    %105 = arith.select %72, %103, %104 : vector<256x256xi1>, vector<256x256xf32>
    %cst_47 = arith.constant 1.000000e+00 : f32
    %cst_48 = arith.constant 0.722956836 : f32
    %106 = vector.broadcast %cst_47 : f32 to vector<256x256xf32>
    %107 = vector.broadcast %cst_48 : f32 to vector<256x256xf32>
    %108 = arith.select %72, %106, %107 : vector<256x256xi1>, vector<256x256xf32>
    %109 = arith.select %76, %90, %87 : vector<256x256xi1>, vector<256x256xf32>
    %110 = arith.select %76, %96, %93 : vector<256x256xi1>, vector<256x256xf32>
    %111 = arith.select %76, %102, %99 : vector<256x256xi1>, vector<256x256xf32>
    %112 = arith.select %76, %108, %105 : vector<256x256xi1>, vector<256x256xf32>
    %113 = arith.select %80, %110, %109 : vector<256x256xi1>, vector<256x256xf32>
    %114 = arith.select %80, %112, %111 : vector<256x256xi1>, vector<256x256xf32>
    %115 = arith.select %84, %114, %113 : vector<256x256xi1>, vector<256x256xf32>
    %116 = vector.shape_cast %115 : vector<256x256xf32> to vector<4x64x256xf32>
    %117 = vector.shape_cast %68 : vector<4x256xf32> to vector<4x1x256xf32>
    %118 = vector.broadcast %117 : vector<4x1x256xf32> to vector<4x64x256xf32>
    %119 = arith.mulf %116, %118 : vector<4x64x256xf32>
    %120 = vector.shape_cast %119 : vector<4x64x256xf32> to vector<256x256xf32>
    %121 = arith.truncf %120 : vector<256x256xf32> to vector<256x256xbf16>
    %c0_49 = arith.constant 0 : index
    %c0_50 = arith.constant 0 : index
    %122 = vector.load %arg3[%c0_49, %c0_50] : memref<8x512xbf16, #tpu.memory_space<vmem>>, vector<8x512xbf16>
    %c0_51 = arith.constant 0 : index
    %c0_52 = arith.constant 0 : index
    %123 = vector.load %arg8[%c0_51, %c0_52] : memref<8x256xf32, #tpu.memory_space<vmem>>, vector<8x256xf32>
    %124 = vector.extract_strided_slice %122 {offsets = [0, 0], sizes = [8, 256], strides = [1, 1]} : vector<8x512xbf16> to vector<8x256xbf16>
    %cst_53 = arith.constant dense<0.000000e+00> : vector<8x256xf32>
    %125 = tpu.matmul %124, %67, %cst_53 {dimension_numbers = #tpu.dot_dimension_numbers<[1], [0], [0], [1], [0, 0, 1, 1], [], []>} : vector<8x256xbf16>, vector<256x256xbf16>, vector<8x256xf32> -> vector<8x256xf32>
    %126 = vector.extract_strided_slice %122 {offsets = [0, 256], sizes = [8, 256], strides = [1, 1]} : vector<8x512xbf16> to vector<8x256xbf16>
    %cst_54 = arith.constant dense<0.000000e+00> : vector<8x256xf32>
    %127 = tpu.matmul %126, %121, %cst_54 {dimension_numbers = #tpu.dot_dimension_numbers<[1], [0], [0], [1], [0, 0, 1, 1], [], []>} : vector<8x256xbf16>, vector<256x256xbf16>, vector<8x256xf32> -> vector<8x256xf32>
    %128 = arith.addf %125, %127 : vector<8x256xf32>
    %129 = arith.addf %123, %128 : vector<8x256xf32>
    %c0_55 = arith.constant 0 : index
    %c0_56 = arith.constant 0 : index
    %130 = vector.load %arg8[%c0_55, %c0_56] : memref<8x256xf32, #tpu.memory_space<vmem>>, vector<8x256xf32>
    tpu.vector_store %arg8[%c0_55, %c0_56], %129 {strides = array<i32>} : memref<8x256xf32, #tpu.memory_space<vmem>>, vector<8x256xf32>,
    %c1_i32_57 = arith.constant 1 : i32
    %131 = arith.cmpi eq, %arg2, %c1_i32_57 : i32
    %132 = arith.extui %131 : i1 to i32
    %c0_i32_58 = arith.constant 0 : i32
    %133 = arith.cmpi ne, %132, %c0_i32_58 : i32
    scf.if %133 {
      %c0_59 = arith.constant 0 : index
      %c0_60 = arith.constant 0 : index
      %134 = vector.load %arg8[%c0_59, %c0_60] : memref<8x256xf32, #tpu.memory_space<vmem>>, vector<8x256xf32>
      %c0_61 = arith.constant 0 : index
      %c0_62 = arith.constant 0 : index
      %135 = vector.load %arg6[%c0_61, %c0_62] : memref<1x256xbf16, #tpu.memory_space<vmem>>, vector<1x256xbf16>
      %136 = arith.extf %135 : vector<1x256xbf16> to vector<1x256xf32>
      %137 = vector.broadcast %136 : vector<1x256xf32> to vector<8x256xf32>
      %138 = arith.addf %134, %137 : vector<8x256xf32>
      %139 = arith.truncf %138 : vector<8x256xf32> to vector<8x256xbf16>
      %c0_63 = arith.constant 0 : index
      %c0_64 = arith.constant 0 : index
      %140 = vector.load %arg7[%c0_63, %c0_64] : memref<8x256xbf16, #tpu.memory_space<vmem>>, vector<8x256xbf16>
      tpu.vector_store %arg7[%c0_63, %c0_64], %139 {strides = array<i32>} : memref<8x256xbf16, #tpu.memory_space<vmem>>, vector<8x256xbf16>,
    } else {
    }
    return
  }
  func.func @transform_0(%arg0: i32, %arg1: i32, %arg2: i32) -> (i32, i32) {
    %c0_i32 = arith.constant 0 : i32
    return %arg0, %arg2 : i32, i32
  }
  func.func @transform_1(%arg0: i32, %arg1: i32, %arg2: i32) -> (i32, i32) {
    %c0_i32 = arith.constant 0 : i32
    return %arg2, %arg1 : i32, i32
  }
  func.func @transform_2(%arg0: i32, %arg1: i32, %arg2: i32) -> (i32, i32) {
    %c0_i32 = arith.constant 0 : i32
    %c0_i32_0 = arith.constant 0 : i32
    return %c0_i32, %arg1 : i32, i32
  }
  func.func @transform_3(%arg0: i32, %arg1: i32, %arg2: i32) -> (i32, i32) {
    %c0_i32 = arith.constant 0 : i32
    %c0_i32_0 = arith.constant 0 : i32
    return %c0_i32, %arg1 : i32, i32
  }
  func.func @transform_4(%arg0: i32, %arg1: i32, %arg2: i32) -> (i32, i32) {
    %c0_i32 = arith.constant 0 : i32
    return %arg0, %arg1 : i32, i32
  }
}

</mosaic_0001>

<bundles_post_ra>
// kernel: tpu_custom_call.1
= control target key start
LH: loop header
LB: loop body
LE: loop exit
PB: predicated region body
PF: predicated region fallthrough
CT: control target
= control target key end

     0   :  { %s12998_s0 = inlined_call_operand.hbm [shape: bf16[8,1024], index: 0, kind: input, shape index: {}]   ;;  %s12999_s1 = inlined_call_operand.hbm [shape: u8[512,512], index: 1, kind: input, shape index: {}]   ;;  %s13000_s2 = inlined_call_operand.hbm [shape: f32[16,512], index: 2, kind: input, shape index: {}]   ;;  %s13001_s3 = inlined_call_operand.vmem [shape: bf16[1,512], index: 3, kind: input, shape index: {}]   ;;  %s13002_s4 = inlined_call_operand.hbm [shape: bf16[8,512], index: 4, kind: output, shape index: {}]  }
   0x1   :  { %13019 = sst [smem:[#allocation21_spill]] %s12999_s1 }
   0x2   :  { %13020 = sst [smem:[#allocation22_spill]] %s13001_s3 }
   0x3   :  { %13021 = sst [smem:[#allocation23_spill]] %s13002_s4 }
   0x4   :  { %9 = vsyncpa [#allocation4], 0 }
   0x5   :  { %11 = vsyncpa [#allocation4 + $0x1], 0 }
   0x6   :  { %12 = vsyncpa [#allocation7], 0 }
   0x7   :  { %14 = vsyncpa [#allocation7 + $0x1], 0 }
   0x8   :  { %15 = vsyncpa [#allocation5], 0 }
   0x9   :  { %17 = vsyncpa [#allocation5 + $0x1], 0  ;;  %s4755_s15 = smov 0   ;;  %s4757_s16 = smov 0  }
   0xa   :  { %s4759_s17 = smov 0   ;;  %s4761_s18 = smov 0  }
   0xb   :  { %s4763_s19 = smov 0   ;;  %s4765_s20 = smov 0  }
   0xc   :  { %s4767_s21 = smov 0   ;;  %s4769_s22 = smov 0  }
   0xd   :  { %s4771_s23 = smov 0   ;;  %s4773_s24 = smov 0  }
   0xe   :  { %s4775_s25 = smov 0   ;;  %s4777_s26 = smov 0  }
   0xf   :  { %s4779_s27 = smov 0   ;;  %s4781_s28 = smov 0  }
  0x10 LB: > { %13022 = sst [smem:[#allocation14_spill]] %s4659_s15  ;;  %p13005_p0 = scmp.eq.s32.totalorder %s4711_s28, 0  ;;  %s4711_s28 = sphi %s4781_s28, %s23_s28   ;;  %s4707_s27 = sphi %s4779_s27, %s14102_s27   ;;  %s4703_s26 = sphi %s4777_s26, %s14091_s26   ;;  %s4699_s25 = sphi %s4775_s25, %s14101_s25   ;;  %s4695_s24 = sphi %s4773_s24, %s14090_s24   ;;  %s4691_s23 = sphi %s4771_s23, %s14089_s23   ;;  %s4687_s22 = sphi %s4769_s22, %s14100_s22   ;;  %s4683_s21 = sphi %s4767_s21, %s14099_s21   ;;  %s4679_s20 = sphi %s4765_s20, %s14098_s20   ;;  %s4675_s19 = sphi %s4763_s19, %s14097_s19   ;;  %s4671_s18 = sphi %s4761_s18, %s14096_s18   ;;  %s4667_s17 = sphi %s4759_s17, %s14095_s17   ;;  %s4663_s16 = sphi %s4757_s16, %s14094_s16   ;;  %s4659_s15 = sphi %s4755_s15, %s14093_s15  }
  0x11   : > { %13023 = sst [smem:[#allocation15_spill]] %s4691_s23  ;;  %p86_p1 = scmp.ne.s32.totalorder %s4679_s20, %s4675_s19 }
  0x12   : > { %13024 = sst [smem:[#allocation16_spill]] %s4695_s24  ;;  %p13004_p4 = scmp.lt.s32.totalorder %s4711_s28, 4 }
  0x13   : > { %13025 = sst [smem:[#allocation17_spill]] %s4703_s26  ;;  %p88_p3 = por %p86_p1, %p13005_p0 }
  0x14   : > { %s217_s5 = sand.u32 1, %s4711_s28   ;;  %s219_s6 = sand.u32 1, %s4679_s20  }
  0x15   : > { %s4276_s7 = sshll.u32 %s219_s6, 7  ;;  %s4278_s8 = sshll.u32 %s4707_s27, 1 }
  0x16   : > { %s4306_s9 = sshll.u32 %s4703_s26, 5  ;;  %s221_s10 = scalar_lea.vmem [#allocation6], %s4276_s7 }
  0x17   : > { %s231_s11 = sshll.u32 %s221_s10, 4  ;;  %s228_s12 = sadd.s32 %s4306_s9, %s4278_s8  ;;  %s4839_s11 = int_to_ptr.vmem [resolvable:$true] %s231_s11 }
  0x18   : > { %s4280_s13 = sshll.u32 %s228_s12, 7  ;;  %p4843_p5 = pnand %p13004_p4, %p88_p3 }
  0x19   : > { %s13027_s1 = sld [smem:[#allocation21_spill]]  ;;  %p4284_p6 = scmp.ge.s32.totalorder %s4711_s28, 1 }
  0x1a   : > { %s4853_s6 = scalar_lea.sflag [#allocation7], %s217_s5  ;;  %p4469_p8 = pneg %p4843_p5 }
  0x1f   : > { %s4850_s4 = scalar_lea.hbm %s13027_s1, %s4280_s13  ;;  %s4472_s8 = scalar_lea.hbm %s13027_s1, 8192 }
  0x20   : > { %s4467_s7 = scalar_lea.hbm %s4850_s4, 2048  ;;  %p4473_p11 = scmp.lt.u32.totalorder %s4850_s4, %s13027_s1 }
  0x21   : > { %p4468_p7 = scmp.ne.s32.totalorder %s4850_s4, %s4467_s7  ;;  %p4474_p12 = scmp.lt.u32.totalorder %s4472_s8, %s4467_s7 }
  0x22   : > { %p4476_p1 = scmp.lt.u32.totalorder %s4467_s7, %s4850_s4 }
  0x23   : > { %p4470_p9 = pnand %p4469_p8, %p4468_p7  ;;  %p4475_p13 = por %p4474_p12, %p4473_p11 }
  0x25   : > { %p4471_p10 = pneg %p4470_p9  ;;  %p4477_p3 = por %p4476_p1, %p4475_p13 }
  0x27   : > { %p4478_p4 = pnand %p4477_p3, %p4471_p10 }
  0x29   : > { %4481 = shalt.err (!%p4478_p4)
}
  0x2a   : > { %s4482_s5 = scalar_lea.vmem %s4839_s11, 2048  ;;  %s4713_s12 = smov [#allocation6]  }
  0x2b   : > { %p4483_p7 = scmp.ne.s32.totalorder %s4839_s11, %s4482_s5  ;;  %s4487_s13 = sshll.u32 %s4713_s12, 4  ;;  %s4488_s13 = int_to_ptr.vmem [resolvable:$false] %s4487_s13 }
  0x2c   : > { %s4489_s29 = scalar_lea.vmem %s4488_s13, 4096  ;;  %p4490_p0 = scmp.lt.s32.totalorder %s4839_s11, %s4488_s13 }
  0x2d   : > { %p4485_p9 = pnand %p4483_p7, %p4469_p8  ;;  %p4491_p11 = scmp.lt.s32.totalorder %s4489_s29, %s4482_s5 }
  0x2f   : > { %p4486_p2 = pneg %p4485_p9  ;;  %p4492_p12 = por %p4491_p11, %p4490_p0 }
  0x31   : > { %p4493_p13 = pnand %p4492_p12, %p4486_p2 }
  0x33   : > { %4496 = shalt.err (!%p4493_p13)
}
  0x34   : > { %s13006_s7 = smov 512   ;;  %s13007_s30 = smov 256  }
  0x35   : > { %s13008_s8 = smov 16   ;;  %p268_p0 = scmp.lt.s32.totalorder %s4711_s28, 5 }
  0x36   : > { %4325 = dma.hbm_to_vmem [thread:$0]  (!%p4843_p5), %s4850_s4, 2048, %s4839_s11, %s4853_s6, %s13006_s7, %s13007_s30, %s13008_s8  }
  0x37   : > { %p4887_p2 = pnand %p4284_p6, %p268_p0  ;;  %s4892_s10 = sadd.s32 4294967295, %s4711_s28  }
  0x38   : > { %s4270_s5 = sadd.s32 4294967294, %s4711_s28   ;;  %s35_s14 = sadd.s32 1, %s4703_s26 }
  0x39   : > { %s51_s12 = sadd.s32 1, %s4691_s23  ;;  %p36_p4 = scmp.ge.s32.totalorder %s35_s14, 2 }
  0x3a   : > { %p58_p5 = scmp.ne.s32.totalorder %s4691_s23, %s4687_s22  ;;  %p64_p6 = scmp.ne.s32.totalorder %s4687_s22, %s4683_s21 }
  0x3b   : > { %p65_p8 = scmp.eq.s32.totalorder %s4892_s10, 0  ;;  %s14104_s14 = smov (%p36_p4, %s35_s14), 0 }
  0x3c   : > { %13029 = sst [smem:[#allocation18_spill]] %s14104_s14  ;;  %s13030_s4 = sadd.s32 1, %s4707_s27 }
  0x3d   : > { %s14106_s4 = smov (!%p36_p4, %s13030_s4), %s4707_s27  ;;  %s47_s11 = ssub.s32 %s4703_s26, %s14104_s14 }
  0x3e   : > { %p13031_p10 = scmp.eq.s32.totalorder %s4711_s28, 0  ;;  %p40_p3 = scmp.ge.s32.totalorder %s14106_s4, 2 }
  0x3f   : > { %p49_p7 = scmp.eq.s32.totalorder %s47_s11, 0  ;;  %p4917_p9 = por %p65_p8, %p64_p6 }
  0x40   : > { %p4911_p1 = por %p13031_p10, %p58_p5  ;;  %p13034_p11 = scmp.ne.s32.totalorder %s4675_s19, %s4671_s18 }
  0x41   : > { %s13033_s21 = scalar_select %p4917_p9, 1, 0 }
  0x42   : > { %p4926_p12 = por %p13034_p11, %p65_p8  ;;  %s14108_s4 = smov (%p40_p3, %s14106_s4), 0 }
  0x43   : > { %13036 = sst [smem:[#allocation19_spill]] %s14108_s4  ;;  %s4937_s30 = ssub.s32 %s4707_s27, %s14108_s4 }
  0x44   : > { %s13035_s29 = scalar_select %p4926_p12, 1, 0 }
  0x45   : > { %s4933_s7 = scalar_select %p49_p7, %s4691_s23, %s51_s12  }
  0x46   : > { %p118_p13 = scmp.ne.s32.totalorder %s4663_s16, %s4659_s15  ;;  %s76_s8 = sor.u32 %s4937_s30, %s47_s11 }
  0x47   : > { %13037 = sst [smem:[#allocation20_spill]] %s4933_s7  ;;  %p77_p4 = scmp.eq.s32.totalorder %s76_s8, 0 }
  0x48   : > { %p4945_p5 = por %p118_p13, %p65_p8  ;;  %p176_p10 = scmp.eq.s32.totalorder %s4270_s5, 3 }
  0x49   : > { %s13039_s12 = sadd.s32 1, %s4679_s20  ;;  %s196_s14 = sand.u32 1, %s4691_s23  }
  0x4a   : > { %s13038_s18 = scalar_select %p4945_p5, 1, 0 }
  0x4b   : > { %s4953_s1 = scalar_select %p77_p4, %s4679_s20, %s13039_s12  }
  0x4c   : > { %p4955_p3 = por %p176_p10, %p118_p13  ;;  %s4273_s7 = sshll.u32 %s196_s14, 4 }
  0x4d   : > { %s4305_s11 = sshll.u32 %s4703_s26, 8  ;;  %s200_s5 = scalar_lea.vmem [#allocation3], %s4273_s7 }
  0x4e   : > { %s13040_s4 = scalar_select %p4955_p3, 1, 0 }
  0x4f   : > { %s4964_s8 = scalar_lea.hbm %s12998_s0, %s4305_s11  ;;  %s210_s3 = sshll.u32 %s200_s5, 4  ;;  %s4966_s3 = int_to_ptr.vmem [resolvable:$true] %s210_s3 }
  0x50   : > { %p13041_p8 = scmp.lt.s32.totalorder %s4711_s28, 4  ;;  %s4307_s26 = sshll.u32 %s4707_s27, 8 }
  0x51   : > { %s197_s15 = scalar_lea.sflag [#allocation4], %s196_s14  ;;  %s4497_s24 = scalar_lea.hbm %s4964_s8, 256 }
  0x52   : > { %p4972_p7 = pnand %p13041_p8, %p4911_p1  ;;  %p4498_p11 = scmp.ne.s32.totalorder %s4964_s8, %s4497_s24 }
  0x53   : > { %s4502_s13 = scalar_lea.hbm %s12998_s0, 512  ;;  %p4503_p1 = scmp.lt.u32.totalorder %s4964_s8, %s12998_s0 }
  0x54   : > { %p4499_p13 = pneg %p4972_p7  ;;  %p4504_p8 = scmp.lt.u32.totalorder %s4502_s13, %s4497_s24 }
  0x55   : > { %p4506_p0 = scmp.lt.u32.totalorder %s4497_s24, %s4964_s8 }
  0x56   : > { %p4500_p4 = pnand %p4499_p13, %p4498_p11  ;;  %p4505_p6 = por %p4504_p8, %p4503_p1 }
  0x58   : > { %p4501_p10 = pneg %p4500_p4  ;;  %p4507_p3 = por %p4506_p0, %p4505_p6 }
  0x5a   : > { %p4508_p5 = pnand %p4507_p3, %p4501_p10 }
  0x5c   : > { %4511 = shalt.err (!%p4508_p5)
}
  0x5d   : > { %s4512_s14 = scalar_lea.vmem %s4966_s3, 256  ;;  %s4717_s7 = smov [#allocation3]  }
  0x5e   : > { %p4513_p11 = scmp.ne.s32.totalorder %s4966_s3, %s4512_s14  ;;  %s4517_s11 = sshll.u32 %s4717_s7, 4  ;;  %s4518_s11 = int_to_ptr.vmem [resolvable:$false] %s4517_s11 }
  0x5f   : > { %s4519_s23 = scalar_lea.vmem %s4518_s11, 512  ;;  %p4520_p9 = scmp.lt.s32.totalorder %s4966_s3, %s4518_s11 }
  0x60   : > { %p4515_p4 = pnand %p4513_p11, %p4499_p13  ;;  %p4521_p1 = scmp.lt.s32.totalorder %s4519_s23, %s4512_s14 }
  0x62   : > { %p4516_p12 = pneg %p4515_p4  ;;  %p4522_p8 = por %p4521_p1, %p4520_p9 }
  0x64   : > { %p4523_p0 = pnand %p4522_p8, %p4516_p12 }
  0x66   : > { %4526 = shalt.err (!%p4523_p0)
}
  0x67   : > { %4322 = dma.hbm_to_vmem [thread:$0]  (!%p4972_p7), %s4964_s8, 256, %s4966_s3, %s197_s15  }
  0x68   : > { %s105_s24 = sadd.s32 1, %s4667_s17  ;;  %p112_p5 = scmp.ne.s32.totalorder %s4667_s17, %s4663_s16 }
  0x69   : > { %p13043_p9 = scmp.eq.s32.totalorder %s4937_s30, 0  ;;  %p13044_p12 = scmp.eq.s32.totalorder %s4711_s28, 0 }
  0x6a   : > { %p13045_p3 = scmp.eq.s32.totalorder %s4892_s10, 3  ;;  %s243_s5 = sand.u32 1, %s4667_s17  }
  0x6b   : > { %s5008_s13 = scalar_select %p13043_p9, %s4667_s17, %s105_s24  }
  0x6c   : > { %p114_p6 = por %p112_p5, %p13044_p12  ;;  %p5014_p13 = por %p13045_p3, %p112_p5 }
  0x6d   : > { %s4281_s14 = sshll.u32 %s243_s5, 5  ;;  %p13047_p10 = scmp.lt.s32.totalorder %s4711_s28, 4 }
  0x6e   : > { %s13046_s12 = scalar_select %p5014_p13, 1, 0 }
  0x6f   : > { %p5021_p11 = pnand %p13047_p10, %p114_p6  ;;  %s5030_s30 = scalar_lea.hbm %s13000_s2, %s4307_s26 }
  0x70   : > { %s245_s15 = scalar_lea.vmem [#allocation8], %s4281_s14  ;;  %s4527_s23 = scalar_lea.hbm %s5030_s30, 512 }
  0x71   : > { %s252_s11 = sshll.u32 %s245_s15, 4  ;;  %p4528_p7 = scmp.ne.s32.totalorder %s5030_s30, %s4527_s23  ;;  %s5032_s11 = int_to_ptr.vmem [resolvable:$true] %s252_s11 }
  0x72   : > { %p4529_p4 = pneg %p5021_p11  ;;  %s4532_s26 = scalar_lea.hbm %s13000_s2, 1024 }
  0x73   : > { %p4533_p0 = scmp.lt.u32.totalorder %s5030_s30, %s13000_s2  ;;  %p4534_p5 = scmp.lt.u32.totalorder %s4532_s26, %s4527_s23 }
  0x74   : > { %p4530_p1 = pnand %p4529_p4, %p4528_p7  ;;  %p4536_p12 = scmp.lt.u32.totalorder %s4527_s23, %s5030_s30 }
  0x75   : > { %p4535_p9 = por %p4534_p5, %p4533_p0 }
  0x76   : > { %p4531_p8 = pneg %p4530_p1 }
  0x77   : > { %p4537_p6 = por %p4536_p12, %p4535_p9 }
  0x79   : > { %p4538_p3 = pnand %p4537_p6, %p4531_p8 }
  0x7b   : > { %4541 = shalt.err (!%p4538_p3)
}
  0x7c   : > { %s4542_s14 = scalar_lea.vmem %s5032_s11, 512  ;;  %s4718_s15 = smov [#allocation8]  }
  0x7d   : > { %p4543_p10 = scmp.ne.s32.totalorder %s5032_s11, %s4542_s14  ;;  %s4547_s24 = sshll.u32 %s4718_s15, 4  ;;  %s4548_s24 = int_to_ptr.vmem [resolvable:$false] %s4547_s24 }
  0x7e   : > { %s4549_s5 = scalar_lea.vmem %s4548_s24, 1024  ;;  %p4550_p13 = scmp.lt.s32.totalorder %s5032_s11, %s4548_s24 }
  0x7f   : > { %p4545_p7 = pnand %p4543_p10, %p4529_p4  ;;  %p4551_p0 = scmp.lt.s32.totalorder %s4549_s5, %s4542_s14 }
  0x81   : > { %p4546_p1 = pneg %p4545_p7  ;;  %p4552_p5 = por %p4551_p0, %p4550_p13 }
  0x83   : > { %p4553_p9 = pnand %p4552_p5, %p4546_p1 }
  0x85   : > { %4556 = shalt.err (!%p4553_p9)
}
  0x86   : > { %s13049_s23 = smov 16   ;;  %s13050_s26 = smov 256  }
  0x87   : > { %s13051_s3 = smov 512   ;;  %272 = sbr.rel (%p4887_p2) target bundleno = 1309 (0x51d), region = 36 }
  0x88   : > { %4328 = dma.hbm_to_vmem [thread:$0]  (!%p5021_p11), %s5030_s30, 512, %s5032_s11, %s4853_s6, %s13051_s3, %s13050_s26, %s13049_s23  }
  0x89   : > { %s274_s8 = sand.u32 (!%p4887_p2), 1, %s4687_s22   ;;  %p13052_p13 = scmp.ne.s32.totalorder (!%p4887_p2), %s13033_s21, 0 }
  0x8a   : > { %s5066_s15 = sshll.u32 (!%p4887_p2), %s274_s8, 4  ;;  %s275_s14 = scalar_lea.sflag (!%p4887_p2), [#allocation4], %s274_s8 }
  0x8b   : > { %s278_s24 = scalar_lea.vmem (!%p4887_p2), [#allocation3], %s5066_s15 }
  0x8e   : > { %4642 = dma.done.wait (%p13052_p13), %s275_s14, 256  }
  0x8f   : > { %4644 = vsyncadd (%p13052_p13), %s275_s14, 4294967040  ;;  %s283_s6 = sand.u32 1, %s4892_s10   ;;  %s285_s7 = sand.u32 1, %s4675_s19  }
  0x90   : > { %s4286_s9 = sshll.u32 %s285_s7, 7  ;;  %s284_s30 = scalar_lea.sflag [#allocation7], %s283_s6 }
  0x91   : > { %s5075_s11 = scalar_lea.vmem [#allocation6], %s4286_s9  ;;  %p13053_p2 = scmp.ne.s32.totalorder %s13035_s29, 0 }
  0x93   : > { %4646 = dma.done.wait (%p13053_p2), %s284_s30, 2048  }
  0x94   : > { %4648 = vsyncadd (%p13053_p2), %s284_s30, 4294965248  ;;  %s5082_s5 = sand.u32 1, %s4663_s16   ;;  %p13054_p11 = scmp.ne.s32.totalorder %s13038_s18, 0 }
  0x95   : > { %s4287_s21 = sshll.u32 %s5082_s5, 5 }
  0x96   : > { %s296_s23 = scalar_lea.vmem [#allocation8], %s4287_s21 }
  0x97   : > { %4650 = dma.done.wait (%p13054_p11), %s284_s30, 512  }
  0x98   : > { %4652 = vsyncadd (%p13054_p11), %s284_s30, 4294966784  ;;  %s4288_s10 = sshll.u32 %s5082_s5, 3  ;;  %s4289_s26 = sshll.u32 %s4699_s25, 1 }
  0x99   : > { %p340_p4 = scmp.lt.s32.totalorder %s4289_s26, 3  ;;  %s13055_s8 = sld [smem:[#allocation22_spill]] }
  0x9a   : > { %s5097_s6 = scalar_lea.vmem [#allocation9], %s4288_s10  ;;  %s13056_s7 = sld [smem:[#allocation16_spill]] }
  0x9b   : > { %s14110_s26 = smov (!%p340_p4, %s4289_s26), 3 }
  0x9f   : > { %s342_s14 = scalar_lea.vmem %s13055_s8, %s14110_s26 }
  0xa0   : > { %p4290_p8 = scmp.ne.s32.totalorder %s13056_s7, 0 }
  0xa1   : > { %v4719_v0 = vmov (!%p4290_p8), 0.0  }
  0xa2   : > { %348 = sbr.rel (%p4290_p8) target bundleno = 169 (0xa9), region = 52  ;;  %349 = vst [vmem:[#allocation2] sm:$0xff] (!%p4290_p8), %v4719_v0  ;;  %350 = vst [vmem:[#allocation2 + $0x8] sm:$0xff] (!%p4290_p8), %v4719_v0 }
  0xa9 PF: > { %s13057_s18 = sld [smem:[#allocation16_spill]]  ;;  %v5101_v1 = vld [vmem:[%s5075_s11 + $0x8] sm:$0xff]  ;;  %v2173_v2 = vlaneseq  ;;  %v5105_v3 = vld [vmem:[%s5075_s11] sm:$0xff]  ;;  %v4720_v15 = vmov 1966171168   ;;  %v4721_v38 = vmov -1.0  }
  0xaa   : > { %v368_v4 = vunpack.c.0.s8 %v5101_v1  ;;  %v370_v5 = vunpack.c.1.s8 %v5101_v1  ;;  %v367_v7 = vunpack.c.0.s8 %v5105_v3  ;;  %v369_v10 = vunpack.c.1.s8 %v5105_v3 }
  0xab   : > { %v5109_v6 = vshrl.u32 %v2173_v2, 7  ;;  %v372_v11 = vunpack.c.2.s8 %v5101_v1  ;;  %v374_v12 = vunpack.c.3.s8 %v5101_v1  ;;  %v2171_v16 = vunpack.c.l.s4 %v4720_v15 }
  0xac   : > { %v5112_v8 = vand.u32 255, %v368_v4  ;;  %v5114_v9 = vand.u32 255, %v370_v5  ;;  %v5129_v19 = vand.u32 255, %v367_v7  ;;  %v5131_v20 = vand.u32 255, %v369_v10 }
  0xad   : > { %v5124_v17 = vsub.s32 0, %v5109_v6  ;;  %v5127_v18 = vsub.s32 1, %v5109_v6  ;;  %v4722_v41 = vmov -0.52507305   ;;  %v2172_v43 = vunpack.c.0.s8 %v2171_v16 }
  0xae   : > { %v496_v13 = vand.u32 15, %v5112_v8  ;;  %v498_v14 = vand.u32 15, %v5114_v9  ;;  %v560_v21 = vshra.s32 %v5112_v8, 4  ;;  %v4723_v45 = vmov -0.28444138  }
  0xaf   : > { %s4291_s9 = sshll.u32 %s13057_s18, 3  ;;  %v4724_v49 = vmov -0.091050036   ;;  %v4725_v52 = vmov 0.0795803   ;;  %p4298_p12 = scmp.ne.s32.totalorder %s13057_s18, 1 }
  0xb0   : > { %s688_s30 = sshra.s32 %s4291_s9, 3  ;;  %v696_v22 = vand.u32 1, %v496_v13  ;;  %v698_v23 = vand.u32 1, %v498_v14  ;;  %v824_v24 = vand.u32 2, %v496_v13  ;;  %v826_v25 = vand.u32 2, %v498_v14 }
  0xb1   : > { %s4308_s21 = sshll.u32 %s688_s30, 4  ;;  %v952_v26 = vand.u32 4, %v496_v13  ;;  %v954_v27 = vand.u32 4, %v498_v14  ;;  %v1080_v28 = vand.u32 8, %v496_v13  ;;  %v1082_v29 = vand.u32 8, %v498_v14 }
  0xb2   : > { %s5116_s10 = scalar_lea.vmem %s296_s23, %s4308_s21 [#allocation8]  ;;  %vm5134_vm0 = vcmp.ne.s32.totalorder %v696_v22, 0  ;;  %vm5138_vm1 = vcmp.ne.s32.totalorder %v698_v23, 0  ;;  %vm5142_vm2 = vcmp.ne.s32.totalorder %v824_v24, 0  ;;  %vm5146_vm3 = vcmp.ne.s32.totalorder %v826_v25, 0 }
  0xb3   : > { %vm5150_vm4 = vcmp.ne.s32.totalorder %v952_v26, 0  ;;  %vm5154_vm5 = vcmp.ne.s32.totalorder %v954_v27, 0  ;;  %vm5158_vm6 = vcmp.ne.s32.totalorder %v1080_v28, 0  ;;  %vm5162_vm7 = vcmp.ne.s32.totalorder %v1082_v29, 0  ;;  %v4460_v10 = vld [vmem:[%s5116_s10] ss:$8 sps:$4 sm:$0xff]  }
  0xb4   : > { %v1208_v39 = vsel %vm5134_vm0, -0.6961928, %v4721_v38  ;;  %v1210_v40 = vsel %vm5138_vm1, -0.6961928, %v4721_v38  ;;  %v1272_v42 = vsel %vm5134_vm0, -0.3949175, %v4722_v41  ;;  %v5242_v24 = vsub.s32 %v2172_v43, %v5109_v6 }
  0xb5   : > { %v1274_v44 = vsel %vm5138_vm1, -0.3949175, %v4722_v41  ;;  %v1336_v46 = vsel %vm5134_vm0, -0.18477343, %v4723_v45  ;;  %v1338_v47 = vsel %vm5138_vm1, -0.18477343, %v4723_v45  ;;  %v1720_v48 = vsel %vm5142_vm2, %v1272_v42, %v1208_v39 }
  0xb6   : > { %v1400_v50 = vsel %vm5134_vm0, 0.0, %v4724_v49  ;;  %v1402_v51 = vsel %vm5138_vm1, 0.0, %v4724_v49  ;;  %v1464_v53 = vsel %vm5134_vm0, 0.1609302, %v4725_v52  ;;  %v1466_v54 = vsel %vm5138_vm1, 0.1609302, %v4725_v52 }
  0xb7   : > { %v4726_v55 = vmov 0.24611239   ;;  %v4727_v58 = vmov 0.44070983   ;;  %v1722_v60 = vsel %vm5146_vm3, %v1274_v44, %v1210_v40  ;;  %v4728_v62 = vmov 0.72295684  }
  0xb8   : > { %v1528_v56 = vsel %vm5134_vm0, 0.33791524, %v4726_v55  ;;  %v1530_v57 = vsel %vm5138_vm1, 0.33791524, %v4726_v55  ;;  %v1592_v59 = vsel %vm5134_vm0, 0.562617, %v4727_v58  ;;  %v1784_v2 = vsel %vm5142_vm2, %v1400_v50, %v1336_v46 }
  0xb9   : > { %v1594_v61 = vsel %vm5138_vm1, 0.562617, %v4727_v58  ;;  %v1656_v63 = vsel %vm5134_vm0, 1.0, %v4728_v62  ;;  %v1658_v0 = vsel %vm5138_vm1, 1.0, %v4728_v62  ;;  %v1786_v4 = vsel %vm5146_vm3, %v1402_v51, %v1338_v47 }
  0xba   : > { %v1848_v5 = vsel %vm5142_vm2, %v1528_v56, %v1464_v53  ;;  %v1850_v7 = vsel %vm5146_vm3, %v1530_v57, %v1466_v54  ;;  %v1912_v8 = vsel %vm5142_vm2, %v1656_v63, %v1592_v59  ;;  %v1914_v13 = vsel %vm5146_vm3, %v1658_v0, %v1594_v61 }
  0xbb   : > { %v1976_v14 = vsel %vm5150_vm4, %v1784_v2, %v1720_v48  ;;  %v1978_v15 = vsel %vm5154_vm5, %v1786_v4, %v1722_v60  ;;  %v2040_v16 = vsel %vm5150_vm4, %v1912_v8, %v1848_v5  ;;  %v2042_v22 = vsel %vm5154_vm5, %v1914_v13, %v1850_v7 }
  0xbc   : > { %v2104_v23 = vsel %vm5158_vm6, %v2040_v16, %v1976_v14  ;;  %v495_v25 = vand.u32 15, %v5129_v19  ;;  %v2106_v26 = vsel %vm5162_vm7, %v2042_v22, %v1978_v15  ;;  %v497_v27 = vand.u32 15, %v5131_v20 }
  0xbd   : > { %v562_v28 = vshra.s32 %v5114_v9, 4  ;;  %v5249_v29 = vand.u32 15, %v560_v21  ;;  %v5252_v30 = vrot.slane %v4460_v10, %v5242_v24  ;;  %v5500_v61 = vand.u32 255, %v372_v11 }
  0xbe   : > { %v695_v31 = vand.u32 1, %v495_v25  ;;  %v823_v32 = vand.u32 2, %v495_v25  ;;  %v951_v33 = vand.u32 4, %v495_v25  ;;  %v697_v34 = vand.u32 1, %v497_v27 }
  0xbf   : > { %v825_v35 = vand.u32 2, %v497_v27  ;;  %v953_v36 = vand.u32 4, %v497_v27  ;;  %v1079_v39 = vand.u32 8, %v495_v25  ;;  %v2177_v37 = vcombine.high %v5252_v30, %v5252_v30 }
  0xc0   : > { %v5258_v40 = vrot.slane %v5252_v30, %v5242_v24  ;;  %vm5260_vm8 = vcmp.ne.s32.totalorder %v695_v31, 0  ;;  %vm5264_vm9 = vcmp.ne.s32.totalorder %v823_v32, 0  ;;  %vm5268_vm10 = vcmp.ne.s32.totalorder %v697_v34, 0 }
  0xc1   : > { %vm5272_vm11 = vcmp.ne.s32.totalorder %v825_v35, 0  ;;  %vm5276_vm12 = vcmp.ne.s32.totalorder %v951_v33, 0  ;;  %vm5280_vm13 = vcmp.ne.s32.totalorder %v953_v36, 0  ;;  %v1081_v48 = vand.u32 8, %v497_v27 }
  0xc2   : > { %v5286_v47 = vrot.slane %v5258_v40, %v5127_v18  ;;  %vm5288_vm14 = vcmp.ne.s32.totalorder %v1079_v39, 0  ;;  %v1207_v51 = vsel %vm5260_vm8, -0.6961928, %v4721_v38  ;;  %v1209_v53 = vsel %vm5268_vm10, -0.6961928, %v4721_v38 }
  0xc3   : > { %v1271_v54 = vsel %vm5260_vm8, -0.3949175, %v4722_v41  ;;  %v1273_v56 = vsel %vm5268_vm10, -0.3949175, %v4722_v41  ;;  %v5306_v57 = vrot.slane %v5258_v40, %v5124_v17  ;;  %vm5310_vm15 = vcmp.ne.s32.totalorder %v1081_v48, 0 }
  0xc4   : > { %v2235_v59 = vmul.f32 %v5286_v47, %v2104_v23  ;;  %v2237_v60 = vmul.f32 %v5286_v47, %v2106_v26  ;;  %v1335_v63 = vsel %vm5260_vm8, -0.18477343, %v4723_v45  ;;  %v1337_v0 = vsel %vm5268_vm10, -0.18477343, %v4723_v45 }
  0xc5   : > { %v1399_v2 = vsel %vm5260_vm8, 0.0, %v4724_v49  ;;  %v1401_v4 = vsel %vm5268_vm10, 0.0, %v4724_v49  ;;  %v1463_v5 = vsel %vm5260_vm8, 0.1609302, %v4725_v52  ;;  %v1465_v8 = vsel %vm5268_vm10, 0.1609302, %v4725_v52 }
  0xc6   : > { %v2299_v7 = vpack.c.bf16 %v2237_v60, %v2235_v59  ;;  %v1527_v10 = vsel %vm5260_vm8, 0.33791524, %v4726_v55  ;;  %v1529_v13 = vsel %vm5268_vm10, 0.33791524, %v4726_v55  ;;  %v1591_v14 = vsel %vm5260_vm8, 0.562617, %v4727_v58 }
  0xc7   : > { %v1593_v15 = vsel %vm5268_vm10, 0.562617, %v4727_v58  ;;  %v1655_v16 = vsel %vm5260_vm8, 1.0, %v4728_v62  ;;  %v1657_v22 = vsel %vm5268_vm10, 1.0, %v4728_v62  ;;  %v1719_v23 = vsel %vm5264_vm9, %v1271_v54, %v1207_v51 }
  0xc8   : > { %4022 = vmatprep.subr.bf16.mxu1 %v2299_v7  ;;  %v1721_v25 = vsel %vm5272_vm11, %v1273_v56, %v1209_v53  ;;  %v1783_v26 = vsel %vm5264_vm9, %v1399_v2, %v1335_v63  ;;  %v1785_v27 = vsel %vm5272_vm11, %v1401_v4, %v1337_v0  ;;  %v1847_v31 = vsel %vm5264_vm9, %v1527_v10, %v1463_v5 }
  0xc9   : > { %v1849_v32 = vsel %vm5272_vm11, %v1529_v13, %v1465_v8  ;;  %v1911_v33 = vsel %vm5264_vm9, %v1655_v16, %v1591_v14  ;;  %v1913_v34 = vsel %vm5272_vm11, %v1657_v22, %v1593_v15  ;;  %v1975_v35 = vsel %vm5276_vm12, %v1783_v26, %v1719_v23  ;;  %v4462_v22 = vld [vmem:[%s5116_s10 + $0x4] ss:$8 sps:$4 sm:$0xff]  }
  0xca   : > { %v1977_v36 = vsel %vm5280_vm13, %v1785_v27, %v1721_v25  ;;  %v2039_v39 = vsel %vm5276_vm12, %v1911_v33, %v1847_v31  ;;  %v2041_v9 = vsel %vm5280_vm13, %v1913_v34, %v1849_v32  ;;  %v626_v43 = vand.u32 15, %v562_v28 }
  0xcb   : > { %v2103_v42 = vsel %vm5288_vm14, %v2039_v39, %v1975_v35  ;;  %v2105_v21 = vsel %vm5310_vm15, %v2041_v9, %v1977_v36  ;;  %v2331_v48 = vand.u32 1, %v5249_v29  ;;  %v2459_v54 = vand.u32 2, %v5249_v29 }
  0xcc   : > { %v2234_v51 = vmul.f32 %v5306_v57, %v2103_v42  ;;  %v2236_v53 = vmul.f32 %v5306_v57, %v2105_v21  ;;  %v2587_v44 = vand.u32 4, %v5249_v29  ;;  %v2333_v56 = vand.u32 1, %v626_v43 }
  0xcd   : > { %vm5383_vm0 = vcmp.ne.s32.totalorder %v2331_v48, 0  ;;  %v2461_v50 = vand.u32 2, %v626_v43  ;;  %v2589_v59 = vand.u32 4, %v626_v43  ;;  %vm5387_vm1 = vcmp.ne.s32.totalorder %v2459_v54, 0 }
  0xce   : > { %v2298_v60 = vpack.c.bf16 %v2236_v53, %v2234_v51  ;;  %vm5391_vm2 = vcmp.ne.s32.totalorder %v2587_v44, 0  ;;  %v2715_v63 = vand.u32 8, %v5249_v29  ;;  %vm5396_vm3 = vcmp.ne.s32.totalorder %v2333_v56, 0 }
  0xcf   : > { %vm5400_vm4 = vcmp.ne.s32.totalorder %v2461_v50, 0  ;;  %vm5404_vm5 = vcmp.ne.s32.totalorder %v2589_v59, 0  ;;  %v2717_v5 = vand.u32 8, %v626_v43  ;;  %v2843_v29 = vsel %vm5383_vm0, -0.6961928, %v4721_v38 }
  0xd0   : > { %4023 = vmatpush1.bf16.msra.mxu1 %v2298_v60  ;;  %vm5408_vm6 = vcmp.ne.s32.totalorder %v2715_v63, 0  ;;  %v2845_v8 = vsel %vm5396_vm3, -0.6961928, %v4721_v38  ;;  %v3035_v10 = vsel %vm5383_vm0, 0.0, %v4724_v49  ;;  %v2907_v14 = vsel %vm5383_vm0, -0.3949175, %v4722_v41 }
  0xd1   : > { %vm5421_vm7 = vcmp.ne.s32.totalorder %v2717_v5, 0  ;;  %v2909_v15 = vsel %vm5396_vm3, -0.3949175, %v4722_v41  ;;  %v3037_v16 = vsel %vm5396_vm3, 0.0, %v4724_v49  ;;  %v2971_v23 = vsel %vm5383_vm0, -0.18477343, %v4723_v45 }
  0xd2   : > { %v2973_v25 = vsel %vm5396_vm3, -0.18477343, %v4723_v45  ;;  %v3099_v26 = vsel %vm5383_vm0, 0.1609302, %v4725_v52  ;;  %v3355_v27 = vsel %vm5387_vm1, %v2907_v14, %v2843_v29  ;;  %v3101_v31 = vsel %vm5396_vm3, 0.1609302, %v4725_v52 }
  0xd3   : > { %v3163_v32 = vsel %vm5383_vm0, 0.33791524, %v4726_v55  ;;  %v3165_v33 = vsel %vm5396_vm3, 0.33791524, %v4726_v55  ;;  %v3357_v34 = vsel %vm5400_vm4, %v2909_v15, %v2845_v8  ;;  %v3227_v35 = vsel %vm5383_vm0, 0.562617, %v4727_v58 }
  0xd4   : > { %v3229_v36 = vsel %vm5396_vm3, 0.562617, %v4727_v58  ;;  %v3291_v39 = vsel %vm5383_vm0, 1.0, %v4728_v62  ;;  %v3293_v9 = vsel %vm5396_vm3, 1.0, %v4728_v62  ;;  %v3419_v42 = vsel %vm5387_vm1, %v3035_v10, %v2971_v23 }
  0xd5   : > { %v3421_v21 = vsel %vm5400_vm4, %v3037_v16, %v2973_v25  ;;  %v3483_v43 = vsel %vm5387_vm1, %v3163_v32, %v3099_v26  ;;  %v3485_v48 = vsel %vm5400_vm4, %v3165_v33, %v3101_v31  ;;  %v3547_v51 = vsel %vm5387_vm1, %v3291_v39, %v3227_v35 }
  0xd6   : > { %v3549_v53 = vsel %vm5400_vm4, %v3293_v9, %v3229_v36  ;;  %v3611_v54 = vsel %vm5391_vm2, %v3419_v42, %v3355_v27  ;;  %v3613_v44 = vsel %vm5404_vm5, %v3421_v21, %v3357_v34  ;;  %v3675_v56 = vsel %vm5391_vm2, %v3547_v51, %v3483_v43 }
  0xd7   : > { %v3677_v46 = vsel %vm5404_vm5, %v3549_v53, %v3485_v48  ;;  %v5490_v50 = vrot.slane %v4462_v22, %v5242_v24  ;;  %v559_v59 = vshra.s32 %v5129_v19, 4  ;;  %v3739_v60 = vsel %vm5408_vm6, %v3675_v56, %v3611_v54 }
  0xd8   : > { %v3741_v28 = vsel %vm5421_vm7, %v3677_v46, %v3613_v44  ;;  %v561_v63 = vshra.s32 %v5131_v20, 4  ;;  %v5510_v4 = vand.u32 255, %v374_v12  ;;  %v5513_v7 = vand.u32 15, %v5500_v61 }
  0xd9   : > { %v3810_v0 = vcombine.high %v5490_v50, %v5490_v50  ;;  %v5506_v2 = vrot.slane %v5490_v50, %v5242_v24  ;;  %v623_v19 = vand.u32 15, %v559_v59  ;;  %v371_v20 = vunpack.c.2.s8 %v5105_v3 }
  0xda   : > { %v625_v5 = vand.u32 15, %v561_v63  ;;  %v373_v11 = vunpack.c.3.s8 %v5105_v3  ;;  %v502_v25 = vand.u32 15, %v5510_v4  ;;  %v700_v27 = vand.u32 1, %v5513_v7 }
  0xdb   : > { %v5519_v29 = vrot.slane %v5506_v2, %v5127_v18  ;;  %v2330_v8 = vand.u32 1, %v623_v19  ;;  %v2458_v10 = vand.u32 2, %v623_v19  ;;  %v2586_v13 = vand.u32 4, %v623_v19 }
  0xdc   : > { %v2332_v14 = vand.u32 1, %v625_v5  ;;  %v2460_v15 = vand.u32 2, %v625_v5  ;;  %v2588_v1 = vand.u32 4, %v625_v5  ;;  %v2714_v12 = vand.u32 8, %v623_v19 }
  0xdd   : > { %v3868_v16 = vmul.f32 %v5519_v29, %v3739_v60  ;;  %v3870_v22 = vmul.f32 %v5519_v29, %v3741_v28  ;;  %vm5523_vm8 = vcmp.ne.s32.totalorder %v2330_v8, 0  ;;  %vm5527_vm9 = vcmp.ne.s32.totalorder %v2458_v10, 0 }
  0xde   : > { %vm5531_vm10 = vcmp.ne.s32.totalorder %v2332_v14, 0  ;;  %vm5535_vm11 = vcmp.ne.s32.totalorder %v2460_v15, 0  ;;  %vm5539_vm12 = vcmp.ne.s32.totalorder %v2586_v13, 0  ;;  %vm5543_vm13 = vcmp.ne.s32.totalorder %v2588_v1, 0 }
  0xdf   : > { %v3932_v33 = vpack.c.bf16 %v3870_v22, %v3868_v16  ;;  %v2716_v34 = vand.u32 8, %v625_v5  ;;  %vm5547_vm14 = vcmp.ne.s32.totalorder %v2714_v12, 0  ;;  %v2842_v36 = vsel %vm5523_vm8, -0.6961928, %v4721_v38 }
  0xe0   : > { %v2844_v39 = vsel %vm5531_vm10, -0.6961928, %v4721_v38  ;;  %v2906_v9 = vsel %vm5523_vm8, -0.3949175, %v4722_v41  ;;  %v2908_v42 = vsel %vm5531_vm10, -0.3949175, %v4722_v41  ;;  %v5565_v21 = vrot.slane %v5506_v2, %v5124_v17 }
  0xe1   : > { %3974 = vmatprep.subr.bf16.mxu0 %v3932_v33  ;;  %vm5567_vm15 = vcmp.ne.s32.totalorder %v2716_v34, 0  ;;  %v2970_v48 = vsel %vm5523_vm8, -0.18477343, %v4723_v45  ;;  %v2972_v51 = vsel %vm5531_vm10, -0.18477343, %v4723_v45  ;;  %v3034_v53 = vsel %vm5523_vm8, 0.0, %v4724_v49 }
  0xe2   : > { %v3036_v54 = vsel %vm5531_vm10, 0.0, %v4724_v49  ;;  %v3098_v44 = vsel %vm5523_vm8, 0.1609302, %v4725_v52  ;;  %v3100_v56 = vsel %vm5531_vm10, 0.1609302, %v4725_v52  ;;  %v3290_v46 = vsel %vm5523_vm8, 1.0, %v4728_v62 }
  0xe3   : > { %v3162_v59 = vsel %vm5523_vm8, 0.33791524, %v4726_v55  ;;  %v3164_v60 = vsel %vm5531_vm10, 0.33791524, %v4726_v55  ;;  %v3226_v28 = vsel %vm5523_vm8, 0.562617, %v4727_v58  ;;  %v3354_v63 = vsel %vm5527_vm9, %v2906_v9, %v2842_v36 }
  0xe4   : > { %v3228_v19 = vsel %vm5531_vm10, 0.562617, %v4727_v58  ;;  %v3292_v5 = vsel %vm5531_vm10, 1.0, %v4728_v62  ;;  %v3356_v8 = vsel %vm5535_vm11, %v2908_v42, %v2844_v39  ;;  %v3418_v10 = vsel %vm5527_vm9, %v3034_v53, %v2970_v48 }
  0xe5   : > { %v3420_v13 = vsel %vm5535_vm11, %v3036_v54, %v2972_v51  ;;  %v3482_v14 = vsel %vm5527_vm9, %v3162_v59, %v3098_v44  ;;  %v3484_v15 = vsel %vm5535_vm11, %v3164_v60, %v3100_v56  ;;  %v3546_v1 = vsel %vm5527_vm9, %v3290_v46, %v3226_v28 }
  0xe6   : > { %v3548_v12 = vsel %vm5535_vm11, %v3292_v5, %v3228_v19  ;;  %v3610_v16 = vsel %vm5539_vm12, %v3418_v10, %v3354_v63  ;;  %v3612_v22 = vsel %vm5543_vm13, %v3420_v13, %v3356_v8  ;;  %v3674_v23 = vsel %vm5539_vm12, %v3546_v1, %v3482_v14 }
  0xe7   : > { %v3676_v26 = vsel %vm5543_vm13, %v3548_v12, %v3484_v15  ;;  %v3738_v33 = vsel %vm5547_vm14, %v3674_v23, %v3610_v16  ;;  %v828_v39 = vand.u32 2, %v5513_v7  ;;  %v956_v31 = vand.u32 4, %v5513_v7 }
  0xe8   : > { %v3740_v34 = vsel %vm5567_vm15, %v3676_v26, %v3612_v22  ;;  %v3867_v36 = vmul.f32 %v5565_v21, %v3738_v33  ;;  %v702_v32 = vand.u32 1, %v502_v25  ;;  %vm5641_vm0 = vcmp.ne.s32.totalorder %v700_v27, 0 }
  0xe9   : > { %v3869_v9 = vmul.f32 %v5565_v21, %v3740_v34  ;;  %v830_v35 = vand.u32 2, %v502_v25  ;;  %vm5645_vm1 = vcmp.ne.s32.totalorder %v828_v39, 0  ;;  %v958_v43 = vand.u32 4, %v502_v25 }
  0xea   : > { %vm5649_vm2 = vcmp.ne.s32.totalorder %v956_v31, 0  ;;  %v1084_v53 = vand.u32 8, %v5513_v7  ;;  %vm5654_vm3 = vcmp.ne.s32.totalorder %v702_v32, 0  ;;  %v1086_v46 = vand.u32 8, %v502_v25 }
  0xeb   : > { %v3931_v54 = vpack.c.bf16 %v3869_v9, %v3867_v36  ;;  %vm5658_vm4 = vcmp.ne.s32.totalorder %v830_v35, 0  ;;  %vm5662_vm5 = vcmp.ne.s32.totalorder %v958_v43, 0  ;;  %v1212_v7 = vsel %vm5641_vm0, -0.6961928, %v4721_v38 }
  0xec   : > { %vm5666_vm6 = vcmp.ne.s32.totalorder %v1084_v53, 0  ;;  %v1214_v28 = vsel %vm5654_vm3, -0.6961928, %v4721_v38  ;;  %vm5676_vm7 = vcmp.ne.s32.totalorder %v1086_v46, 0  ;;  %v1276_v19 = vsel %vm5641_vm0, -0.3949175, %v4722_v41 }
  0xed   : > { %3975 = vmatpush1.bf16.msra.mxu0 %v3931_v54  ;;  %v1278_v5 = vsel %vm5654_vm3, -0.3949175, %v4722_v41  ;;  %v1404_v8 = vsel %vm5641_vm0, 0.0, %v4724_v49  ;;  %v1340_v10 = vsel %vm5641_vm0, -0.18477343, %v4723_v45  ;;  %v1406_v14 = vsel %vm5654_vm3, 0.0, %v4724_v49 }
  0xee   : > { %v1342_v13 = vsel %vm5654_vm3, -0.18477343, %v4723_v45  ;;  %v1660_v15 = vsel %vm5641_vm0, 1.0, %v4728_v62  ;;  %v1468_v1 = vsel %vm5641_vm0, 0.1609302, %v4725_v52  ;;  %v1724_v22 = vsel %vm5645_vm1, %v1276_v19, %v1212_v7 }
  0xef   : > { %v1470_v12 = vsel %vm5654_vm3, 0.1609302, %v4725_v52  ;;  %v1532_v16 = vsel %vm5641_vm0, 0.33791524, %v4726_v55  ;;  %v1534_v23 = vsel %vm5654_vm3, 0.33791524, %v4726_v55  ;;  %v1726_v25 = vsel %vm5658_vm4, %v1278_v5, %v1214_v28 }
  0xf0   : > { %v1596_v26 = vsel %vm5641_vm0, 0.562617, %v4727_v58  ;;  %v1598_v33 = vsel %vm5654_vm3, 0.562617, %v4727_v58  ;;  %v1662_v27 = vsel %vm5654_vm3, 1.0, %v4728_v62  ;;  %v1788_v34 = vsel %vm5645_vm1, %v1404_v8, %v1340_v10 }
  0xf1   : > { %v1790_v36 = vsel %vm5658_vm4, %v1406_v14, %v1342_v13  ;;  %v1852_v39 = vsel %vm5645_vm1, %v1532_v16, %v1468_v1  ;;  %v1854_v31 = vsel %vm5658_vm4, %v1534_v23, %v1470_v12  ;;  %v1916_v9 = vsel %vm5645_vm1, %v1660_v15, %v1596_v26  ;;  %v5781_v16 = vld [vmem:[%s5075_s11 + $0x18] sm:$0xff] }
  0xf2   : > { %v1918_v32 = vsel %vm5658_vm4, %v1662_v27, %v1598_v33  ;;  %v1980_v42 = vsel %vm5649_vm2, %v1788_v34, %v1724_v22  ;;  %v1982_v35 = vsel %vm5662_vm5, %v1790_v36, %v1726_v25  ;;  %v2044_v43 = vsel %vm5649_vm2, %v1916_v9, %v1852_v39 }
  0xf3   : > { %v2046_v53 = vsel %vm5662_vm5, %v1918_v32, %v1854_v31  ;;  %v5748_v54 = vand.u32 255, %v371_v20  ;;  %v2108_v48 = vsel %vm5666_vm6, %v2044_v43, %v1980_v42  ;;  %v5756_v56 = vand.u32 255, %v373_v11 }
  0xf4   : > { %v2110_v44 = vsel %vm5676_vm7, %v2046_v53, %v1982_v35  ;;  %v564_v51 = vshra.s32 %v5500_v61, 4  ;;  %v2239_v46 = vmul.f32 %v5286_v47, %v2108_v48  ;;  %v566_v20 = vshra.s32 %v5510_v4, 4 }
  0xf5   : > { %v2241_v59 = vmul.f32 %v5286_v47, %v2110_v44  ;;  %v499_v7 = vand.u32 15, %v5748_v54  ;;  %v501_v60 = vand.u32 15, %v5756_v56  ;;  %v563_v63 = vshra.s32 %v5748_v54, 4 }
  0xf6   : > { %v5764_v28 = vand.u32 15, %v564_v51  ;;  %v565_v3 = vshra.s32 %v5756_v56, 4  ;;  %v376_v32 = vunpack.c.0.s8 %v5781_v16  ;;  %v6006_v56 = vld [vmem:[%s5075_s11 + $0x10] sm:$0xff] }
  0xf7   : > { %v2301_v11 = vpack.c.bf16 %v2241_v59, %v2239_v46  ;;  %v699_v19 = vand.u32 1, %v499_v7  ;;  %v827_v61 = vand.u32 2, %v499_v7  ;;  %v955_v5 = vand.u32 4, %v499_v7 }
  0xf8   : > { %v701_v8 = vand.u32 1, %v501_v60  ;;  %v829_v10 = vand.u32 2, %v501_v60  ;;  %v957_v13 = vand.u32 4, %v501_v60  ;;  %v1083_v14 = vand.u32 8, %v499_v7 }
  0xf9   : > { %4024 = vmatprep.subr.bf16.mxu1 %v2301_v11  ;;  %vm5768_vm8 = vcmp.ne.s32.totalorder %v699_v19, 0  ;;  %vm5772_vm9 = vcmp.ne.s32.totalorder %v827_v61, 0  ;;  %vm5776_vm10 = vcmp.ne.s32.totalorder %v955_v5, 0  ;;  %v1085_v12 = vand.u32 8, %v501_v60 }
  0xfa   : > { %vm5783_vm11 = vcmp.ne.s32.totalorder %v701_v8, 0  ;;  %vm5787_vm12 = vcmp.ne.s32.totalorder %v829_v10, 0  ;;  %vm5791_vm13 = vcmp.ne.s32.totalorder %v957_v13, 0  ;;  %vm5795_vm14 = vcmp.ne.s32.totalorder %v1083_v14, 0 }
  0xfb   : > { %vm5799_vm15 = vcmp.ne.s32.totalorder %v1085_v12, 0  ;;  %v1211_v27 = vsel %vm5768_vm8, -0.6961928, %v4721_v38  ;;  %v1213_v34 = vsel %vm5783_vm11, -0.6961928, %v4721_v38  ;;  %v1403_v36 = vsel %vm5768_vm8, 0.0, %v4724_v49 }
  0xfc   : > { %v1275_v39 = vsel %vm5768_vm8, -0.3949175, %v4722_v41  ;;  %v1277_v31 = vsel %vm5783_vm11, -0.3949175, %v4722_v41  ;;  %v1339_v9 = vsel %vm5768_vm8, -0.18477343, %v4723_v45 }
  0xfd   : > { %v1341_v42 = vsel %vm5783_vm11, -0.18477343, %v4723_v45  ;;  %v1405_v35 = vsel %vm5783_vm11, 0.0, %v4724_v49  ;;  %v1467_v43 = vsel %vm5768_vm8, 0.1609302, %v4725_v52  ;;  %v1659_v53 = vsel %vm5768_vm8, 1.0, %v4728_v62 }
  0xfe   : > { %v1469_v48 = vsel %vm5783_vm11, 0.1609302, %v4725_v52  ;;  %v1531_v44 = vsel %vm5768_vm8, 0.33791524, %v4726_v55  ;;  %v1533_v51 = vsel %vm5783_vm11, 0.33791524, %v4726_v55  ;;  %v1723_v46 = vsel %vm5772_vm9, %v1275_v39, %v1211_v27 }
  0xff   : > { %v1595_v59 = vsel %vm5768_vm8, 0.562617, %v4727_v58  ;;  %v1597_v7 = vsel %vm5783_vm11, 0.562617, %v4727_v58  ;;  %v1661_v60 = vsel %vm5783_vm11, 1.0, %v4728_v62  ;;  %v1725_v11 = vsel %vm5787_vm12, %v1277_v31, %v1213_v34 }
 0x100   : > { %v1787_v19 = vsel %vm5772_vm9, %v1403_v36, %v1339_v9  ;;  %v1789_v61 = vsel %vm5787_vm12, %v1405_v35, %v1341_v42  ;;  %v1851_v5 = vsel %vm5772_vm9, %v1531_v44, %v1467_v43  ;;  %v1853_v8 = vsel %vm5787_vm12, %v1533_v51, %v1469_v48 }
 0x101   : > { %v1915_v10 = vsel %vm5772_vm9, %v1659_v53, %v1595_v59  ;;  %v1917_v13 = vsel %vm5787_vm12, %v1661_v60, %v1597_v7  ;;  %v1979_v14 = vsel %vm5776_vm10, %v1787_v19, %v1723_v46  ;;  %v1981_v4 = vsel %vm5791_vm13, %v1789_v61, %v1725_v11 }
 0x102   : > { %v2043_v12 = vsel %vm5776_vm10, %v1915_v10, %v1851_v5  ;;  %v2045_v22 = vsel %vm5791_vm13, %v1917_v13, %v1853_v8  ;;  %v630_v27 = vand.u32 15, %v566_v20  ;;  %v2335_v34 = vand.u32 1, %v5764_v28 }
 0x103   : > { %v2107_v15 = vsel %vm5795_vm14, %v2043_v12, %v1979_v14  ;;  %v2109_v23 = vsel %vm5799_vm15, %v2045_v22, %v1981_v4  ;;  %v2463_v36 = vand.u32 2, %v5764_v28  ;;  %v2591_v39 = vand.u32 4, %v5764_v28 }
 0x104   : > { %v2238_v31 = vmul.f32 %v5306_v57, %v2107_v15  ;;  %v2240_v1 = vmul.f32 %v5306_v57, %v2109_v23  ;;  %v2337_v9 = vand.u32 1, %v630_v27  ;;  %vm5885_vm0 = vcmp.ne.s32.totalorder %v2335_v34, 0 }
 0x105   : > { %v2465_v20 = vand.u32 2, %v630_v27  ;;  %vm5889_vm1 = vcmp.ne.s32.totalorder %v2463_v36, 0  ;;  %v2593_v25 = vand.u32 4, %v630_v27  ;;  %vm5893_vm2 = vcmp.ne.s32.totalorder %v2591_v39, 0 }
 0x106   : > { %v2300_v35 = vpack.c.bf16 %v2240_v1, %v2238_v31  ;;  %vm5897_vm3 = vcmp.ne.s32.totalorder %v2337_v9, 0  ;;  %v2719_v53 = vand.u32 8, %v5764_v28  ;;  %v2721_v48 = vand.u32 8, %v630_v27 }
 0x107   : > { %vm5902_vm4 = vcmp.ne.s32.totalorder %v2465_v20, 0  ;;  %vm5906_vm5 = vcmp.ne.s32.totalorder %v2593_v25, 0  ;;  %v2847_v46 = vsel %vm5885_vm0, -0.6961928, %v4721_v38  ;;  %v2849_v59 = vsel %vm5897_vm3, -0.6961928, %v4721_v38 }
 0x108   : > { %4025 = vmatpush1.bf16.msra.mxu1 %v2300_v35  ;;  %vm5916_vm6 = vcmp.ne.s32.totalorder %v2719_v53, 0  ;;  %vm5920_vm7 = vcmp.ne.s32.totalorder %v2721_v48, 0  ;;  %v2911_v60 = vsel %vm5885_vm0, -0.3949175, %v4722_v41  ;;  %v2913_v11 = vsel %vm5897_vm3, -0.3949175, %v4722_v41 }
 0x109   : > { %v2975_v19 = vsel %vm5885_vm0, -0.18477343, %v4723_v45  ;;  %v2977_v61 = vsel %vm5897_vm3, -0.18477343, %v4723_v45  ;;  %v3039_v5 = vsel %vm5885_vm0, 0.0, %v4724_v49  ;;  %v3041_v8 = vsel %vm5897_vm3, 0.0, %v4724_v49 }
 0x10a   : > { %v3103_v10 = vsel %vm5885_vm0, 0.1609302, %v4725_v52  ;;  %v3105_v13 = vsel %vm5897_vm3, 0.1609302, %v4725_v52  ;;  %v3167_v14 = vsel %vm5885_vm0, 0.33791524, %v4726_v55  ;;  %v3359_v4 = vsel %vm5889_vm1, %v2911_v60, %v2847_v46 }
 0x10b   : > { %v3169_v12 = vsel %vm5897_vm3, 0.33791524, %v4726_v55  ;;  %v3231_v22 = vsel %vm5885_vm0, 0.562617, %v4727_v58  ;;  %v3233_v27 = vsel %vm5897_vm3, 0.562617, %v4727_v58  ;;  %v3361_v34 = vsel %vm5902_vm4, %v2913_v11, %v2849_v59 }
 0x10c   : > { %v3295_v15 = vsel %vm5885_vm0, 1.0, %v4728_v62  ;;  %v3297_v23 = vsel %vm5897_vm3, 1.0, %v4728_v62  ;;  %v3423_v36 = vsel %vm5889_vm1, %v3039_v5, %v2975_v19  ;;  %v3425_v39 = vsel %vm5902_vm4, %v3041_v8, %v2977_v61 }
 0x10d   : > { %v3487_v31 = vsel %vm5889_vm1, %v3167_v14, %v3103_v10  ;;  %v3489_v1 = vsel %vm5902_vm4, %v3169_v12, %v3105_v13  ;;  %v3551_v9 = vsel %vm5889_vm1, %v3295_v15, %v3231_v22  ;;  %v3553_v26 = vsel %vm5902_vm4, %v3297_v23, %v3233_v27 }
 0x10e   : > { %v3615_v20 = vsel %vm5893_vm2, %v3423_v36, %v3359_v4  ;;  %v3617_v25 = vsel %vm5906_vm5, %v3425_v39, %v3361_v34  ;;  %v3679_v35 = vsel %vm5893_vm2, %v3551_v9, %v3487_v31  ;;  %v3681_v43 = vsel %vm5906_vm5, %v3553_v26, %v3489_v1 }
 0x10f   : > { %v3743_v53 = vsel %vm5916_vm6, %v3679_v35, %v3615_v20  ;;  %v3745_v33 = vsel %vm5920_vm7, %v3681_v43, %v3617_v25  ;;  %v627_v48 = vand.u32 15, %v563_v63  ;;  %v629_v44 = vand.u32 15, %v565_v3 }
 0x110   : > { %v3872_v46 = vmul.f32 %v5519_v29, %v3743_v53  ;;  %v3874_v42 = vmul.f32 %v5519_v29, %v3745_v33  ;;  %v378_v51 = vunpack.c.1.s8 %v5781_v16  ;;  %v6003_v59 = vand.u32 255, %v376_v32 }
 0x111   : > { %v2334_v28 = vand.u32 1, %v627_v48  ;;  %v2336_v7 = vand.u32 1, %v629_v44  ;;  %v2462_v60 = vand.u32 2, %v627_v48  ;;  %v2464_v11 = vand.u32 2, %v629_v44 }
 0x112   : > { %v3934_v19 = vpack.c.bf16 %v3874_v42, %v3872_v46  ;;  %v2590_v54 = vand.u32 4, %v627_v48  ;;  %v2592_v63 = vand.u32 4, %v629_v44  ;;  %v2718_v61 = vand.u32 8, %v627_v48 }
 0x113   : > { %vm6008_vm8 = vcmp.ne.s32.totalorder %v2334_v28, 0  ;;  %vm6012_vm9 = vcmp.ne.s32.totalorder %v2336_v7, 0  ;;  %vm6016_vm10 = vcmp.ne.s32.totalorder %v2462_v60, 0  ;;  %vm6020_vm11 = vcmp.ne.s32.totalorder %v2464_v11, 0 }
 0x114   : > { %3976 = vmatprep.subr.bf16.mxu0 %v3934_v19  ;;  %vm6024_vm12 = vcmp.ne.s32.totalorder %v2590_v54, 0  ;;  %vm6028_vm13 = vcmp.ne.s32.totalorder %v2592_v63, 0  ;;  %v2720_v14 = vand.u32 8, %v629_v44  ;;  %vm6032_vm14 = vcmp.ne.s32.totalorder %v2718_v61, 0 }
 0x115   : > { %v2846_v12 = vsel %vm6008_vm8, -0.6961928, %v4721_v38  ;;  %v2848_v22 = vsel %vm6012_vm9, -0.6961928, %v4721_v38  ;;  %v2910_v27 = vsel %vm6008_vm8, -0.3949175, %v4722_v41  ;;  %v375_v34 = vunpack.c.0.s8 %v6006_v56 }
 0x116   : > { %vm6046_vm15 = vcmp.ne.s32.totalorder %v2720_v14, 0  ;;  %v2912_v23 = vsel %vm6012_vm9, -0.3949175, %v4722_v41  ;;  %v2974_v36 = vsel %vm6008_vm8, -0.18477343, %v4723_v45  ;;  %v3038_v39 = vsel %vm6008_vm8, 0.0, %v4724_v49 }
 0x117   : > { %v2976_v31 = vsel %vm6012_vm9, -0.18477343, %v4723_v45  ;;  %v3040_v1 = vsel %vm6012_vm9, 0.0, %v4724_v49  ;;  %v3102_v9 = vsel %vm6008_vm8, 0.1609302, %v4725_v52  ;;  %v3294_v26 = vsel %vm6008_vm8, 1.0, %v4728_v62 }
 0x118   : > { %v3104_v20 = vsel %vm6012_vm9, 0.1609302, %v4725_v52  ;;  %v3166_v25 = vsel %vm6008_vm8, 0.33791524, %v4726_v55  ;;  %v3168_v35 = vsel %vm6012_vm9, 0.33791524, %v4726_v55  ;;  %v3358_v43 = vsel %vm6016_vm10, %v2910_v27, %v2846_v12 }
 0x119   : > { %v3230_v53 = vsel %vm6008_vm8, 0.562617, %v4727_v58  ;;  %v3232_v33 = vsel %vm6012_vm9, 0.562617, %v4727_v58  ;;  %v3296_v48 = vsel %vm6012_vm9, 1.0, %v4728_v62  ;;  %v3360_v44 = vsel %vm6020_vm11, %v2912_v23, %v2848_v22 }
 0x11a   : > { %v3422_v46 = vsel %vm6016_vm10, %v3038_v39, %v2974_v36  ;;  %v3424_v42 = vsel %vm6020_vm11, %v3040_v1, %v2976_v31  ;;  %v3486_v28 = vsel %vm6016_vm10, %v3166_v25, %v3102_v9  ;;  %v3488_v7 = vsel %vm6020_vm11, %v3168_v35, %v3104_v20 }
 0x11b   : > { %v3550_v60 = vsel %vm6016_vm10, %v3294_v26, %v3230_v53  ;;  %v3552_v11 = vsel %vm6020_vm11, %v3296_v48, %v3232_v33  ;;  %v3614_v19 = vsel %vm6024_vm12, %v3422_v46, %v3358_v43  ;;  %v3616_v54 = vsel %vm6028_vm13, %v3424_v42, %v3360_v44 }
 0x11c   : > { %v3678_v63 = vsel %vm6024_vm12, %v3550_v60, %v3486_v28  ;;  %v3680_v61 = vsel %vm6028_vm13, %v3552_v11, %v3488_v7  ;;  %v6113_v3 = vand.u32 255, %v378_v51  ;;  %v504_v5 = vand.u32 15, %v6003_v59 }
 0x11d   : > { %v3742_v32 = vsel %vm6032_vm14, %v3678_v63, %v3614_v19  ;;  %v3744_v8 = vsel %vm6046_vm15, %v3680_v61, %v3616_v54  ;;  %v377_v14 = vunpack.c.1.s8 %v6006_v56  ;;  %v6121_v12 = vand.u32 255, %v375_v34 }
 0x11e   : > { %v3871_v10 = vmul.f32 %v5565_v21, %v3742_v32  ;;  %v3873_v22 = vmul.f32 %v5565_v21, %v3744_v8  ;;  %v506_v13 = vand.u32 15, %v6113_v3  ;;  %v704_v51 = vand.u32 1, %v504_v5 }
 0x11f   : > { %v832_v27 = vand.u32 2, %v504_v5  ;;  %v960_v23 = vand.u32 4, %v504_v5  ;;  %v1088_v36 = vand.u32 8, %v504_v5  ;;  %v6126_v39 = vand.u32 255, %v377_v14 }
 0x120   : > { %v3933_v4 = vpack.c.bf16 %v3873_v22, %v3871_v10  ;;  %v706_v31 = vand.u32 1, %v506_v13  ;;  %vm6128_vm0 = vcmp.ne.s32.totalorder %v704_v51, 0  ;;  %v834_v34 = vand.u32 2, %v506_v13 }
 0x121   : > { %vm6132_vm1 = vcmp.ne.s32.totalorder %v832_v27, 0  ;;  %v962_v9 = vand.u32 4, %v506_v13  ;;  %vm6136_vm2 = vcmp.ne.s32.totalorder %v960_v23, 0  ;;  %v1090_v20 = vand.u32 8, %v506_v13 }
 0x122   : > { %3977 = vmatpush1.bf16.msra.mxu0 %v3933_v4  ;;  %vm6140_vm3 = vcmp.ne.s32.totalorder %v706_v31, 0  ;;  %vm6144_vm4 = vcmp.ne.s32.totalorder %v834_v34, 0  ;;  %vm6148_vm5 = vcmp.ne.s32.totalorder %v1088_v36, 0  ;;  %v1216_v53 = vsel %vm6128_vm0, -0.6961928, %v4721_v38 }
 0x123   : > { %vm6155_vm6 = vcmp.ne.s32.totalorder %v962_v9, 0  ;;  %vm6159_vm7 = vcmp.ne.s32.totalorder %v1090_v20, 0  ;;  %v1218_v44 = vsel %vm6140_vm3, -0.6961928, %v4721_v38  ;;  %v1280_v46 = vsel %vm6128_vm0, -0.3949175, %v4722_v41 }
 0x124   : > { %v1282_v42 = vsel %vm6140_vm3, -0.3949175, %v4722_v41  ;;  %v1344_v28 = vsel %vm6128_vm0, -0.18477343, %v4723_v45  ;;  %v1346_v7 = vsel %vm6140_vm3, -0.18477343, %v4723_v45  ;;  %v1728_v60 = vsel %vm6132_vm1, %v1280_v46, %v1216_v53 }
 0x125   : > { %v1408_v11 = vsel %vm6128_vm0, 0.0, %v4724_v49  ;;  %v1410_v19 = vsel %vm6140_vm3, 0.0, %v4724_v49  ;;  %v1472_v54 = vsel %vm6128_vm0, 0.1609302, %v4725_v52  ;;  %v1474_v63 = vsel %vm6140_vm3, 0.1609302, %v4725_v52 }
 0x126   : > { %v1536_v61 = vsel %vm6128_vm0, 0.33791524, %v4726_v55  ;;  %v1538_v5 = vsel %vm6140_vm3, 0.33791524, %v4726_v55  ;;  %v1600_v32 = vsel %vm6128_vm0, 0.562617, %v4727_v58  ;;  %v1730_v8 = vsel %vm6144_vm4, %v1282_v42, %v1218_v44 }
 0x127   : > { %v1602_v14 = vsel %vm6140_vm3, 0.562617, %v4727_v58  ;;  %v1664_v10 = vsel %vm6128_vm0, 1.0, %v4728_v62  ;;  %v1666_v22 = vsel %vm6140_vm3, 1.0, %v4728_v62  ;;  %v1792_v13 = vsel %vm6132_vm1, %v1408_v11, %v1344_v28 }
 0x128   : > { %v1794_v51 = vsel %vm6144_vm4, %v1410_v19, %v1346_v7  ;;  %v1856_v27 = vsel %vm6132_vm1, %v1536_v61, %v1472_v54  ;;  %v1858_v23 = vsel %vm6144_vm4, %v1538_v5, %v1474_v63  ;;  %v1920_v36 = vsel %vm6132_vm1, %v1664_v10, %v1600_v32 }
 0x129   : > { %v1922_v4 = vsel %vm6144_vm4, %v1666_v22, %v1602_v14  ;;  %v1984_v31 = vsel %vm6136_vm2, %v1792_v13, %v1728_v60  ;;  %v1986_v15 = vsel %vm6155_vm6, %v1794_v51, %v1730_v8  ;;  %v2048_v34 = vsel %vm6136_vm2, %v1920_v36, %v1856_v27 }
 0x12a   : > { %v2050_v9 = vsel %vm6155_vm6, %v1922_v4, %v1858_v23  ;;  %v2112_v20 = vsel %vm6148_vm5, %v2048_v34, %v1984_v31  ;;  %v503_v1 = vand.u32 15, %v6121_v12  ;;  %v505_v25 = vand.u32 15, %v6126_v39 }
 0x12b   : > { %v2114_v35 = vsel %vm6159_vm7, %v2050_v9, %v1986_v15  ;;  %v2243_v53 = vmul.f32 %v5286_v47, %v2112_v20  ;;  %v568_v44 = vshra.s32 %v6003_v59, 4  ;;  %v570_v26 = vshra.s32 %v6113_v3, 4 }
 0x12c   : > { %v2245_v46 = vmul.f32 %v5286_v47, %v2114_v35  ;;  %v703_v33 = vand.u32 1, %v503_v1  ;;  %v705_v42 = vand.u32 1, %v505_v25  ;;  %v831_v28 = vand.u32 2, %v503_v1 }
 0x12d   : > { %v833_v43 = vand.u32 2, %v505_v25  ;;  %v959_v7 = vand.u32 4, %v503_v1  ;;  %v961_v60 = vand.u32 4, %v505_v25  ;;  %v1087_v11 = vand.u32 8, %v503_v1 }
 0x12e   : > { %v2303_v19 = vpack.c.bf16 %v2245_v46, %v2243_v53  ;;  %vm6242_vm8 = vcmp.ne.s32.totalorder %v703_v33, 0  ;;  %vm6246_vm9 = vcmp.ne.s32.totalorder %v705_v42, 0  ;;  %vm6250_vm10 = vcmp.ne.s32.totalorder %v831_v28, 0 }
 0x12f   : > { %vm6254_vm11 = vcmp.ne.s32.totalorder %v833_v43, 0  ;;  %vm6258_vm12 = vcmp.ne.s32.totalorder %v959_v7, 0  ;;  %vm6262_vm13 = vcmp.ne.s32.totalorder %v961_v60, 0  ;;  %v1089_v5 = vand.u32 8, %v505_v25 }
 0x130   : > { %4026 = vmatprep.subr.bf16.mxu1 %v2303_v19  ;;  %vm6266_vm14 = vcmp.ne.s32.totalorder %v1087_v11, 0  ;;  %v1215_v8 = vsel %vm6242_vm8, -0.6961928, %v4721_v38  ;;  %v1217_v14 = vsel %vm6246_vm9, -0.6961928, %v4721_v38  ;;  %v1407_v10 = vsel %vm6242_vm8, 0.0, %v4724_v49 }
 0x131   : > { %vm6279_vm15 = vcmp.ne.s32.totalorder %v1089_v5, 0  ;;  %v1279_v13 = vsel %vm6242_vm8, -0.3949175, %v4722_v41  ;;  %v1281_v51 = vsel %vm6246_vm9, -0.3949175, %v4722_v41  ;;  %v1409_v27 = vsel %vm6246_vm9, 0.0, %v4724_v49 }
 0x132   : > { %v1343_v23 = vsel %vm6242_vm8, -0.18477343, %v4723_v45  ;;  %v1345_v36 = vsel %vm6246_vm9, -0.18477343, %v4723_v45  ;;  %v1471_v4 = vsel %vm6242_vm8, 0.1609302, %v4725_v52  ;;  %v1727_v31 = vsel %vm6250_vm10, %v1279_v13, %v1215_v8 }
 0x133   : > { %v1473_v15 = vsel %vm6246_vm9, 0.1609302, %v4725_v52  ;;  %v1535_v34 = vsel %vm6242_vm8, 0.33791524, %v4726_v55  ;;  %v1537_v9 = vsel %vm6246_vm9, 0.33791524, %v4726_v55  ;;  %v1729_v20 = vsel %vm6254_vm11, %v1281_v51, %v1217_v14 }
 0x134   : > { %v1599_v1 = vsel %vm6242_vm8, 0.562617, %v4727_v58  ;;  %v1601_v25 = vsel %vm6246_vm9, 0.562617, %v4727_v58  ;;  %v1663_v35 = vsel %vm6242_vm8, 1.0, %v4728_v62  ;;  %v1665_v53 = vsel %vm6246_vm9, 1.0, %v4728_v62 }
 0x135   : > { %v1791_v46 = vsel %vm6250_vm10, %v1407_v10, %v1343_v23  ;;  %v1793_v33 = vsel %vm6254_vm11, %v1409_v27, %v1345_v36  ;;  %v1855_v42 = vsel %vm6250_vm10, %v1535_v34, %v1471_v4  ;;  %v1857_v28 = vsel %vm6254_vm11, %v1537_v9, %v1473_v15 }
 0x136   : > { %v1919_v43 = vsel %vm6250_vm10, %v1663_v35, %v1599_v1  ;;  %v1921_v7 = vsel %vm6254_vm11, %v1665_v53, %v1601_v25  ;;  %v1983_v60 = vsel %vm6258_vm12, %v1791_v46, %v1727_v31  ;;  %v1985_v11 = vsel %vm6262_vm13, %v1793_v33, %v1729_v20 }
 0x137   : > { %v2047_v19 = vsel %vm6258_vm12, %v1919_v43, %v1855_v42  ;;  %v2049_v54 = vsel %vm6262_vm13, %v1921_v7, %v1857_v28  ;;  %v632_v48 = vand.u32 15, %v568_v44  ;;  %v634_v5 = vand.u32 15, %v570_v26 }
 0x138   : > { %v2111_v59 = vsel %vm6266_vm14, %v2047_v19, %v1983_v60  ;;  %v2113_v3 = vsel %vm6279_vm15, %v2049_v54, %v1985_v11  ;;  %v567_v8 = vshra.s32 %v6121_v12, 4  ;;  %v569_v14 = vshra.s32 %v6126_v39, 4 }
 0x139   : > { %v2242_v10 = vmul.f32 %v5306_v57, %v2111_v59  ;;  %v2244_v63 = vmul.f32 %v5306_v57, %v2113_v3  ;;  %v2339_v13 = vand.u32 1, %v632_v48  ;;  %v2341_v51 = vand.u32 1, %v634_v5 }
 0x13a   : > { %v2467_v61 = vand.u32 2, %v632_v48  ;;  %v2469_v27 = vand.u32 2, %v634_v5  ;;  %v2595_v44 = vand.u32 4, %v632_v48  ;;  %v2597_v26 = vand.u32 4, %v634_v5 }
 0x13b   : > { %v2302_v23 = vpack.c.bf16 %v2244_v63, %v2242_v10  ;;  %vm6354_vm0 = vcmp.ne.s32.totalorder %v2339_v13, 0  ;;  %vm6358_vm1 = vcmp.ne.s32.totalorder %v2341_v51, 0  ;;  %v2723_v12 = vand.u32 8, %v632_v48 }
 0x13c   : > { %vm6362_vm2 = vcmp.ne.s32.totalorder %v2467_v61, 0  ;;  %vm6366_vm3 = vcmp.ne.s32.totalorder %v2469_v27, 0  ;;  %vm6370_vm4 = vcmp.ne.s32.totalorder %v2595_v44, 0  ;;  %vm6374_vm5 = vcmp.ne.s32.totalorder %v2597_v26, 0 }
 0x13d   : > { %4027 = vmatpush1.bf16.msra.mxu1 %v2302_v23  ;;  %v2725_v15 = vand.u32 8, %v634_v5  ;;  %vm6378_vm6 = vcmp.ne.s32.totalorder %v2723_v12, 0  ;;  %v2851_v9 = vsel %vm6354_vm0, -0.6961928, %v4721_v38  ;;  %v2853_v20 = vsel %vm6358_vm1, -0.6961928, %v4721_v38 }
 0x13e   : > { %v2915_v1 = vsel %vm6354_vm0, -0.3949175, %v4722_v41  ;;  %v2917_v25 = vsel %vm6358_vm1, -0.3949175, %v4722_v41  ;;  %v2979_v35 = vsel %vm6354_vm0, -0.18477343, %v4723_v45  ;;  %v380_v53 = vunpack.c.2.s8 %v5781_v16 }
 0x13f   : > { %vm6398_vm7 = vcmp.ne.s32.totalorder %v2725_v15, 0  ;;  %v2981_v33 = vsel %vm6358_vm1, -0.18477343, %v4723_v45  ;;  %v3043_v42 = vsel %vm6354_vm0, 0.0, %v4724_v49  ;;  %v3045_v28 = vsel %vm6358_vm1, 0.0, %v4724_v49 }
 0x140   : > { %v3107_v43 = vsel %vm6354_vm0, 0.1609302, %v4725_v52  ;;  %v3109_v7 = vsel %vm6358_vm1, 0.1609302, %v4725_v52  ;;  %v3171_v60 = vsel %vm6354_vm0, 0.33791524, %v4726_v55  ;;  %v3363_v11 = vsel %vm6362_vm2, %v2915_v1, %v2851_v9 }
 0x141   : > { %v3173_v19 = vsel %vm6358_vm1, 0.33791524, %v4726_v55  ;;  %v3235_v54 = vsel %vm6354_vm0, 0.562617, %v4727_v58  ;;  %v3237_v48 = vsel %vm6358_vm1, 0.562617, %v4727_v58  ;;  %v3365_v5 = vsel %vm6366_vm3, %v2917_v25, %v2853_v20 }
 0x142   : > { %v3299_v59 = vsel %vm6354_vm0, 1.0, %v4728_v62  ;;  %v3301_v3 = vsel %vm6358_vm1, 1.0, %v4728_v62  ;;  %v3427_v10 = vsel %vm6362_vm2, %v3043_v42, %v2979_v35  ;;  %v3429_v63 = vsel %vm6366_vm3, %v3045_v28, %v2981_v33 }
 0x143   : > { %v3491_v13 = vsel %vm6362_vm2, %v3171_v60, %v3107_v43  ;;  %v3493_v51 = vsel %vm6366_vm3, %v3173_v19, %v3109_v7  ;;  %v3555_v61 = vsel %vm6362_vm2, %v3299_v59, %v3235_v54  ;;  %v3557_v27 = vsel %vm6366_vm3, %v3301_v3, %v3237_v48 }
 0x144   : > { %v3619_v44 = vsel %vm6370_vm4, %v3427_v10, %v3363_v11  ;;  %v3621_v26 = vsel %vm6374_vm5, %v3429_v63, %v3365_v5  ;;  %v3683_v23 = vsel %vm6370_vm4, %v3555_v61, %v3491_v13  ;;  %v3685_v32 = vsel %vm6374_vm5, %v3557_v27, %v3493_v51 }
 0x145   : > { %v3747_v22 = vsel %vm6378_vm6, %v3683_v23, %v3619_v44  ;;  %v3749_v12 = vsel %vm6398_vm7, %v3685_v32, %v3621_v26  ;;  %v631_v39 = vand.u32 15, %v567_v8  ;;  %v633_v36 = vand.u32 15, %v569_v14 }
 0x146   : > { %v3876_v15 = vmul.f32 %v5519_v29, %v3747_v22  ;;  %v3878_v9 = vmul.f32 %v5519_v29, %v3749_v12  ;;  %v382_v20 = vunpack.c.3.s8 %v5781_v16  ;;  %v6466_v1 = vand.u32 255, %v380_v53 }
 0x147   : > { %v2338_v4 = vand.u32 1, %v631_v39  ;;  %v2340_v25 = vand.u32 1, %v633_v36  ;;  %v2466_v31 = vand.u32 2, %v631_v39  ;;  %v2468_v35 = vand.u32 2, %v633_v36 }
 0x148   : > { %v3936_v33 = vpack.c.bf16 %v3878_v9, %v3876_v15  ;;  %v2594_v34 = vand.u32 4, %v631_v39  ;;  %v2596_v42 = vand.u32 4, %v633_v36  ;;  %v2722_v28 = vand.u32 8, %v631_v39 }
 0x149   : > { %vm6468_vm8 = vcmp.ne.s32.totalorder %v2338_v4, 0  ;;  %vm6472_vm9 = vcmp.ne.s32.totalorder %v2340_v25, 0  ;;  %vm6476_vm10 = vcmp.ne.s32.totalorder %v2466_v31, 0  ;;  %vm6480_vm11 = vcmp.ne.s32.totalorder %v2468_v35, 0 }
 0x14a   : > { %3978 = vmatprep.subr.bf16.mxu0 %v3936_v33  ;;  %vm6484_vm12 = vcmp.ne.s32.totalorder %v2594_v34, 0  ;;  %vm6488_vm13 = vcmp.ne.s32.totalorder %v2596_v42, 0  ;;  %v2724_v7 = vand.u32 8, %v633_v36  ;;  %vm6492_vm14 = vcmp.ne.s32.totalorder %v2722_v28, 0 }
 0x14b   : > { %v2850_v11 = vsel %vm6468_vm8, -0.6961928, %v4721_v38  ;;  %v2852_v19 = vsel %vm6472_vm9, -0.6961928, %v4721_v38  ;;  %v2914_v54 = vsel %vm6468_vm8, -0.3949175, %v4722_v41  ;;  %v379_v48 = vunpack.c.2.s8 %v6006_v56 }
 0x14c   : > { %vm6506_vm15 = vcmp.ne.s32.totalorder %v2724_v7, 0  ;;  %v2916_v59 = vsel %vm6472_vm9, -0.3949175, %v4722_v41  ;;  %v2978_v3 = vsel %vm6468_vm8, -0.18477343, %v4723_v45  ;;  %v3042_v10 = vsel %vm6468_vm8, 0.0, %v4724_v49 }
 0x14d   : > { %v2980_v63 = vsel %vm6472_vm9, -0.18477343, %v4723_v45  ;;  %v3044_v13 = vsel %vm6472_vm9, 0.0, %v4724_v49  ;;  %v3106_v51 = vsel %vm6468_vm8, 0.1609302, %v4725_v52  ;;  %v3298_v61 = vsel %vm6468_vm8, 1.0, %v4728_v62 }
 0x14e   : > { %v3108_v27 = vsel %vm6472_vm9, 0.1609302, %v4725_v52  ;;  %v3170_v44 = vsel %vm6468_vm8, 0.33791524, %v4726_v55  ;;  %v3172_v26 = vsel %vm6472_vm9, 0.33791524, %v4726_v55  ;;  %v3362_v23 = vsel %vm6476_vm10, %v2914_v54, %v2850_v11 }
 0x14f   : > { %v3234_v32 = vsel %vm6468_vm8, 0.562617, %v4727_v58  ;;  %v3236_v22 = vsel %vm6472_vm9, 0.562617, %v4727_v58  ;;  %v3300_v12 = vsel %vm6472_vm9, 1.0, %v4728_v62  ;;  %v3364_v39 = vsel %vm6480_vm11, %v2916_v59, %v2852_v19 }
 0x150   : > { %v3426_v36 = vsel %vm6476_vm10, %v3042_v10, %v2978_v3  ;;  %v3428_v15 = vsel %vm6480_vm11, %v3044_v13, %v2980_v63  ;;  %v3490_v9 = vsel %vm6476_vm10, %v3170_v44, %v3106_v51  ;;  %v3492_v4 = vsel %vm6480_vm11, %v3172_v26, %v3108_v27 }
 0x151   : > { %v3554_v25 = vsel %vm6476_vm10, %v3298_v61, %v3234_v32  ;;  %v3556_v31 = vsel %vm6480_vm11, %v3300_v12, %v3236_v22  ;;  %v3618_v35 = vsel %vm6484_vm12, %v3426_v36, %v3362_v23  ;;  %v3620_v33 = vsel %vm6488_vm13, %v3428_v15, %v3364_v39 }
 0x152   : > { %v3682_v34 = vsel %vm6484_vm12, %v3554_v25, %v3490_v9  ;;  %v3684_v42 = vsel %vm6488_vm13, %v3556_v31, %v3492_v4  ;;  %v6573_v28 = vand.u32 255, %v382_v20  ;;  %v508_v46 = vand.u32 15, %v6466_v1 }
 0x153   : > { %v3746_v8 = vsel %vm6492_vm14, %v3682_v34, %v3618_v35  ;;  %v3748_v16 = vsel %vm6506_vm15, %v3684_v42, %v3620_v33  ;;  %v381_v14 = vunpack.c.3.s8 %v6006_v56  ;;  %v6581_v7 = vand.u32 255, %v379_v48 }
 0x154   : > { %v3875_v53 = vmul.f32 %v5565_v21, %v3746_v8  ;;  %v3877_v11 = vmul.f32 %v5565_v21, %v3748_v16  ;;  %v510_v43 = vand.u32 15, %v6573_v28  ;;  %v708_v20 = vand.u32 1, %v508_v46 }
 0x155   : > { %v836_v19 = vand.u32 2, %v508_v46  ;;  %v964_v54 = vand.u32 4, %v508_v46  ;;  %v1092_v59 = vand.u32 8, %v508_v46  ;;  %v6586_v3 = vand.u32 255, %v381_v14 }
 0x156   : > { %v3935_v60 = vpack.c.bf16 %v3877_v11, %v3875_v53  ;;  %v710_v10 = vand.u32 1, %v510_v43  ;;  %vm6588_vm0 = vcmp.ne.s32.totalorder %v708_v20, 0  ;;  %v838_v56 = vand.u32 2, %v510_v43 }
 0x157   : > { %vm6592_vm1 = vcmp.ne.s32.totalorder %v836_v19, 0  ;;  %v966_v63 = vand.u32 4, %v510_v43  ;;  %vm6596_vm2 = vcmp.ne.s32.totalorder %v964_v54, 0  ;;  %v1094_v51 = vand.u32 8, %v510_v43 }
 0x158   : > { %3979 = vmatpush1.bf16.msra.mxu0 %v3935_v60  ;;  %vm6600_vm3 = vcmp.ne.s32.totalorder %v710_v10, 0  ;;  %vm6604_vm4 = vcmp.ne.s32.totalorder %v838_v56, 0  ;;  %vm6608_vm5 = vcmp.ne.s32.totalorder %v1092_v59, 0  ;;  %v1220_v26 = vsel %vm6588_vm0, -0.6961928, %v4721_v38 }
 0x159   : > { %vm6615_vm6 = vcmp.ne.s32.totalorder %v966_v63, 0  ;;  %vm6619_vm7 = vcmp.ne.s32.totalorder %v1094_v51, 0  ;;  %v1222_v22 = vsel %vm6600_vm3, -0.6961928, %v4721_v38  ;;  %v1284_v12 = vsel %vm6588_vm0, -0.3949175, %v4722_v41 }
 0x15a   : > { %v1286_v39 = vsel %vm6600_vm3, -0.3949175, %v4722_v41  ;;  %v1348_v36 = vsel %vm6588_vm0, -0.18477343, %v4723_v45  ;;  %v1350_v15 = vsel %vm6600_vm3, -0.18477343, %v4723_v45  ;;  %v1732_v9 = vsel %vm6592_vm1, %v1284_v12, %v1220_v26 }
 0x15b   : > { %v1412_v4 = vsel %vm6588_vm0, 0.0, %v4724_v49  ;;  %v1414_v25 = vsel %vm6600_vm3, 0.0, %v4724_v49  ;;  %v1476_v31 = vsel %vm6588_vm0, 0.1609302, %v4725_v52  ;;  %v1478_v35 = vsel %vm6600_vm3, 0.1609302, %v4725_v52 }
 0x15c   : > { %v1540_v33 = vsel %vm6588_vm0, 0.33791524, %v4726_v55  ;;  %v1542_v34 = vsel %vm6600_vm3, 0.33791524, %v4726_v55  ;;  %v1604_v42 = vsel %vm6588_vm0, 0.562617, %v4727_v58  ;;  %v1734_v46 = vsel %vm6604_vm4, %v1286_v39, %v1222_v22 }
 0x15d   : > { %v1606_v8 = vsel %vm6600_vm3, 0.562617, %v4727_v58  ;;  %v1668_v16 = vsel %vm6588_vm0, 1.0, %v4728_v62  ;;  %v1670_v14 = vsel %vm6600_vm3, 1.0, %v4728_v62  ;;  %v1796_v53 = vsel %vm6592_vm1, %v1412_v4, %v1348_v36 }
 0x15e   : > { %v1798_v11 = vsel %vm6604_vm4, %v1414_v25, %v1350_v15  ;;  %v1860_v43 = vsel %vm6592_vm1, %v1540_v33, %v1476_v31  ;;  %v1862_v20 = vsel %vm6604_vm4, %v1542_v34, %v1478_v35  ;;  %v1924_v19 = vsel %vm6592_vm1, %v1668_v16, %v1604_v42 }
 0x15f   : > { %v1926_v54 = vsel %vm6604_vm4, %v1670_v14, %v1606_v8  ;;  %v1988_v59 = vsel %vm6596_vm2, %v1796_v53, %v1732_v9  ;;  %v1990_v60 = vsel %vm6615_vm6, %v1798_v11, %v1734_v46  ;;  %v2052_v10 = vsel %vm6596_vm2, %v1924_v19, %v1860_v43 }
 0x160   : > { %v2054_v5 = vsel %vm6615_vm6, %v1926_v54, %v1862_v20  ;;  %v2116_v56 = vsel %vm6608_vm5, %v2052_v10, %v1988_v59  ;;  %v507_v48 = vand.u32 15, %v6581_v7  ;;  %v509_v63 = vand.u32 15, %v6586_v3 }
 0x161   : > { %v2118_v51 = vsel %vm6619_vm7, %v2054_v5, %v1990_v60  ;;  %v2247_v61 = vmul.f32 %v5286_v47, %v2116_v56  ;;  %v572_v27 = vshra.s32 %v6466_v1, 4  ;;  %v574_v13 = vshra.s32 %v6573_v28, 4 }
 0x162   : > { %v2249_v26 = vmul.f32 %v5286_v47, %v2118_v51  ;;  %v707_v23 = vand.u32 1, %v507_v48  ;;  %v709_v22 = vand.u32 1, %v509_v63  ;;  %v835_v12 = vand.u32 2, %v507_v48 }
 0x163   : > { %v837_v44 = vand.u32 2, %v509_v63  ;;  %v963_v39 = vand.u32 4, %v507_v48  ;;  %v965_v36 = vand.u32 4, %v509_v63  ;;  %v1091_v15 = vand.u32 8, %v507_v48 }
 0x164   : > { %v2305_v9 = vpack.c.bf16 %v2249_v26, %v2247_v61  ;;  %vm6702_vm8 = vcmp.ne.s32.totalorder %v707_v23, 0  ;;  %vm6706_vm9 = vcmp.ne.s32.totalorder %v709_v22, 0  ;;  %vm6710_vm10 = vcmp.ne.s32.totalorder %v835_v12, 0 }
 0x165   : > { %vm6714_vm11 = vcmp.ne.s32.totalorder %v837_v44, 0  ;;  %vm6718_vm12 = vcmp.ne.s32.totalorder %v963_v39, 0  ;;  %vm6722_vm13 = vcmp.ne.s32.totalorder %v965_v36, 0  ;;  %v1093_v31 = vand.u32 8, %v509_v63 }
 0x166   : > { %4028 = vmatprep.subr.bf16.mxu1 %v2305_v9  ;;  %vm6726_vm14 = vcmp.ne.s32.totalorder %v1091_v15, 0  ;;  %v1219_v33 = vsel %vm6702_vm8, -0.6961928, %v4721_v38  ;;  %v1221_v34 = vsel %vm6706_vm9, -0.6961928, %v4721_v38  ;;  %v1411_v42 = vsel %vm6702_vm8, 0.0, %v4724_v49 }
 0x167   : > { %vm6739_vm15 = vcmp.ne.s32.totalorder %v1093_v31, 0  ;;  %v1283_v8 = vsel %vm6702_vm8, -0.3949175, %v4722_v41  ;;  %v1285_v16 = vsel %vm6706_vm9, -0.3949175, %v4722_v41  ;;  %v1413_v14 = vsel %vm6706_vm9, 0.0, %v4724_v49 }
 0x168   : > { %v1347_v53 = vsel %vm6702_vm8, -0.18477343, %v4723_v45  ;;  %v1349_v11 = vsel %vm6706_vm9, -0.18477343, %v4723_v45  ;;  %v1475_v43 = vsel %vm6702_vm8, 0.1609302, %v4725_v52  ;;  %v1731_v20 = vsel %vm6710_vm10, %v1283_v8, %v1219_v33 }
 0x169   : > { %v1477_v19 = vsel %vm6706_vm9, 0.1609302, %v4725_v52  ;;  %v1539_v54 = vsel %vm6702_vm8, 0.33791524, %v4726_v55  ;;  %v1541_v59 = vsel %vm6706_vm9, 0.33791524, %v4726_v55  ;;  %v1733_v60 = vsel %vm6714_vm11, %v1285_v16, %v1221_v34 }
 0x16a   : > { %v1603_v10 = vsel %vm6702_vm8, 0.562617, %v4727_v58  ;;  %v1605_v5 = vsel %vm6706_vm9, 0.562617, %v4727_v58  ;;  %v1667_v56 = vsel %vm6702_vm8, 1.0, %v4728_v62  ;;  %v1669_v48 = vsel %vm6706_vm9, 1.0, %v4728_v62 }
 0x16b   : > { %v1795_v63 = vsel %vm6710_vm10, %v1411_v42, %v1347_v53  ;;  %v1797_v51 = vsel %vm6714_vm11, %v1413_v14, %v1349_v11  ;;  %v1859_v61 = vsel %vm6710_vm10, %v1539_v54, %v1475_v43  ;;  %v1861_v26 = vsel %vm6714_vm11, %v1541_v59, %v1477_v19 }
 0x16c   : > { %v1923_v23 = vsel %vm6710_vm10, %v1667_v56, %v1603_v10  ;;  %v1925_v22 = vsel %vm6714_vm11, %v1669_v48, %v1605_v5  ;;  %v1987_v12 = vsel %vm6718_vm12, %v1795_v63, %v1731_v20  ;;  %v1989_v44 = vsel %vm6722_vm13, %v1797_v51, %v1733_v60 }
 0x16d   : > { %v2051_v39 = vsel %vm6718_vm12, %v1923_v23, %v1859_v61  ;;  %v2053_v36 = vsel %vm6722_vm13, %v1925_v22, %v1861_v26  ;;  %v636_v15 = vand.u32 15, %v572_v27  ;;  %v638_v9 = vand.u32 15, %v574_v13 }
 0x16e   : > { %v2115_v4 = vsel %vm6726_vm14, %v2051_v39, %v1987_v12  ;;  %v2117_v32 = vsel %vm6739_vm15, %v2053_v36, %v1989_v44  ;;  %v571_v1 = vshra.s32 %v6581_v7, 4  ;;  %v573_v47 = vshra.s32 %v6586_v3, 4  ;;  %v6823_v3 = vld [vmem:[%s5075_s11 + $0x28] sm:$0xff] }
 0x16f   : > { %v2246_v31 = vmul.f32 %v5306_v57, %v2115_v4  ;;  %v2248_v28 = vmul.f32 %v5306_v57, %v2117_v32  ;;  %v2343_v33 = vand.u32 1, %v636_v15  ;;  %v2345_v25 = vand.u32 1, %v638_v9 }
 0x170   : > { %v2471_v34 = vand.u32 2, %v636_v15  ;;  %v2473_v27 = vand.u32 2, %v638_v9  ;;  %v2599_v13 = vand.u32 4, %v636_v15  ;;  %v2601_v42 = vand.u32 4, %v638_v9 }
 0x171   : > { %v2304_v35 = vpack.c.bf16 %v2248_v28, %v2246_v31  ;;  %vm6814_vm0 = vcmp.ne.s32.totalorder %v2343_v33, 0  ;;  %vm6818_vm1 = vcmp.ne.s32.totalorder %v2345_v25, 0  ;;  %v2727_v7 = vand.u32 8, %v636_v15 }
 0x172   : > { %vm6825_vm2 = vcmp.ne.s32.totalorder %v2471_v34, 0  ;;  %vm6829_vm3 = vcmp.ne.s32.totalorder %v2473_v27, 0  ;;  %vm6833_vm4 = vcmp.ne.s32.totalorder %v2599_v13, 0  ;;  %vm6837_vm5 = vcmp.ne.s32.totalorder %v2601_v42, 0 }
 0x173   : > { %4029 = vmatpush1.bf16.msra.mxu1 %v2304_v35  ;;  %v2729_v11 = vand.u32 8, %v638_v9  ;;  %vm6841_vm6 = vcmp.ne.s32.totalorder %v2727_v7, 0  ;;  %v2855_v20 = vsel %vm6814_vm0, -0.6961928, %v4721_v38  ;;  %v2857_v19 = vsel %vm6818_vm1, -0.6961928, %v4721_v38 }
 0x174   : > { %v2919_v54 = vsel %vm6814_vm0, -0.3949175, %v4722_v41  ;;  %v2921_v59 = vsel %vm6818_vm1, -0.3949175, %v4722_v41  ;;  %v2983_v60 = vsel %vm6814_vm0, -0.18477343, %v4723_v45  ;;  %v384_v10 = vunpack.c.0.s8 %v6823_v3 }
 0x175   : > { %vm6861_vm7 = vcmp.ne.s32.totalorder %v2729_v11, 0  ;;  %v2985_v56 = vsel %vm6818_vm1, -0.18477343, %v4723_v45  ;;  %v3047_v48 = vsel %vm6814_vm0, 0.0, %v4724_v49  ;;  %v3049_v63 = vsel %vm6818_vm1, 0.0, %v4724_v49 }
 0x176   : > { %v3111_v51 = vsel %vm6814_vm0, 0.1609302, %v4725_v52  ;;  %v3113_v61 = vsel %vm6818_vm1, 0.1609302, %v4725_v52  ;;  %v3175_v26 = vsel %vm6814_vm0, 0.33791524, %v4726_v55  ;;  %v3367_v23 = vsel %vm6825_vm2, %v2919_v54, %v2855_v20 }
 0x177   : > { %v3177_v22 = vsel %vm6818_vm1, 0.33791524, %v4726_v55  ;;  %v3239_v12 = vsel %vm6814_vm0, 0.562617, %v4727_v58  ;;  %v3241_v44 = vsel %vm6818_vm1, 0.562617, %v4727_v58  ;;  %v3369_v39 = vsel %vm6829_vm3, %v2921_v59, %v2857_v19 }
 0x178   : > { %v3303_v36 = vsel %vm6814_vm0, 1.0, %v4728_v62  ;;  %v3305_v15 = vsel %vm6818_vm1, 1.0, %v4728_v62  ;;  %v3431_v9 = vsel %vm6825_vm2, %v3047_v48, %v2983_v60  ;;  %v3433_v4 = vsel %vm6829_vm3, %v3049_v63, %v2985_v56 }
 0x179   : > { %v3495_v32 = vsel %vm6825_vm2, %v3175_v26, %v3111_v51  ;;  %v3497_v31 = vsel %vm6829_vm3, %v3177_v22, %v3113_v61  ;;  %v3559_v28 = vsel %vm6825_vm2, %v3303_v36, %v3239_v12  ;;  %v3561_v33 = vsel %vm6829_vm3, %v3305_v15, %v3241_v44 }
 0x17a   : > { %v3623_v25 = vsel %vm6833_vm4, %v3431_v9, %v3367_v23  ;;  %v3625_v34 = vsel %vm6837_vm5, %v3433_v4, %v3369_v39  ;;  %v3687_v27 = vsel %vm6833_vm4, %v3559_v28, %v3495_v32  ;;  %v3689_v13 = vsel %vm6837_vm5, %v3561_v33, %v3497_v31 }
 0x17b   : > { %v3751_v42 = vsel %vm6841_vm6, %v3687_v27, %v3623_v25  ;;  %v3753_v35 = vsel %vm6861_vm7, %v3689_v13, %v3625_v34  ;;  %v635_v8 = vand.u32 15, %v571_v1  ;;  %v637_v46 = vand.u32 15, %v573_v47 }
 0x17c   : > { %v3880_v7 = vmul.f32 %v5519_v29, %v3751_v42  ;;  %v3882_v57 = vmul.f32 %v5519_v29, %v3753_v35  ;;  %v386_v16 = vunpack.c.1.s8 %v6823_v3  ;;  %v6929_v11 = vand.u32 255, %v384_v10 }
 0x17d   : > { %v2342_v14 = vand.u32 1, %v635_v8  ;;  %v2344_v20 = vand.u32 1, %v637_v46  ;;  %v2470_v53 = vand.u32 2, %v635_v8  ;;  %v2472_v19 = vand.u32 2, %v637_v46 }
 0x17e   : > { %v3938_v54 = vpack.c.bf16 %v3882_v57, %v3880_v7  ;;  %v2598_v43 = vand.u32 4, %v635_v8  ;;  %v2600_v59 = vand.u32 4, %v637_v46  ;;  %v2726_v60 = vand.u32 8, %v635_v8  ;;  %v7030_v8 = vld [vmem:[%s5075_s11 + $0x20] sm:$0xff] }
 0x17f   : > { %vm6931_vm8 = vcmp.ne.s32.totalorder %v2342_v14, 0  ;;  %vm6935_vm9 = vcmp.ne.s32.totalorder %v2344_v20, 0  ;;  %vm6939_vm10 = vcmp.ne.s32.totalorder %v2470_v53, 0  ;;  %vm6943_vm11 = vcmp.ne.s32.totalorder %v2472_v19, 0 }
 0x180   : > { %3980 = vmatprep.subr.bf16.mxu0 %v3938_v54  ;;  %vm6947_vm12 = vcmp.ne.s32.totalorder %v2598_v43, 0  ;;  %vm6951_vm13 = vcmp.ne.s32.totalorder %v2600_v59, 0  ;;  %v2728_v48 = vand.u32 8, %v637_v46  ;;  %vm6955_vm14 = vcmp.ne.s32.totalorder %v2726_v60, 0 }
 0x181   : > { %v2854_v51 = vsel %vm6931_vm8, -0.6961928, %v4721_v38  ;;  %v2856_v61 = vsel %vm6935_vm9, -0.6961928, %v4721_v38  ;;  %v2918_v26 = vsel %vm6931_vm8, -0.3949175, %v4722_v41  ;;  %v6972_v23 = vrot.slane %v2177_v37, %v5242_v24 }
 0x182   : > { %vm6974_vm15 = vcmp.ne.s32.totalorder %v2728_v48, 0  ;;  %v2920_v12 = vsel %vm6935_vm9, -0.3949175, %v4722_v41  ;;  %v2982_v44 = vsel %vm6931_vm8, -0.18477343, %v4723_v45  ;;  %v3046_v39 = vsel %vm6931_vm8, 0.0, %v4724_v49 }
 0x183   : > { %v2984_v30 = vsel %vm6935_vm9, -0.18477343, %v4723_v45  ;;  %v3048_v37 = vsel %vm6935_vm9, 0.0, %v4724_v49  ;;  %v3110_v36 = vsel %vm6931_vm8, 0.1609302, %v4725_v52  ;;  %v3302_v15 = vsel %vm6931_vm8, 1.0, %v4728_v62 }
 0x184   : > { %v3112_v9 = vsel %vm6935_vm9, 0.1609302, %v4725_v52  ;;  %v3174_v4 = vsel %vm6931_vm8, 0.33791524, %v4726_v55  ;;  %v3176_v32 = vsel %vm6935_vm9, 0.33791524, %v4726_v55  ;;  %v3366_v31 = vsel %vm6939_vm10, %v2918_v26, %v2854_v51 }
 0x185   : > { %v3238_v28 = vsel %vm6931_vm8, 0.562617, %v4727_v58  ;;  %v3240_v33 = vsel %vm6935_vm9, 0.562617, %v4727_v58  ;;  %v3304_v25 = vsel %vm6935_vm9, 1.0, %v4728_v62  ;;  %v3368_v34 = vsel %vm6943_vm11, %v2920_v12, %v2856_v61 }
 0x186   : > { %v3430_v27 = vsel %vm6939_vm10, %v3046_v39, %v2982_v44  ;;  %v3432_v13 = vsel %vm6943_vm11, %v3048_v37, %v2984_v30  ;;  %v3494_v42 = vsel %vm6939_vm10, %v3174_v4, %v3110_v36  ;;  %v3496_v35 = vsel %vm6943_vm11, %v3176_v32, %v3112_v9 }
 0x187   : > { %v3558_v46 = vsel %vm6939_vm10, %v3302_v15, %v3238_v28  ;;  %v3560_v7 = vsel %vm6943_vm11, %v3304_v25, %v3240_v33  ;;  %v3622_v57 = vsel %vm6947_vm12, %v3430_v27, %v3366_v31  ;;  %v3624_v14 = vsel %vm6951_vm13, %v3432_v13, %v3368_v34 }
 0x188   : > { %v3686_v20 = vsel %vm6947_vm12, %v3558_v46, %v3494_v42  ;;  %v3688_v53 = vsel %vm6951_vm13, %v3560_v7, %v3496_v35  ;;  %v7044_v19 = vand.u32 255, %v386_v16  ;;  %v512_v54 = vand.u32 15, %v6929_v11 }
 0x189   : > { %v3750_v43 = vsel %vm6955_vm14, %v3686_v20, %v3622_v57  ;;  %v3752_v59 = vsel %vm6974_vm15, %v3688_v53, %v3624_v14  ;;  %v7053_v60 = vrot.slane %v6972_v23, %v5127_v18  ;;  %v383_v5 = vunpack.c.0.s8 %v7030_v8 }
 0x18a   : > { %v3879_v1 = vmul.f32 %v5565_v21, %v3750_v43  ;;  %v3881_v29 = vmul.f32 %v5565_v21, %v3752_v59  ;;  %v514_v16 = vand.u32 15, %v7044_v19  ;;  %v712_v47 = vand.u32 1, %v512_v54 }
 0x18b   : > { %v840_v10 = vand.u32 2, %v512_v54  ;;  %v968_v56 = vand.u32 4, %v512_v54  ;;  %v1096_v48 = vand.u32 8, %v512_v54  ;;  %v385_v63 = vunpack.c.1.s8 %v7030_v8 }
 0x18c   : > { %v3937_v51 = vpack.c.bf16 %v3881_v29, %v3879_v1  ;;  %v714_v61 = vand.u32 1, %v514_v16  ;;  %vm7060_vm0 = vcmp.ne.s32.totalorder %v712_v47, 0  ;;  %v842_v22 = vand.u32 2, %v514_v16 }
 0x18d   : > { %vm7064_vm1 = vcmp.ne.s32.totalorder %v840_v10, 0  ;;  %v970_v21 = vand.u32 4, %v514_v16  ;;  %vm7068_vm2 = vcmp.ne.s32.totalorder %v968_v56, 0  ;;  %v1098_v39 = vand.u32 8, %v514_v16 }
 0x18e   : > { %3981 = vmatpush1.bf16.msra.mxu0 %v3937_v51  ;;  %vm7072_vm3 = vcmp.ne.s32.totalorder %v714_v61, 0  ;;  %vm7076_vm4 = vcmp.ne.s32.totalorder %v842_v22, 0  ;;  %vm7080_vm5 = vcmp.ne.s32.totalorder %v1096_v48, 0  ;;  %v1224_v15 = vsel %vm7060_vm0, -0.6961928, %v4721_v38 }
 0x18f   : > { %vm7087_vm6 = vcmp.ne.s32.totalorder %v970_v21, 0  ;;  %vm7091_vm7 = vcmp.ne.s32.totalorder %v1098_v39, 0  ;;  %v1226_v32 = vsel %vm7072_vm3, -0.6961928, %v4721_v38  ;;  %v1288_v31 = vsel %vm7060_vm0, -0.3949175, %v4722_v41 }
 0x190   : > { %v1290_v28 = vsel %vm7072_vm3, -0.3949175, %v4722_v41  ;;  %v1352_v33 = vsel %vm7060_vm0, -0.18477343, %v4723_v45  ;;  %v1354_v25 = vsel %vm7072_vm3, -0.18477343, %v4723_v45  ;;  %v1736_v34 = vsel %vm7064_vm1, %v1288_v31, %v1224_v15 }
 0x191   : > { %v1416_v27 = vsel %vm7060_vm0, 0.0, %v4724_v49  ;;  %v1418_v13 = vsel %vm7072_vm3, 0.0, %v4724_v49  ;;  %v1480_v42 = vsel %vm7060_vm0, 0.1609302, %v4725_v52  ;;  %v1482_v35 = vsel %vm7072_vm3, 0.1609302, %v4725_v52 }
 0x192   : > { %v1544_v46 = vsel %vm7060_vm0, 0.33791524, %v4726_v55  ;;  %v1546_v7 = vsel %vm7072_vm3, 0.33791524, %v4726_v55  ;;  %v1608_v57 = vsel %vm7060_vm0, 0.562617, %v4727_v58  ;;  %v1738_v14 = vsel %vm7076_vm4, %v1290_v28, %v1226_v32 }
 0x193   : > { %v1610_v20 = vsel %vm7072_vm3, 0.562617, %v4727_v58  ;;  %v1672_v53 = vsel %vm7060_vm0, 1.0, %v4728_v62  ;;  %v1674_v54 = vsel %vm7072_vm3, 1.0, %v4728_v62  ;;  %v1800_v43 = vsel %vm7064_vm1, %v1416_v27, %v1352_v33 }
 0x194   : > { %v1802_v59 = vsel %vm7076_vm4, %v1418_v13, %v1354_v25  ;;  %v1864_v1 = vsel %vm7064_vm1, %v1544_v46, %v1480_v42  ;;  %v1866_v29 = vsel %vm7076_vm4, %v1546_v7, %v1482_v35  ;;  %v1928_v16 = vsel %vm7064_vm1, %v1672_v53, %v1608_v57 }
 0x195   : > { %v1930_v47 = vsel %vm7076_vm4, %v1674_v54, %v1610_v20  ;;  %v1992_v10 = vsel %vm7068_vm2, %v1800_v43, %v1736_v34  ;;  %v1994_v56 = vsel %vm7087_vm6, %v1802_v59, %v1738_v14  ;;  %v2056_v48 = vsel %vm7068_vm2, %v1928_v16, %v1864_v1 }
 0x196   : > { %v2058_v51 = vsel %vm7087_vm6, %v1930_v47, %v1866_v29  ;;  %v2120_v61 = vsel %vm7080_vm5, %v2056_v48, %v1992_v10  ;;  %v7166_v26 = vand.u32 255, %v383_v5  ;;  %v7168_v22 = vand.u32 255, %v385_v63 }
 0x197   : > { %v2122_v12 = vsel %vm7091_vm7, %v2058_v51, %v1994_v56  ;;  %v2251_v21 = vmul.f32 %v7053_v60, %v2120_v61  ;;  %v7175_v39 = vrot.slane %v6972_v23, %v5124_v17  ;;  %v576_v44 = vshra.s32 %v6929_v11, 4 }
 0x198   : > { %v2253_v30 = vmul.f32 %v7053_v60, %v2122_v12  ;;  %v511_v37 = vand.u32 15, %v7166_v26  ;;  %v513_v5 = vand.u32 15, %v7168_v22  ;;  %v578_v63 = vshra.s32 %v7044_v19, 4 }
 0x199   : > { %v7182_v36 = vand.u32 15, %v576_v44  ;;  %v7188_v15 = vrot.slane %v3810_v0, %v5242_v24  ;;  %v575_v9 = vshra.s32 %v7166_v26, 4  ;;  %v577_v11 = vshra.s32 %v7168_v22, 4 }
 0x19a   : > { %v2307_v4 = vpack.c.bf16 %v2253_v30, %v2251_v21  ;;  %v711_v32 = vand.u32 1, %v511_v37  ;;  %v713_v31 = vand.u32 1, %v513_v5  ;;  %v839_v28 = vand.u32 2, %v511_v37 }
 0x19b   : > { %v841_v33 = vand.u32 2, %v513_v5  ;;  %v967_v25 = vand.u32 4, %v511_v37  ;;  %v969_v34 = vand.u32 4, %v513_v5  ;;  %v1095_v19 = vand.u32 8, %v511_v37 }
 0x19c   : > { %4030 = vmatprep.subr.bf16.mxu1 %v2307_v4  ;;  %vm7192_vm8 = vcmp.ne.s32.totalorder %v711_v32, 0  ;;  %vm7196_vm9 = vcmp.ne.s32.totalorder %v713_v31, 0  ;;  %vm7200_vm10 = vcmp.ne.s32.totalorder %v839_v28, 0  ;;  %v1097_v0 = vand.u32 8, %v513_v5 }
 0x19d   : > { %vm7204_vm11 = vcmp.ne.s32.totalorder %v841_v33, 0  ;;  %vm7208_vm12 = vcmp.ne.s32.totalorder %v967_v25, 0  ;;  %vm7212_vm13 = vcmp.ne.s32.totalorder %v969_v34, 0  ;;  %vm7216_vm14 = vcmp.ne.s32.totalorder %v1095_v19, 0 }
 0x19e   : > { %vm7220_vm15 = vcmp.ne.s32.totalorder %v1097_v0, 0  ;;  %v1223_v57 = vsel %vm7192_vm8, -0.6961928, %v4721_v38  ;;  %v1225_v14 = vsel %vm7196_vm9, -0.6961928, %v4721_v38  ;;  %v1415_v20 = vsel %vm7192_vm8, 0.0, %v4724_v49 }
 0x19f   : > { %v1287_v53 = vsel %vm7192_vm8, -0.3949175, %v4722_v41  ;;  %v1289_v54 = vsel %vm7196_vm9, -0.3949175, %v4722_v41  ;;  %v1351_v43 = vsel %vm7192_vm8, -0.18477343, %v4723_v45  ;;  %v7244_v59 = vrot.slane %v7188_v15, %v5127_v18 }
 0x1a0   : > { %v1353_v1 = vsel %vm7196_vm9, -0.18477343, %v4723_v45  ;;  %v1417_v29 = vsel %vm7196_vm9, 0.0, %v4724_v49  ;;  %v1479_v16 = vsel %vm7192_vm8, 0.1609302, %v4725_v52  ;;  %v1671_v47 = vsel %vm7192_vm8, 1.0, %v4728_v62 }
 0x1a1   : > { %v1481_v10 = vsel %vm7196_vm9, 0.1609302, %v4725_v52  ;;  %v1543_v56 = vsel %vm7192_vm8, 0.33791524, %v4726_v55  ;;  %v1545_v48 = vsel %vm7196_vm9, 0.33791524, %v4726_v55  ;;  %v1735_v51 = vsel %vm7200_vm10, %v1287_v53, %v1223_v57 }
 0x1a2   : > { %v1607_v61 = vsel %vm7192_vm8, 0.562617, %v4727_v58  ;;  %v1609_v12 = vsel %vm7196_vm9, 0.562617, %v4727_v58  ;;  %v1673_v21 = vsel %vm7196_vm9, 1.0, %v4728_v62  ;;  %v1737_v44 = vsel %vm7204_vm11, %v1289_v54, %v1225_v14 }
 0x1a3   : > { %v1799_v30 = vsel %vm7200_vm10, %v1415_v20, %v1351_v43  ;;  %v1801_v37 = vsel %vm7204_vm11, %v1417_v29, %v1353_v1  ;;  %v1863_v5 = vsel %vm7200_vm10, %v1543_v56, %v1479_v16  ;;  %v1865_v4 = vsel %vm7204_vm11, %v1545_v48, %v1481_v10 }
 0x1a4   : > { %v1927_v32 = vsel %vm7200_vm10, %v1671_v47, %v1607_v61  ;;  %v1929_v31 = vsel %vm7204_vm11, %v1673_v21, %v1609_v12  ;;  %v1991_v28 = vsel %vm7208_vm12, %v1799_v30, %v1735_v51  ;;  %v1993_v33 = vsel %vm7212_vm13, %v1801_v37, %v1737_v44 }
 0x1a5   : > { %v2055_v25 = vsel %vm7208_vm12, %v1927_v32, %v1863_v5  ;;  %v2057_v34 = vsel %vm7212_vm13, %v1929_v31, %v1865_v4  ;;  %v642_v19 = vand.u32 15, %v578_v63  ;;  %v2347_v27 = vand.u32 1, %v7182_v36 }
 0x1a6   : > { %v2119_v24 = vsel %vm7216_vm14, %v2055_v25, %v1991_v28  ;;  %v2121_v50 = vsel %vm7220_vm15, %v2057_v34, %v1993_v33  ;;  %v2475_v0 = vand.u32 2, %v7182_v36  ;;  %v2603_v13 = vand.u32 4, %v7182_v36 }
 0x1a7   : > { %v2250_v57 = vmul.f32 %v7175_v39, %v2119_v24  ;;  %v2252_v42 = vmul.f32 %v7175_v39, %v2121_v50  ;;  %v2349_v14 = vand.u32 1, %v642_v19  ;;  %vm7309_vm0 = vcmp.ne.s32.totalorder %v2347_v27, 0 }
 0x1a8   : > { %v2477_v63 = vand.u32 2, %v642_v19  ;;  %vm7313_vm1 = vcmp.ne.s32.totalorder %v2475_v0, 0  ;;  %v2605_v7 = vand.u32 4, %v642_v19  ;;  %vm7317_vm2 = vcmp.ne.s32.totalorder %v2603_v13, 0 }
 0x1a9   : > { %v2306_v53 = vpack.c.bf16 %v2252_v42, %v2250_v57  ;;  %vm7321_vm3 = vcmp.ne.s32.totalorder %v2349_v14, 0  ;;  %v2731_v43 = vand.u32 8, %v7182_v36  ;;  %v2733_v1 = vand.u32 8, %v642_v19 }
 0x1aa   : > { %vm7326_vm4 = vcmp.ne.s32.totalorder %v2477_v63, 0  ;;  %vm7330_vm5 = vcmp.ne.s32.totalorder %v2605_v7, 0  ;;  %v2859_v47 = vsel %vm7309_vm0, -0.6961928, %v4721_v38  ;;  %v2861_v10 = vsel %vm7321_vm3, -0.6961928, %v4721_v38 }
 0x1ab   : > { %4031 = vmatpush1.bf16.msra.mxu1 %v2306_v53  ;;  %vm7340_vm6 = vcmp.ne.s32.totalorder %v2731_v43, 0  ;;  %vm7344_vm7 = vcmp.ne.s32.totalorder %v2733_v1, 0  ;;  %v2923_v48 = vsel %vm7309_vm0, -0.3949175, %v4722_v41  ;;  %v2925_v51 = vsel %vm7321_vm3, -0.3949175, %v4722_v41 }
 0x1ac   : > { %v2987_v61 = vsel %vm7309_vm0, -0.18477343, %v4723_v45  ;;  %v2989_v12 = vsel %vm7321_vm3, -0.18477343, %v4723_v45  ;;  %v3051_v21 = vsel %vm7309_vm0, 0.0, %v4724_v49  ;;  %v3053_v44 = vsel %vm7321_vm3, 0.0, %v4724_v49 }
 0x1ad   : > { %v3115_v30 = vsel %vm7309_vm0, 0.1609302, %v4725_v52  ;;  %v3117_v37 = vsel %vm7321_vm3, 0.1609302, %v4725_v52  ;;  %v3179_v5 = vsel %vm7309_vm0, 0.33791524, %v4726_v55  ;;  %v3371_v4 = vsel %vm7313_vm1, %v2923_v48, %v2859_v47 }
 0x1ae   : > { %v3181_v32 = vsel %vm7321_vm3, 0.33791524, %v4726_v55  ;;  %v3243_v31 = vsel %vm7309_vm0, 0.562617, %v4727_v58  ;;  %v3245_v28 = vsel %vm7321_vm3, 0.562617, %v4727_v58  ;;  %v3373_v33 = vsel %vm7326_vm4, %v2925_v51, %v2861_v10 }
 0x1af   : > { %v3307_v25 = vsel %vm7309_vm0, 1.0, %v4728_v62  ;;  %v3309_v34 = vsel %vm7321_vm3, 1.0, %v4728_v62  ;;  %v3435_v19 = vsel %vm7313_vm1, %v3051_v21, %v2987_v61  ;;  %v3437_v27 = vsel %vm7326_vm4, %v3053_v44, %v2989_v12 }
 0x1b0   : > { %v3499_v24 = vsel %vm7313_vm1, %v3179_v5, %v3115_v30  ;;  %v3501_v50 = vsel %vm7326_vm4, %v3181_v32, %v3117_v37  ;;  %v3563_v0 = vsel %vm7313_vm1, %v3307_v25, %v3243_v31  ;;  %v3565_v13 = vsel %vm7326_vm4, %v3309_v34, %v3245_v28 }
 0x1b1   : > { %v3627_v57 = vsel %vm7317_vm2, %v3435_v19, %v3371_v4  ;;  %v3629_v42 = vsel %vm7330_vm5, %v3437_v27, %v3373_v33  ;;  %v3691_v14 = vsel %vm7317_vm2, %v3563_v0, %v3499_v24  ;;  %v3693_v35 = vsel %vm7330_vm5, %v3565_v13, %v3501_v50 }
 0x1b2   : > { %v3755_v63 = vsel %vm7340_vm6, %v3691_v14, %v3627_v57  ;;  %v3757_v46 = vsel %vm7344_vm7, %v3693_v35, %v3629_v42  ;;  %v639_v7 = vand.u32 15, %v575_v9  ;;  %v641_v53 = vand.u32 15, %v577_v11 }
 0x1b3   : > { %v3884_v54 = vmul.f32 %v7244_v59, %v3755_v63  ;;  %v3886_v20 = vmul.f32 %v7244_v59, %v3757_v46  ;;  %v7426_v43 = vrot.slane %v7188_v15, %v5124_v17  ;;  %v388_v1 = vunpack.c.2.s8 %v6823_v3 }
 0x1b4   : > { %v2346_v29 = vand.u32 1, %v639_v7  ;;  %v2348_v16 = vand.u32 1, %v641_v53  ;;  %v2474_v47 = vand.u32 2, %v639_v7  ;;  %v2476_v10 = vand.u32 2, %v641_v53 }
 0x1b5   : > { %v3940_v36 = vpack.c.bf16 %v3886_v20, %v3884_v54  ;;  %v2602_v26 = vand.u32 4, %v639_v7  ;;  %v2604_v9 = vand.u32 4, %v641_v53  ;;  %v2730_v56 = vand.u32 8, %v639_v7 }
 0x1b6   : > { %vm7429_vm8 = vcmp.ne.s32.totalorder %v2346_v29, 0  ;;  %vm7433_vm9 = vcmp.ne.s32.totalorder %v2348_v16, 0  ;;  %vm7437_vm10 = vcmp.ne.s32.totalorder %v2474_v47, 0  ;;  %vm7441_vm11 = vcmp.ne.s32.totalorder %v2476_v10, 0 }
 0x1b7   : > { %3982 = vmatprep.subr.bf16.mxu0 %v3940_v36  ;;  %vm7445_vm12 = vcmp.ne.s32.totalorder %v2602_v26, 0  ;;  %vm7449_vm13 = vcmp.ne.s32.totalorder %v2604_v9, 0  ;;  %v2732_v21 = vand.u32 8, %v641_v53  ;;  %vm7453_vm14 = vcmp.ne.s32.totalorder %v2730_v56, 0 }
 0x1b8   : > { %v2858_v30 = vsel %vm7429_vm8, -0.6961928, %v4721_v38  ;;  %v2860_v37 = vsel %vm7433_vm9, -0.6961928, %v4721_v38  ;;  %v2922_v5 = vsel %vm7429_vm8, -0.3949175, %v4722_v41  ;;  %v390_v4 = vunpack.c.3.s8 %v6823_v3 }
 0x1b9   : > { %vm7467_vm15 = vcmp.ne.s32.totalorder %v2732_v21, 0  ;;  %v2924_v31 = vsel %vm7433_vm9, -0.3949175, %v4722_v41  ;;  %v2986_v28 = vsel %vm7429_vm8, -0.18477343, %v4723_v45  ;;  %v3050_v33 = vsel %vm7429_vm8, 0.0, %v4724_v49 }
 0x1ba   : > { %v2988_v3 = vsel %vm7433_vm9, -0.18477343, %v4723_v45  ;;  %v3052_v25 = vsel %vm7433_vm9, 0.0, %v4724_v49  ;;  %v3114_v34 = vsel %vm7429_vm8, 0.1609302, %v4725_v52  ;;  %v3306_v19 = vsel %vm7429_vm8, 1.0, %v4728_v62 }
 0x1bb   : > { %v3116_v27 = vsel %vm7433_vm9, 0.1609302, %v4725_v52  ;;  %v3178_v24 = vsel %vm7429_vm8, 0.33791524, %v4726_v55  ;;  %v3180_v50 = vsel %vm7433_vm9, 0.33791524, %v4726_v55  ;;  %v3370_v0 = vsel %vm7437_vm10, %v2922_v5, %v2858_v30 }
 0x1bc   : > { %v3242_v13 = vsel %vm7429_vm8, 0.562617, %v4727_v58  ;;  %v3244_v57 = vsel %vm7433_vm9, 0.562617, %v4727_v58  ;;  %v3308_v42 = vsel %vm7433_vm9, 1.0, %v4728_v62  ;;  %v3372_v14 = vsel %vm7441_vm11, %v2924_v31, %v2860_v37 }
 0x1bd   : > { %v3434_v35 = vsel %vm7437_vm10, %v3050_v33, %v2986_v28  ;;  %v3436_v63 = vsel %vm7441_vm11, %v3052_v25, %v2988_v3  ;;  %v3498_v46 = vsel %vm7437_vm10, %v3178_v24, %v3114_v34  ;;  %v3500_v7 = vsel %vm7441_vm11, %v3180_v50, %v3116_v27 }
 0x1be   : > { %v3562_v53 = vsel %vm7437_vm10, %v3306_v19, %v3242_v13  ;;  %v3564_v54 = vsel %vm7441_vm11, %v3308_v42, %v3244_v57  ;;  %v3626_v20 = vsel %vm7445_vm12, %v3434_v35, %v3370_v0  ;;  %v3628_v29 = vsel %vm7449_vm13, %v3436_v63, %v3372_v14  ;;  %v7567_v19 = vld [vmem:[%s5075_s11 + $0x38] sm:$0xff] }
 0x1bf   : > { %v3690_v16 = vsel %vm7445_vm12, %v3562_v53, %v3498_v46  ;;  %v3692_v47 = vsel %vm7449_vm13, %v3564_v54, %v3500_v7  ;;  %v7534_v10 = vand.u32 255, %v388_v1  ;;  %v7536_v36 = vand.u32 255, %v390_v4 }
 0x1c0   : > { %v3754_v26 = vsel %vm7453_vm14, %v3690_v16, %v3626_v20  ;;  %v3756_v9 = vsel %vm7467_vm15, %v3692_v47, %v3628_v29  ;;  %v387_v56 = vunpack.c.2.s8 %v7030_v8  ;;  %v389_v22 = vunpack.c.3.s8 %v7030_v8 }
 0x1c1   : > { %v3883_v11 = vmul.f32 %v7426_v43, %v3754_v26  ;;  %v3885_v48 = vmul.f32 %v7426_v43, %v3756_v9  ;;  %v516_v51 = vand.u32 15, %v7534_v10  ;;  %v518_v1 = vand.u32 15, %v7536_v36 }
 0x1c2   : > { %v7548_v61 = vand.u32 255, %v387_v56  ;;  %v7550_v12 = vand.u32 255, %v389_v22  ;;  %v580_v21 = vshra.s32 %v7534_v10, 4  ;;  %v582_v44 = vshra.s32 %v7536_v36, 4 }
 0x1c3   : > { %v3939_v30 = vpack.c.bf16 %v3885_v48, %v3883_v11  ;;  %v716_v37 = vand.u32 1, %v516_v51  ;;  %v718_v8 = vand.u32 1, %v518_v1  ;;  %v844_v5 = vand.u32 2, %v516_v51 }
 0x1c4   : > { %v846_v4 = vand.u32 2, %v518_v1  ;;  %v972_v32 = vand.u32 4, %v516_v51  ;;  %v974_v31 = vand.u32 4, %v518_v1  ;;  %v1100_v28 = vand.u32 8, %v516_v51 }
 0x1c5   : > { %3983 = vmatpush1.bf16.msra.mxu0 %v3939_v30  ;;  %vm7554_vm0 = vcmp.ne.s32.totalorder %v716_v37, 0  ;;  %vm7558_vm1 = vcmp.ne.s32.totalorder %v718_v8, 0  ;;  %vm7562_vm2 = vcmp.ne.s32.totalorder %v844_v5, 0  ;;  %v1102_v34 = vand.u32 8, %v518_v1 }
 0x1c6   : > { %vm7569_vm3 = vcmp.ne.s32.totalorder %v846_v4, 0  ;;  %vm7573_vm4 = vcmp.ne.s32.totalorder %v972_v32, 0  ;;  %vm7577_vm5 = vcmp.ne.s32.totalorder %v974_v31, 0  ;;  %vm7581_vm6 = vcmp.ne.s32.totalorder %v1100_v28, 0 }
 0x1c7   : > { %vm7585_vm7 = vcmp.ne.s32.totalorder %v1102_v34, 0  ;;  %v1228_v57 = vsel %vm7554_vm0, -0.6961928, %v4721_v38  ;;  %v1230_v42 = vsel %vm7558_vm1, -0.6961928, %v4721_v38  ;;  %v1420_v14 = vsel %vm7554_vm0, 0.0, %v4724_v49 }
 0x1c8   : > { %v1292_v35 = vsel %vm7554_vm0, -0.3949175, %v4722_v41  ;;  %v1294_v63 = vsel %vm7558_vm1, -0.3949175, %v4722_v41  ;;  %v1356_v46 = vsel %vm7554_vm0, -0.18477343, %v4723_v45  ;;  %v392_v7 = vunpack.c.0.s8 %v7567_v19 }
 0x1c9   : > { %v1358_v53 = vsel %vm7558_vm1, -0.18477343, %v4723_v45  ;;  %v1422_v54 = vsel %vm7558_vm1, 0.0, %v4724_v49  ;;  %v1484_v20 = vsel %vm7554_vm0, 0.1609302, %v4725_v52  ;;  %v1676_v29 = vsel %vm7554_vm0, 1.0, %v4728_v62 }
 0x1ca   : > { %v1486_v16 = vsel %vm7558_vm1, 0.1609302, %v4725_v52  ;;  %v1548_v47 = vsel %vm7554_vm0, 0.33791524, %v4726_v55  ;;  %v1550_v10 = vsel %vm7558_vm1, 0.33791524, %v4726_v55  ;;  %v1740_v36 = vsel %vm7562_vm2, %v1292_v35, %v1228_v57 }
 0x1cb   : > { %v1612_v26 = vsel %vm7554_vm0, 0.562617, %v4727_v58  ;;  %v1614_v9 = vsel %vm7558_vm1, 0.562617, %v4727_v58  ;;  %v1678_v56 = vsel %vm7558_vm1, 1.0, %v4728_v62  ;;  %v1742_v22 = vsel %vm7569_vm3, %v1294_v63, %v1230_v42 }
 0x1cc   : > { %v1804_v11 = vsel %vm7562_vm2, %v1420_v14, %v1356_v46  ;;  %v1806_v48 = vsel %vm7569_vm3, %v1422_v54, %v1358_v53  ;;  %v1868_v51 = vsel %vm7562_vm2, %v1548_v47, %v1484_v20  ;;  %v1870_v1 = vsel %vm7569_vm3, %v1550_v10, %v1486_v16  ;;  %v7896_v20 = vld [vmem:[%s5075_s11 + $0x30] sm:$0xff] }
 0x1cd   : > { %v1932_v30 = vsel %vm7562_vm2, %v1676_v29, %v1612_v26  ;;  %v1934_v37 = vsel %vm7569_vm3, %v1678_v56, %v1614_v9  ;;  %v1996_v8 = vsel %vm7573_vm4, %v1804_v11, %v1740_v36  ;;  %v1998_v5 = vsel %vm7577_vm5, %v1806_v48, %v1742_v22 }
 0x1ce   : > { %v2060_v4 = vsel %vm7573_vm4, %v1932_v30, %v1868_v51  ;;  %v2062_v32 = vsel %vm7577_vm5, %v1934_v37, %v1870_v1  ;;  %v515_v31 = vand.u32 15, %v7548_v61  ;;  %v517_v28 = vand.u32 15, %v7550_v12 }
 0x1cf   : > { %v2124_v33 = vsel %vm7581_vm6, %v2060_v4, %v1996_v8  ;;  %v2126_v3 = vsel %vm7585_vm7, %v2062_v32, %v1998_v5  ;;  %v7668_v25 = vand.u32 15, %v580_v21  ;;  %v7670_v34 = vand.u32 15, %v582_v44 }
 0x1d0   : > { %v2255_v27 = vmul.f32 %v7053_v60, %v2124_v33  ;;  %v2257_v24 = vmul.f32 %v7053_v60, %v2126_v3  ;;  %v715_v50 = vand.u32 1, %v515_v31  ;;  %v717_v57 = vand.u32 1, %v517_v28 }
 0x1d1   : > { %v843_v42 = vand.u32 2, %v515_v31  ;;  %v845_v14 = vand.u32 2, %v517_v28  ;;  %v971_v35 = vand.u32 4, %v515_v31  ;;  %v973_v63 = vand.u32 4, %v517_v28 }
 0x1d2   : > { %v2309_v46 = vpack.c.bf16 %v2257_v24, %v2255_v27  ;;  %vm7674_vm8 = vcmp.ne.s32.totalorder %v715_v50, 0  ;;  %vm7678_vm9 = vcmp.ne.s32.totalorder %v717_v57, 0  ;;  %v1099_v44 = vand.u32 8, %v515_v31 }
 0x1d3   : > { %vm7682_vm10 = vcmp.ne.s32.totalorder %v843_v42, 0  ;;  %vm7686_vm11 = vcmp.ne.s32.totalorder %v845_v14, 0  ;;  %vm7690_vm12 = vcmp.ne.s32.totalorder %v971_v35, 0  ;;  %vm7694_vm13 = vcmp.ne.s32.totalorder %v973_v63, 0 }
 0x1d4   : > { %4032 = vmatprep.subr.bf16.mxu1 %v2309_v46  ;;  %v1101_v29 = vand.u32 8, %v517_v28  ;;  %vm7698_vm14 = vcmp.ne.s32.totalorder %v1099_v44, 0  ;;  %v1227_v47 = vsel %vm7674_vm8, -0.6961928, %v4721_v38  ;;  %v1229_v10 = vsel %vm7678_vm9, -0.6961928, %v4721_v38 }
 0x1d5   : > { %v1291_v36 = vsel %vm7674_vm8, -0.3949175, %v4722_v41  ;;  %v1293_v26 = vsel %vm7678_vm9, -0.3949175, %v4722_v41  ;;  %v1355_v9 = vsel %vm7674_vm8, -0.18477343, %v4723_v45  ;;  %v394_v56 = vunpack.c.1.s8 %v7567_v19 }
 0x1d6   : > { %vm7718_vm15 = vcmp.ne.s32.totalorder %v1101_v29, 0  ;;  %v1357_v11 = vsel %vm7678_vm9, -0.18477343, %v4723_v45  ;;  %v1419_v48 = vsel %vm7674_vm8, 0.0, %v4724_v49  ;;  %v1421_v51 = vsel %vm7678_vm9, 0.0, %v4724_v49 }
 0x1d7   : > { %v1483_v1 = vsel %vm7674_vm8, 0.1609302, %v4725_v52  ;;  %v1485_v30 = vsel %vm7678_vm9, 0.1609302, %v4725_v52  ;;  %v1547_v37 = vsel %vm7674_vm8, 0.33791524, %v4726_v55  ;;  %v1739_v8 = vsel %vm7682_vm10, %v1291_v36, %v1227_v47 }
 0x1d8   : > { %v1549_v5 = vsel %vm7678_vm9, 0.33791524, %v4726_v55  ;;  %v1611_v4 = vsel %vm7674_vm8, 0.562617, %v4727_v58  ;;  %v1613_v32 = vsel %vm7678_vm9, 0.562617, %v4727_v58  ;;  %v1741_v31 = vsel %vm7686_vm11, %v1293_v26, %v1229_v10 }
 0x1d9   : > { %v1675_v28 = vsel %vm7674_vm8, 1.0, %v4728_v62  ;;  %v1677_v33 = vsel %vm7678_vm9, 1.0, %v4728_v62  ;;  %v1803_v3 = vsel %vm7682_vm10, %v1419_v48, %v1355_v9  ;;  %v1805_v27 = vsel %vm7686_vm11, %v1421_v51, %v1357_v11 }
 0x1da   : > { %v1867_v24 = vsel %vm7682_vm10, %v1547_v37, %v1483_v1  ;;  %v1869_v50 = vsel %vm7686_vm11, %v1549_v5, %v1485_v30  ;;  %v1931_v57 = vsel %vm7682_vm10, %v1675_v28, %v1611_v4  ;;  %v1933_v42 = vsel %vm7686_vm11, %v1677_v33, %v1613_v32 }
 0x1db   : > { %v1995_v14 = vsel %vm7690_vm12, %v1803_v3, %v1739_v8  ;;  %v1997_v35 = vsel %vm7694_vm13, %v1805_v27, %v1741_v31  ;;  %v2059_v63 = vsel %vm7690_vm12, %v1931_v57, %v1867_v24  ;;  %v2061_v46 = vsel %vm7694_vm13, %v1933_v42, %v1869_v50 }
 0x1dc   : > { %v2123_v0 = vsel %vm7698_vm14, %v2059_v63, %v1995_v14  ;;  %v2125_v21 = vsel %vm7718_vm15, %v2061_v46, %v1997_v35  ;;  %v2351_v44 = vand.u32 1, %v7668_v25  ;;  %v2353_v13 = vand.u32 1, %v7670_v34 }
 0x1dd   : > { %v2254_v53 = vmul.f32 %v7175_v39, %v2123_v0  ;;  %v2256_v29 = vmul.f32 %v7175_v39, %v2125_v21  ;;  %v2479_v54 = vand.u32 2, %v7668_v25  ;;  %v2481_v47 = vand.u32 2, %v7670_v34 }
 0x1de   : > { %vm7789_vm0 = vcmp.ne.s32.totalorder %v2351_v44, 0  ;;  %vm7793_vm1 = vcmp.ne.s32.totalorder %v2353_v13, 0  ;;  %v2607_v10 = vand.u32 4, %v7668_v25  ;;  %v2609_v36 = vand.u32 4, %v7670_v34 }
 0x1df   : > { %v2308_v26 = vpack.c.bf16 %v2256_v29, %v2254_v53  ;;  %vm7799_vm2 = vcmp.ne.s32.totalorder %v2479_v54, 0  ;;  %vm7803_vm3 = vcmp.ne.s32.totalorder %v2481_v47, 0  ;;  %v2735_v11 = vand.u32 8, %v7668_v25 }
 0x1e0   : > { %vm7808_vm4 = vcmp.ne.s32.totalorder %v2607_v10, 0  ;;  %vm7812_vm5 = vcmp.ne.s32.totalorder %v2609_v36, 0  ;;  %v2737_v1 = vand.u32 8, %v7670_v34  ;;  %v2863_v30 = vsel %vm7789_vm0, -0.6961928, %v4721_v38 }
 0x1e1   : > { %4033 = vmatpush1.bf16.msra.mxu1 %v2308_v26  ;;  %vm7820_vm6 = vcmp.ne.s32.totalorder %v2735_v11, 0  ;;  %v2865_v25 = vsel %vm7793_vm1, -0.6961928, %v4721_v38  ;;  %v2927_v8 = vsel %vm7789_vm0, -0.3949175, %v4722_v41  ;;  %v3055_v34 = vsel %vm7789_vm0, 0.0, %v4724_v49 }
 0x1e2   : > { %vm7833_vm7 = vcmp.ne.s32.totalorder %v2737_v1, 0  ;;  %v2929_v4 = vsel %vm7793_vm1, -0.3949175, %v4722_v41  ;;  %v2991_v32 = vsel %vm7789_vm0, -0.18477343, %v4723_v45  ;;  %v3057_v31 = vsel %vm7793_vm1, 0.0, %v4724_v49 }
 0x1e3   : > { %v2993_v28 = vsel %vm7793_vm1, -0.18477343, %v4723_v45  ;;  %v3119_v33 = vsel %vm7789_vm0, 0.1609302, %v4725_v52  ;;  %v3121_v3 = vsel %vm7793_vm1, 0.1609302, %v4725_v52  ;;  %v3375_v27 = vsel %vm7799_vm2, %v2927_v8, %v2863_v30 }
 0x1e4   : > { %v3183_v24 = vsel %vm7789_vm0, 0.33791524, %v4726_v55  ;;  %v3185_v50 = vsel %vm7793_vm1, 0.33791524, %v4726_v55  ;;  %v3247_v57 = vsel %vm7789_vm0, 0.562617, %v4727_v58  ;;  %v3377_v42 = vsel %vm7803_vm3, %v2929_v4, %v2865_v25 }
 0x1e5   : > { %v3249_v14 = vsel %vm7793_vm1, 0.562617, %v4727_v58  ;;  %v3311_v35 = vsel %vm7789_vm0, 1.0, %v4728_v62  ;;  %v3313_v63 = vsel %vm7793_vm1, 1.0, %v4728_v62  ;;  %v3439_v46 = vsel %vm7799_vm2, %v3055_v34, %v2991_v32 }
 0x1e6   : > { %v3441_v0 = vsel %vm7803_vm3, %v3057_v31, %v2993_v28  ;;  %v3503_v21 = vsel %vm7799_vm2, %v3183_v24, %v3119_v33  ;;  %v3505_v44 = vsel %vm7803_vm3, %v3185_v50, %v3121_v3  ;;  %v3567_v13 = vsel %vm7799_vm2, %v3311_v35, %v3247_v57 }
 0x1e7   : > { %v3569_v53 = vsel %vm7803_vm3, %v3313_v63, %v3249_v14  ;;  %v3631_v29 = vsel %vm7808_vm4, %v3439_v46, %v3375_v27  ;;  %v3633_v54 = vsel %vm7812_vm5, %v3441_v0, %v3377_v42  ;;  %v3695_v47 = vsel %vm7808_vm4, %v3567_v13, %v3503_v21 }
 0x1e8   : > { %v3697_v16 = vsel %vm7812_vm5, %v3569_v53, %v3505_v44  ;;  %v3759_v10 = vsel %vm7820_vm6, %v3695_v47, %v3631_v29  ;;  %v579_v36 = vshra.s32 %v7548_v61, 4  ;;  %v581_v26 = vshra.s32 %v7550_v12, 4 }
 0x1e9   : > { %v3761_v9 = vsel %vm7833_vm7, %v3697_v16, %v3633_v54  ;;  %v3888_v22 = vmul.f32 %v7244_v59, %v3759_v10  ;;  %v7909_v11 = vand.u32 255, %v392_v7  ;;  %v7913_v48 = vand.u32 255, %v394_v56 }
 0x1ea   : > { %v3890_v51 = vmul.f32 %v7244_v59, %v3761_v9  ;;  %v643_v1 = vand.u32 15, %v579_v36  ;;  %v645_v30 = vand.u32 15, %v581_v26  ;;  %v391_v61 = vunpack.c.0.s8 %v7896_v20 }
 0x1eb   : > { %v7918_v12 = vand.u32 15, %v7909_v11  ;;  %v7921_v37 = vand.u32 15, %v7913_v48  ;;  %v393_v25 = vunpack.c.1.s8 %v7896_v20  ;;  %v584_v7 = vshra.s32 %v7909_v11, 4 }
 0x1ec   : > { %v3942_v8 = vpack.c.bf16 %v3890_v51, %v3888_v22  ;;  %v2350_v34 = vand.u32 1, %v643_v1  ;;  %v2352_v56 = vand.u32 1, %v645_v30  ;;  %v2478_v5 = vand.u32 2, %v643_v1 }
 0x1ed   : > { %v2480_v4 = vand.u32 2, %v645_v30  ;;  %v2606_v32 = vand.u32 4, %v643_v1  ;;  %v2608_v31 = vand.u32 4, %v645_v30  ;;  %v2734_v28 = vand.u32 8, %v643_v1 }
 0x1ee   : > { %3984 = vmatprep.subr.bf16.mxu0 %v3942_v8  ;;  %vm7925_vm8 = vcmp.ne.s32.totalorder %v2350_v34, 0  ;;  %vm7929_vm9 = vcmp.ne.s32.totalorder %v2352_v56, 0  ;;  %vm7933_vm10 = vcmp.ne.s32.totalorder %v2478_v5, 0  ;;  %v2736_v24 = vand.u32 8, %v645_v30 }
 0x1ef   : > { %vm7937_vm11 = vcmp.ne.s32.totalorder %v2480_v4, 0  ;;  %vm7941_vm12 = vcmp.ne.s32.totalorder %v2606_v32, 0  ;;  %vm7945_vm13 = vcmp.ne.s32.totalorder %v2608_v31, 0  ;;  %vm7949_vm14 = vcmp.ne.s32.totalorder %v2734_v28, 0 }
 0x1f0   : > { %vm7953_vm15 = vcmp.ne.s32.totalorder %v2736_v24, 0  ;;  %v2862_v63 = vsel %vm7925_vm8, -0.6961928, %v4721_v38  ;;  %v2864_v46 = vsel %vm7929_vm9, -0.6961928, %v4721_v38  ;;  %v3054_v0 = vsel %vm7925_vm8, 0.0, %v4724_v49 }
 0x1f1   : > { %v2926_v21 = vsel %vm7925_vm8, -0.3949175, %v4722_v41  ;;  %v2928_v44 = vsel %vm7929_vm9, -0.3949175, %v4722_v41  ;;  %v2990_v13 = vsel %vm7925_vm8, -0.18477343, %v4723_v45  ;;  %v396_v53 = vunpack.c.2.s8 %v7567_v19 }
 0x1f2   : > { %v2992_v29 = vsel %vm7929_vm9, -0.18477343, %v4723_v45  ;;  %v3056_v54 = vsel %vm7929_vm9, 0.0, %v4724_v49  ;;  %v3118_v47 = vsel %vm7925_vm8, 0.1609302, %v4725_v52  ;;  %v3310_v16 = vsel %vm7925_vm8, 1.0, %v4728_v62 }
 0x1f3   : > { %v3120_v10 = vsel %vm7929_vm9, 0.1609302, %v4725_v52  ;;  %v3182_v36 = vsel %vm7925_vm8, 0.33791524, %v4726_v55  ;;  %v3184_v26 = vsel %vm7929_vm9, 0.33791524, %v4726_v55  ;;  %v3374_v9 = vsel %vm7933_vm10, %v2926_v21, %v2862_v63 }
 0x1f4   : > { %v3246_v22 = vsel %vm7925_vm8, 0.562617, %v4727_v58  ;;  %v3248_v51 = vsel %vm7929_vm9, 0.562617, %v4727_v58  ;;  %v3312_v1 = vsel %vm7929_vm9, 1.0, %v4728_v62  ;;  %v3376_v30 = vsel %vm7937_vm11, %v2928_v44, %v2864_v46 }
 0x1f5   : > { %v3438_v8 = vsel %vm7933_vm10, %v3054_v0, %v2990_v13  ;;  %v3440_v34 = vsel %vm7937_vm11, %v3056_v54, %v2992_v29  ;;  %v3502_v56 = vsel %vm7933_vm10, %v3182_v36, %v3118_v47  ;;  %v3504_v5 = vsel %vm7937_vm11, %v3184_v26, %v3120_v10 }
 0x1f6   : > { %v3566_v4 = vsel %vm7933_vm10, %v3310_v16, %v3246_v22  ;;  %v3568_v32 = vsel %vm7937_vm11, %v3312_v1, %v3248_v51  ;;  %v3630_v31 = vsel %vm7941_vm12, %v3438_v8, %v3374_v9  ;;  %v3632_v28 = vsel %vm7945_vm13, %v3440_v34, %v3376_v30 }
 0x1f7   : > { %v3694_v33 = vsel %vm7941_vm12, %v3566_v4, %v3502_v56  ;;  %v3696_v3 = vsel %vm7945_vm13, %v3568_v32, %v3504_v5  ;;  %v720_v24 = vand.u32 1, %v7918_v12  ;;  %v722_v27 = vand.u32 1, %v7921_v37 }
 0x1f8   : > { %v3758_v50 = vsel %vm7949_vm14, %v3694_v33, %v3630_v31  ;;  %v3760_v63 = vsel %vm7953_vm15, %v3696_v3, %v3632_v28  ;;  %v848_v46 = vand.u32 2, %v7918_v12  ;;  %v850_v0 = vand.u32 2, %v7921_v37 }
 0x1f9   : > { %v3887_v57 = vmul.f32 %v7426_v43, %v3758_v50  ;;  %v3889_v21 = vmul.f32 %v7426_v43, %v3760_v63  ;;  %vm8040_vm0 = vcmp.ne.s32.totalorder %v720_v24, 0  ;;  %vm8044_vm1 = vcmp.ne.s32.totalorder %v722_v27, 0 }
 0x1fa   : > { %vm8048_vm2 = vcmp.ne.s32.totalorder %v848_v46, 0  ;;  %vm8052_vm3 = vcmp.ne.s32.totalorder %v850_v0, 0  ;;  %v976_v13 = vand.u32 4, %v7918_v12  ;;  %v978_v29 = vand.u32 4, %v7921_v37 }
 0x1fb   : > { %v3941_v54 = vpack.c.bf16 %v3889_v21, %v3887_v57  ;;  %v1104_v47 = vand.u32 8, %v7918_v12  ;;  %v1106_v16 = vand.u32 8, %v7921_v37  ;;  %v1232_v10 = vsel %vm8040_vm0, -0.6961928, %v4721_v38 }
 0x1fc   : > { %vm8063_vm4 = vcmp.ne.s32.totalorder %v976_v13, 0  ;;  %vm8067_vm5 = vcmp.ne.s32.totalorder %v978_v29, 0  ;;  %v1234_v9 = vsel %vm8044_vm1, -0.6961928, %v4721_v38  ;;  %v1296_v12 = vsel %vm8040_vm0, -0.3949175, %v4722_v41 }
 0x1fd   : > { %3985 = vmatpush1.bf16.msra.mxu0 %v3941_v54  ;;  %vm8077_vm6 = vcmp.ne.s32.totalorder %v1104_v47, 0  ;;  %vm8081_vm7 = vcmp.ne.s32.totalorder %v1106_v16, 0  ;;  %v1298_v51 = vsel %vm8044_vm1, -0.3949175, %v4722_v41  ;;  %v1360_v1 = vsel %vm8040_vm0, -0.18477343, %v4723_v45 }
 0x1fe   : > { %v1362_v30 = vsel %vm8044_vm1, -0.18477343, %v4723_v45  ;;  %v1424_v8 = vsel %vm8040_vm0, 0.0, %v4724_v49  ;;  %v1426_v34 = vsel %vm8044_vm1, 0.0, %v4724_v49  ;;  %v1488_v56 = vsel %vm8040_vm0, 0.1609302, %v4725_v52 }
 0x1ff   : > { %v1490_v5 = vsel %vm8044_vm1, 0.1609302, %v4725_v52  ;;  %v1552_v4 = vsel %vm8040_vm0, 0.33791524, %v4726_v55  ;;  %v1554_v32 = vsel %vm8044_vm1, 0.33791524, %v4726_v55  ;;  %v1744_v31 = vsel %vm8048_vm2, %v1296_v12, %v1232_v10 }
 0x200   : > { %v1616_v28 = vsel %vm8040_vm0, 0.562617, %v4727_v58  ;;  %v1618_v33 = vsel %vm8044_vm1, 0.562617, %v4727_v58  ;;  %v1680_v3 = vsel %vm8040_vm0, 1.0, %v4728_v62  ;;  %v1682_v24 = vsel %vm8044_vm1, 1.0, %v4728_v62 }
 0x201   : > { %v1746_v27 = vsel %vm8052_vm3, %v1298_v51, %v1234_v9  ;;  %v1808_v50 = vsel %vm8048_vm2, %v1424_v8, %v1360_v1  ;;  %v1810_v63 = vsel %vm8052_vm3, %v1426_v34, %v1362_v30  ;;  %v1872_v46 = vsel %vm8048_vm2, %v1552_v4, %v1488_v56 }
 0x202   : > { %v1874_v0 = vsel %vm8052_vm3, %v1554_v32, %v1490_v5  ;;  %v1936_v57 = vsel %vm8048_vm2, %v1680_v3, %v1616_v28  ;;  %v1938_v21 = vsel %vm8052_vm3, %v1682_v24, %v1618_v33  ;;  %v2000_v42 = vsel %vm8063_vm4, %v1808_v50, %v1744_v31 }
 0x203   : > { %v2002_v44 = vsel %vm8067_vm5, %v1810_v63, %v1746_v27  ;;  %v2064_v13 = vsel %vm8063_vm4, %v1936_v57, %v1872_v46  ;;  %v2066_v29 = vsel %vm8067_vm5, %v1938_v21, %v1874_v0  ;;  %v8150_v54 = vand.u32 255, %v391_v61 }
 0x204   : > { %v2128_v14 = vsel %vm8077_vm6, %v2064_v13, %v2000_v42  ;;  %v2130_v35 = vsel %vm8081_vm7, %v2066_v29, %v2002_v44  ;;  %v8158_v47 = vand.u32 255, %v393_v25  ;;  %v586_v16 = vshra.s32 %v7913_v48, 4 }
 0x205   : > { %v2259_v10 = vmul.f32 %v7053_v60, %v2128_v14  ;;  %v2261_v36 = vmul.f32 %v7053_v60, %v2130_v35  ;;  %v519_v26 = vand.u32 15, %v8150_v54  ;;  %v8166_v61 = vand.u32 15, %v584_v7 }
 0x206   : > { %v521_v9 = vand.u32 15, %v8158_v47  ;;  %v8169_v12 = vand.u32 15, %v586_v16  ;;  %v583_v37 = vshra.s32 %v8150_v54, 4  ;;  %v585_v25 = vshra.s32 %v8158_v47, 4 }
 0x207   : > { %v2311_v22 = vpack.c.bf16 %v2261_v36, %v2259_v10  ;;  %v719_v48 = vand.u32 1, %v519_v26  ;;  %v847_v51 = vand.u32 2, %v519_v26  ;;  %v975_v1 = vand.u32 4, %v519_v26 }
 0x208   : > { %v721_v30 = vand.u32 1, %v521_v9  ;;  %v849_v8 = vand.u32 2, %v521_v9  ;;  %v977_v34 = vand.u32 4, %v521_v9  ;;  %v1103_v56 = vand.u32 8, %v519_v26 }
 0x209   : > { %4034 = vmatprep.subr.bf16.mxu1 %v2311_v22  ;;  %vm8173_vm8 = vcmp.ne.s32.totalorder %v719_v48, 0  ;;  %vm8177_vm9 = vcmp.ne.s32.totalorder %v847_v51, 0  ;;  %vm8181_vm10 = vcmp.ne.s32.totalorder %v975_v1, 0  ;;  %v1105_v4 = vand.u32 8, %v521_v9 }
 0x20a   : > { %vm8185_vm11 = vcmp.ne.s32.totalorder %v721_v30, 0  ;;  %vm8189_vm12 = vcmp.ne.s32.totalorder %v849_v8, 0  ;;  %vm8193_vm13 = vcmp.ne.s32.totalorder %v977_v34, 0  ;;  %vm8197_vm14 = vcmp.ne.s32.totalorder %v1103_v56, 0 }
 0x20b   : > { %vm8201_vm15 = vcmp.ne.s32.totalorder %v1105_v4, 0  ;;  %v1231_v24 = vsel %vm8173_vm8, -0.6961928, %v4721_v38  ;;  %v1233_v27 = vsel %vm8185_vm11, -0.6961928, %v4721_v38  ;;  %v1423_v50 = vsel %vm8173_vm8, 0.0, %v4724_v49 }
 0x20c   : > { %v1295_v63 = vsel %vm8173_vm8, -0.3949175, %v4722_v41  ;;  %v1297_v46 = vsel %vm8185_vm11, -0.3949175, %v4722_v41  ;;  %v1359_v0 = vsel %vm8173_vm8, -0.18477343, %v4723_v45  ;;  %v398_v57 = vunpack.c.3.s8 %v7567_v19 }
 0x20d   : > { %v1361_v21 = vsel %vm8185_vm11, -0.18477343, %v4723_v45  ;;  %v1425_v42 = vsel %vm8185_vm11, 0.0, %v4724_v49  ;;  %v1487_v44 = vsel %vm8173_vm8, 0.1609302, %v4725_v52  ;;  %v1679_v13 = vsel %vm8173_vm8, 1.0, %v4728_v62 }
 0x20e   : > { %v1489_v29 = vsel %vm8185_vm11, 0.1609302, %v4725_v52  ;;  %v1551_v14 = vsel %vm8173_vm8, 0.33791524, %v4726_v55  ;;  %v1553_v35 = vsel %vm8185_vm11, 0.33791524, %v4726_v55  ;;  %v1743_v16 = vsel %vm8177_vm9, %v1295_v63, %v1231_v24 }
 0x20f   : > { %v1615_v10 = vsel %vm8173_vm8, 0.562617, %v4727_v58  ;;  %v1617_v36 = vsel %vm8185_vm11, 0.562617, %v4727_v58  ;;  %v1681_v26 = vsel %vm8185_vm11, 1.0, %v4728_v62  ;;  %v1745_v9 = vsel %vm8189_vm12, %v1297_v46, %v1233_v27 }
 0x210   : > { %v1807_v22 = vsel %vm8177_vm9, %v1423_v50, %v1359_v0  ;;  %v1809_v48 = vsel %vm8189_vm12, %v1425_v42, %v1361_v21  ;;  %v1871_v51 = vsel %vm8177_vm9, %v1551_v14, %v1487_v44  ;;  %v1873_v1 = vsel %vm8189_vm12, %v1553_v35, %v1489_v29 }
 0x211   : > { %v1935_v30 = vsel %vm8177_vm9, %v1679_v13, %v1615_v10  ;;  %v1937_v8 = vsel %vm8189_vm12, %v1681_v26, %v1617_v36  ;;  %v1999_v34 = vsel %vm8181_vm10, %v1807_v22, %v1743_v16  ;;  %v2001_v56 = vsel %vm8193_vm13, %v1809_v48, %v1745_v9 }
 0x212   : > { %v2063_v11 = vsel %vm8181_vm10, %v1935_v30, %v1871_v51  ;;  %v2065_v4 = vsel %vm8193_vm13, %v1937_v8, %v1873_v1  ;;  %v2355_v32 = vand.u32 1, %v8166_v61  ;;  %v2357_v7 = vand.u32 1, %v8169_v12 }
 0x213   : > { %v2127_v31 = vsel %vm8197_vm14, %v2063_v11, %v1999_v34  ;;  %v2129_v24 = vsel %vm8201_vm15, %v2065_v4, %v2001_v56  ;;  %v2483_v27 = vand.u32 2, %v8166_v61  ;;  %v2485_v50 = vand.u32 2, %v8169_v12 }
 0x214   : > { %v2258_v5 = vmul.f32 %v7175_v39, %v2127_v31  ;;  %v2260_v63 = vmul.f32 %v7175_v39, %v2129_v24  ;;  %vm8288_vm0 = vcmp.ne.s32.totalorder %v2355_v32, 0  ;;  %vm8292_vm1 = vcmp.ne.s32.totalorder %v2357_v7, 0 }
 0x215   : > { %vm8296_vm2 = vcmp.ne.s32.totalorder %v2483_v27, 0  ;;  %vm8300_vm3 = vcmp.ne.s32.totalorder %v2485_v50, 0  ;;  %v2611_v0 = vand.u32 4, %v8166_v61  ;;  %v2613_v21 = vand.u32 4, %v8169_v12 }
 0x216   : > { %v2310_v42 = vpack.c.bf16 %v2260_v63, %v2258_v5  ;;  %v2739_v44 = vand.u32 8, %v8166_v61  ;;  %v2741_v13 = vand.u32 8, %v8169_v12  ;;  %v2867_v29 = vsel %vm8288_vm0, -0.6961928, %v4721_v38 }
 0x217   : > { %vm8311_vm4 = vcmp.ne.s32.totalorder %v2611_v0, 0  ;;  %vm8315_vm5 = vcmp.ne.s32.totalorder %v2613_v21, 0  ;;  %v2869_v16 = vsel %vm8292_vm1, -0.6961928, %v4721_v38  ;;  %v2931_v61 = vsel %vm8288_vm0, -0.3949175, %v4722_v41 }
 0x218   : > { %4035 = vmatpush1.bf16.msra.mxu1 %v2310_v42  ;;  %vm8325_vm6 = vcmp.ne.s32.totalorder %v2739_v44, 0  ;;  %vm8329_vm7 = vcmp.ne.s32.totalorder %v2741_v13, 0  ;;  %v2933_v36 = vsel %vm8292_vm1, -0.3949175, %v4722_v41  ;;  %v2995_v26 = vsel %vm8288_vm0, -0.18477343, %v4723_v45 }
 0x219   : > { %v2997_v9 = vsel %vm8292_vm1, -0.18477343, %v4723_v45  ;;  %v3059_v22 = vsel %vm8288_vm0, 0.0, %v4724_v49  ;;  %v3061_v48 = vsel %vm8292_vm1, 0.0, %v4724_v49  ;;  %v3123_v51 = vsel %vm8288_vm0, 0.1609302, %v4725_v52 }
 0x21a   : > { %v3125_v1 = vsel %vm8292_vm1, 0.1609302, %v4725_v52  ;;  %v3187_v30 = vsel %vm8288_vm0, 0.33791524, %v4726_v55  ;;  %v3189_v8 = vsel %vm8292_vm1, 0.33791524, %v4726_v55  ;;  %v3379_v34 = vsel %vm8296_vm2, %v2931_v61, %v2867_v29 }
 0x21b   : > { %v3251_v56 = vsel %vm8288_vm0, 0.562617, %v4727_v58  ;;  %v3253_v11 = vsel %vm8292_vm1, 0.562617, %v4727_v58  ;;  %v3315_v4 = vsel %vm8288_vm0, 1.0, %v4728_v62  ;;  %v3317_v32 = vsel %vm8292_vm1, 1.0, %v4728_v62 }
 0x21c   : > { %v3381_v7 = vsel %vm8300_vm3, %v2933_v36, %v2869_v16  ;;  %v3443_v31 = vsel %vm8296_vm2, %v3059_v22, %v2995_v26  ;;  %v3445_v24 = vsel %vm8300_vm3, %v3061_v48, %v2997_v9  ;;  %v3507_v27 = vsel %vm8296_vm2, %v3187_v30, %v3123_v51 }
 0x21d   : > { %v3509_v50 = vsel %vm8300_vm3, %v3189_v8, %v3125_v1  ;;  %v3571_v5 = vsel %vm8296_vm2, %v3315_v4, %v3251_v56  ;;  %v3573_v63 = vsel %vm8300_vm3, %v3317_v32, %v3253_v11  ;;  %v3635_v28 = vsel %vm8311_vm4, %v3443_v31, %v3379_v34 }
 0x21e   : > { %v3637_v46 = vsel %vm8315_vm5, %v3445_v24, %v3381_v7  ;;  %v3699_v0 = vsel %vm8311_vm4, %v3571_v5, %v3507_v27  ;;  %v3701_v21 = vsel %vm8315_vm5, %v3573_v63, %v3509_v50  ;;  %v647_v42 = vand.u32 15, %v583_v37 }
 0x21f   : > { %v3763_v33 = vsel %vm8325_vm6, %v3699_v0, %v3635_v28  ;;  %v3765_v3 = vsel %vm8329_vm7, %v3701_v21, %v3637_v46  ;;  %v649_v44 = vand.u32 15, %v585_v25  ;;  %v8406_v13 = vand.u32 255, %v396_v53 }
 0x220   : > { %v3892_v29 = vmul.f32 %v7244_v59, %v3763_v33  ;;  %v3894_v14 = vmul.f32 %v7244_v59, %v3765_v3  ;;  %v2354_v35 = vand.u32 1, %v647_v42  ;;  %v2482_v54 = vand.u32 2, %v647_v42 }
 0x221   : > { %v2356_v37 = vand.u32 1, %v649_v44  ;;  %v2484_v16 = vand.u32 2, %v649_v44  ;;  %v2610_v61 = vand.u32 4, %v647_v42  ;;  %v2612_v12 = vand.u32 4, %v649_v44 }
 0x222   : > { %v3944_v36 = vpack.c.bf16 %v3894_v14, %v3892_v29  ;;  %vm8410_vm8 = vcmp.ne.s32.totalorder %v2354_v35, 0  ;;  %vm8414_vm9 = vcmp.ne.s32.totalorder %v2482_v54, 0  ;;  %v2738_v53 = vand.u32 8, %v647_v42 }
 0x223   : > { %vm8418_vm10 = vcmp.ne.s32.totalorder %v2356_v37, 0  ;;  %vm8422_vm11 = vcmp.ne.s32.totalorder %v2484_v16, 0  ;;  %vm8426_vm12 = vcmp.ne.s32.totalorder %v2610_v61, 0  ;;  %vm8430_vm13 = vcmp.ne.s32.totalorder %v2612_v12, 0 }
 0x224   : > { %3986 = vmatprep.subr.bf16.mxu0 %v3944_v36  ;;  %v2740_v48 = vand.u32 8, %v649_v44  ;;  %vm8434_vm14 = vcmp.ne.s32.totalorder %v2738_v53, 0  ;;  %v2866_v1 = vsel %vm8410_vm8, -0.6961928, %v4721_v38  ;;  %v2868_v30 = vsel %vm8418_vm10, -0.6961928, %v4721_v38 }
 0x225   : > { %v2930_v8 = vsel %vm8410_vm8, -0.3949175, %v4722_v41  ;;  %v2932_v34 = vsel %vm8418_vm10, -0.3949175, %v4722_v41  ;;  %v2994_v56 = vsel %vm8410_vm8, -0.18477343, %v4723_v45  ;;  %v395_v11 = vunpack.c.2.s8 %v7896_v20 }
 0x226   : > { %vm8454_vm15 = vcmp.ne.s32.totalorder %v2740_v48, 0  ;;  %v2996_v32 = vsel %vm8418_vm10, -0.18477343, %v4723_v45  ;;  %v3058_v7 = vsel %vm8410_vm8, 0.0, %v4724_v49  ;;  %v3060_v31 = vsel %vm8418_vm10, 0.0, %v4724_v49 }
 0x227   : > { %v3122_v24 = vsel %vm8410_vm8, 0.1609302, %v4725_v52  ;;  %v3124_v27 = vsel %vm8418_vm10, 0.1609302, %v4725_v52  ;;  %v3186_v50 = vsel %vm8410_vm8, 0.33791524, %v4726_v55  ;;  %v3378_v5 = vsel %vm8414_vm9, %v2930_v8, %v2866_v1 }
 0x228   : > { %v3188_v63 = vsel %vm8418_vm10, 0.33791524, %v4726_v55  ;;  %v3250_v28 = vsel %vm8410_vm8, 0.562617, %v4727_v58  ;;  %v3252_v46 = vsel %vm8418_vm10, 0.562617, %v4727_v58  ;;  %v3380_v0 = vsel %vm8422_vm11, %v2932_v34, %v2868_v30 }
 0x229   : > { %v3314_v21 = vsel %vm8410_vm8, 1.0, %v4728_v62  ;;  %v3316_v42 = vsel %vm8418_vm10, 1.0, %v4728_v62  ;;  %v3442_v33 = vsel %vm8414_vm9, %v3058_v7, %v2994_v56  ;;  %v3444_v3 = vsel %vm8422_vm11, %v3060_v31, %v2996_v32 }
 0x22a   : > { %v3506_v44 = vsel %vm8414_vm9, %v3186_v50, %v3122_v24  ;;  %v3508_v29 = vsel %vm8422_vm11, %v3188_v63, %v3124_v27  ;;  %v3570_v14 = vsel %vm8414_vm9, %v3314_v21, %v3250_v28  ;;  %v3572_v35 = vsel %vm8422_vm11, %v3316_v42, %v3252_v46 }
 0x22b   : > { %v3634_v54 = vsel %vm8426_vm12, %v3442_v33, %v3378_v5  ;;  %v3636_v37 = vsel %vm8430_vm13, %v3444_v3, %v3380_v0  ;;  %v3698_v16 = vsel %vm8426_vm12, %v3570_v14, %v3506_v44  ;;  %v3700_v61 = vsel %vm8430_vm13, %v3572_v35, %v3508_v29 }
 0x22c   : > { %v3762_v12 = vsel %vm8434_vm14, %v3698_v16, %v3634_v54  ;;  %v3764_v36 = vsel %vm8454_vm15, %v3700_v61, %v3636_v37  ;;  %v8521_v10 = vand.u32 255, %v398_v57  ;;  %v524_v47 = vand.u32 15, %v8406_v13 }
 0x22d   : > { %v3891_v53 = vmul.f32 %v7426_v43, %v3762_v12  ;;  %v3893_v25 = vmul.f32 %v7426_v43, %v3764_v36  ;;  %v397_v26 = vunpack.c.3.s8 %v7896_v20  ;;  %v8527_v9 = vand.u32 255, %v395_v11 }
 0x22e   : > { %v526_v22 = vand.u32 15, %v8521_v10  ;;  %v724_v48 = vand.u32 1, %v524_v47  ;;  %v852_v51 = vand.u32 2, %v524_v47  ;;  %v980_v1 = vand.u32 4, %v524_v47 }
 0x22f   : > { %v3943_v30 = vpack.c.bf16 %v3893_v25, %v3891_v53  ;;  %v1108_v8 = vand.u32 8, %v524_v47  ;;  %v8530_v19 = vand.u32 255, %v397_v26  ;;  %v8533_v57 = vand.u32 15, %v8527_v9 }
 0x230   : > { %v726_v34 = vand.u32 1, %v526_v22  ;;  %vm8535_vm0 = vcmp.ne.s32.totalorder %v724_v48, 0  ;;  %v854_v20 = vand.u32 2, %v526_v22  ;;  %vm8539_vm1 = vcmp.ne.s32.totalorder %v852_v51, 0 }
 0x231   : > { %3987 = vmatpush1.bf16.msra.mxu0 %v3943_v30  ;;  %v982_v4 = vand.u32 4, %v526_v22  ;;  %vm8543_vm2 = vcmp.ne.s32.totalorder %v980_v1, 0  ;;  %v1110_v7 = vand.u32 8, %v526_v22  ;;  %vm8547_vm3 = vcmp.ne.s32.totalorder %v1108_v8, 0 }
 0x232   : > { %vm8551_vm4 = vcmp.ne.s32.totalorder %v726_v34, 0  ;;  %vm8555_vm5 = vcmp.ne.s32.totalorder %v854_v20, 0  ;;  %v1236_v50 = vsel %vm8535_vm0, -0.6961928, %v4721_v38  ;;  %v1300_v5 = vsel %vm8535_vm0, -0.3949175, %v4722_v41 }
 0x233   : > { %vm8565_vm6 = vcmp.ne.s32.totalorder %v982_v4, 0  ;;  %vm8569_vm7 = vcmp.ne.s32.totalorder %v1110_v7, 0  ;;  %v1238_v46 = vsel %vm8551_vm4, -0.6961928, %v4721_v38  ;;  %v1302_v0 = vsel %vm8551_vm4, -0.3949175, %v4722_v41 }
 0x234   : > { %v1364_v21 = vsel %vm8535_vm0, -0.18477343, %v4723_v45  ;;  %v1366_v42 = vsel %vm8551_vm4, -0.18477343, %v4723_v45  ;;  %v1428_v33 = vsel %vm8535_vm0, 0.0, %v4724_v49  ;;  %v1430_v3 = vsel %vm8551_vm4, 0.0, %v4724_v49 }
 0x235   : > { %v1492_v44 = vsel %vm8535_vm0, 0.1609302, %v4725_v52  ;;  %v1494_v29 = vsel %vm8551_vm4, 0.1609302, %v4725_v52  ;;  %v1556_v14 = vsel %vm8535_vm0, 0.33791524, %v4726_v55  ;;  %v1748_v35 = vsel %vm8539_vm1, %v1300_v5, %v1236_v50 }
 0x236   : > { %v1558_v54 = vsel %vm8551_vm4, 0.33791524, %v4726_v55  ;;  %v1620_v37 = vsel %vm8535_vm0, 0.562617, %v4727_v58  ;;  %v1622_v16 = vsel %vm8551_vm4, 0.562617, %v4727_v58  ;;  %v1750_v61 = vsel %vm8555_vm5, %v1302_v0, %v1238_v46 }
 0x237   : > { %v1684_v12 = vsel %vm8535_vm0, 1.0, %v4728_v62  ;;  %v1686_v36 = vsel %vm8551_vm4, 1.0, %v4728_v62  ;;  %v1812_v47 = vsel %vm8539_vm1, %v1428_v33, %v1364_v21  ;;  %v1814_v53 = vsel %vm8555_vm5, %v1430_v3, %v1366_v42 }
 0x238   : > { %v1876_v25 = vsel %vm8539_vm1, %v1556_v14, %v1492_v44  ;;  %v1878_v26 = vsel %vm8555_vm5, %v1558_v54, %v1494_v29  ;;  %v1940_v22 = vsel %vm8539_vm1, %v1684_v12, %v1620_v37  ;;  %v1942_v48 = vsel %vm8555_vm5, %v1686_v36, %v1622_v16 }
 0x239   : > { %v2004_v51 = vsel %vm8543_vm2, %v1812_v47, %v1748_v35  ;;  %v2006_v1 = vsel %vm8565_vm6, %v1814_v53, %v1750_v61  ;;  %v2068_v30 = vsel %vm8543_vm2, %v1940_v22, %v1876_v25  ;;  %v2070_v8 = vsel %vm8565_vm6, %v1942_v48, %v1878_v26 }
 0x23a   : > { %v2132_v34 = vsel %vm8547_vm3, %v2068_v30, %v2004_v51  ;;  %v2134_v56 = vsel %vm8569_vm7, %v2070_v8, %v2006_v1  ;;  %v525_v20 = vand.u32 15, %v8530_v19  ;;  %v723_v11 = vand.u32 1, %v8533_v57 }
 0x23b   : > { %v2263_v4 = vmul.f32 %v7053_v60, %v2132_v34  ;;  %v2265_v7 = vmul.f32 %v7053_v60, %v2134_v56  ;;  %v851_v32 = vand.u32 2, %v8533_v57  ;;  %v979_v24 = vand.u32 4, %v8533_v57 }
 0x23c   : > { %v725_v27 = vand.u32 1, %v525_v20  ;;  %vm8649_vm8 = vcmp.ne.s32.totalorder %v723_v11, 0  ;;  %v853_v31 = vand.u32 2, %v525_v20  ;;  %v981_v5 = vand.u32 4, %v525_v20 }
 0x23d   : > { %v2313_v63 = vpack.c.bf16 %v2265_v7, %v2263_v4  ;;  %vm8653_vm9 = vcmp.ne.s32.totalorder %v851_v32, 0  ;;  %vm8657_vm10 = vcmp.ne.s32.totalorder %v979_v24, 0  ;;  %v1107_v60 = vand.u32 8, %v8533_v57 }
 0x23e   : > { %vm8662_vm11 = vcmp.ne.s32.totalorder %v725_v27, 0  ;;  %vm8666_vm12 = vcmp.ne.s32.totalorder %v853_v31, 0  ;;  %vm8670_vm13 = vcmp.ne.s32.totalorder %v981_v5, 0  ;;  %v1109_v33 = vand.u32 8, %v525_v20  ;;  %v8757_v31 = vld [vmem:[%s5075_s11 + $0x48] sm:$0xff] }
 0x23f   : > { %4036 = vmatprep.subr.bf16.mxu1 %v2313_v63  ;;  %vm8674_vm14 = vcmp.ne.s32.totalorder %v1107_v60, 0  ;;  %v1235_v57 = vsel %vm8649_vm8, -0.6961928, %v4721_v38  ;;  %v1237_v44 = vsel %vm8662_vm11, -0.6961928, %v4721_v38  ;;  %v1427_v29 = vsel %vm8649_vm8, 0.0, %v4724_v49 }
 0x240   : > { %vm8687_vm15 = vcmp.ne.s32.totalorder %v1109_v33, 0  ;;  %v1299_v35 = vsel %vm8649_vm8, -0.3949175, %v4722_v41  ;;  %v1301_v54 = vsel %vm8662_vm11, -0.3949175, %v4722_v41  ;;  %v1429_v37 = vsel %vm8662_vm11, 0.0, %v4724_v49 }
 0x241   : > { %v1363_v16 = vsel %vm8649_vm8, -0.18477343, %v4723_v45  ;;  %v1365_v61 = vsel %vm8662_vm11, -0.18477343, %v4723_v45  ;;  %v1491_v12 = vsel %vm8649_vm8, 0.1609302, %v4725_v52  ;;  %v1747_v36 = vsel %vm8653_vm9, %v1299_v35, %v1235_v57 }
 0x242   : > { %v1493_v47 = vsel %vm8662_vm11, 0.1609302, %v4725_v52  ;;  %v1555_v53 = vsel %vm8649_vm8, 0.33791524, %v4726_v55  ;;  %v1557_v25 = vsel %vm8662_vm11, 0.33791524, %v4726_v55  ;;  %v1749_v26 = vsel %vm8666_vm12, %v1301_v54, %v1237_v44 }
 0x243   : > { %v1619_v22 = vsel %vm8649_vm8, 0.562617, %v4727_v58  ;;  %v1621_v48 = vsel %vm8662_vm11, 0.562617, %v4727_v58  ;;  %v1683_v51 = vsel %vm8649_vm8, 1.0, %v4728_v62  ;;  %v1685_v1 = vsel %vm8662_vm11, 1.0, %v4728_v62 }
 0x244   : > { %v1811_v30 = vsel %vm8653_vm9, %v1427_v29, %v1363_v16  ;;  %v1813_v8 = vsel %vm8666_vm12, %v1429_v37, %v1365_v61  ;;  %v1875_v34 = vsel %vm8653_vm9, %v1555_v53, %v1491_v12  ;;  %v1877_v56 = vsel %vm8666_vm12, %v1557_v25, %v1493_v47 }
 0x245   : > { %v1939_v20 = vsel %vm8653_vm9, %v1683_v51, %v1619_v22  ;;  %v1941_v11 = vsel %vm8666_vm12, %v1685_v1, %v1621_v48  ;;  %v2003_v4 = vsel %vm8657_vm10, %v1811_v30, %v1747_v36  ;;  %v2005_v7 = vsel %vm8670_vm13, %v1813_v8, %v1749_v26 }
 0x246   : > { %v2067_v32 = vsel %vm8657_vm10, %v1939_v20, %v1875_v34  ;;  %v2069_v24 = vsel %vm8670_vm13, %v1941_v11, %v1877_v56  ;;  %v588_v27 = vshra.s32 %v8406_v13, 4  ;;  %v590_v50 = vshra.s32 %v8521_v10, 4 }
 0x247   : > { %v2131_v5 = vsel %vm8674_vm14, %v2067_v32, %v2003_v4  ;;  %v2133_v63 = vsel %vm8687_vm15, %v2069_v24, %v2005_v7  ;;  %v587_v28 = vshra.s32 %v8527_v9, 4  ;;  %v589_v46 = vshra.s32 %v8530_v19, 4 }
 0x248   : > { %v2262_v60 = vmul.f32 %v7175_v39, %v2131_v5  ;;  %v2264_v0 = vmul.f32 %v7175_v39, %v2133_v63  ;;  %v652_v21 = vand.u32 15, %v588_v27  ;;  %v654_v13 = vand.u32 15, %v590_v50 }
 0x249   : > { %v8767_v42 = vand.u32 15, %v587_v28  ;;  %v8769_v10 = vand.u32 15, %v589_v46  ;;  %v400_v33 = vunpack.c.0.s8 %v8757_v31  ;;  %v402_v3 = vunpack.c.1.s8 %v8757_v31 }
 0x24a   : > { %v2312_v57 = vpack.c.bf16 %v2264_v0, %v2262_v60  ;;  %v2359_v44 = vand.u32 1, %v652_v21  ;;  %v2361_v29 = vand.u32 1, %v654_v13  ;;  %v2487_v9 = vand.u32 2, %v652_v21 }
 0x24b   : > { %v2489_v14 = vand.u32 2, %v654_v13  ;;  %v2615_v19 = vand.u32 4, %v652_v21  ;;  %v2617_v35 = vand.u32 4, %v654_v13  ;;  %v2743_v54 = vand.u32 8, %v652_v21 }
 0x24c   : > { %4037 = vmatpush1.bf16.msra.mxu1 %v2312_v57  ;;  %vm8773_vm0 = vcmp.ne.s32.totalorder %v2359_v44, 0  ;;  %vm8777_vm1 = vcmp.ne.s32.totalorder %v2361_v29, 0  ;;  %vm8781_vm2 = vcmp.ne.s32.totalorder %v2487_v9, 0  ;;  %v2745_v61 = vand.u32 8, %v654_v13 }
 0x24d   : > { %vm8785_vm3 = vcmp.ne.s32.totalorder %v2489_v14, 0  ;;  %vm8789_vm4 = vcmp.ne.s32.totalorder %v2615_v19, 0  ;;  %vm8793_vm5 = vcmp.ne.s32.totalorder %v2617_v35, 0  ;;  %vm8797_vm6 = vcmp.ne.s32.totalorder %v2743_v54, 0 }
 0x24e   : > { %vm8801_vm7 = vcmp.ne.s32.totalorder %v2745_v61, 0  ;;  %v2871_v26 = vsel %vm8773_vm0, -0.6961928, %v4721_v38  ;;  %v2873_v22 = vsel %vm8777_vm1, -0.6961928, %v4721_v38  ;;  %v3063_v48 = vsel %vm8773_vm0, 0.0, %v4724_v49 }
 0x24f   : > { %v2935_v51 = vsel %vm8773_vm0, -0.3949175, %v4722_v41  ;;  %v2937_v1 = vsel %vm8777_vm1, -0.3949175, %v4722_v41  ;;  %v2999_v30 = vsel %vm8773_vm0, -0.18477343, %v4723_v45  ;;  %v8825_v8 = vcombine.high %v5258_v40, %v5258_v40 }
 0x250   : > { %v3001_v34 = vsel %vm8777_vm1, -0.18477343, %v4723_v45  ;;  %v3065_v56 = vsel %vm8777_vm1, 0.0, %v4724_v49  ;;  %v3127_v20 = vsel %vm8773_vm0, 0.1609302, %v4725_v52  ;;  %v3319_v11 = vsel %vm8773_vm0, 1.0, %v4728_v62 }
 0x251   : > { %v3129_v40 = vsel %vm8777_vm1, 0.1609302, %v4725_v52  ;;  %v3191_v4 = vsel %vm8773_vm0, 0.33791524, %v4726_v55  ;;  %v3193_v7 = vsel %vm8777_vm1, 0.33791524, %v4726_v55  ;;  %v3383_v32 = vsel %vm8781_vm2, %v2935_v51, %v2871_v26 }
 0x252   : > { %v3255_v24 = vsel %vm8773_vm0, 0.562617, %v4727_v58  ;;  %v3257_v27 = vsel %vm8777_vm1, 0.562617, %v4727_v58  ;;  %v3321_v50 = vsel %vm8777_vm1, 1.0, %v4728_v62  ;;  %v3385_v5 = vsel %vm8785_vm3, %v2937_v1, %v2873_v22 }
 0x253   : > { %v3447_v63 = vsel %vm8781_vm2, %v3063_v48, %v2999_v30  ;;  %v3449_v28 = vsel %vm8785_vm3, %v3065_v56, %v3001_v34  ;;  %v3511_v46 = vsel %vm8781_vm2, %v3191_v4, %v3127_v20  ;;  %v3513_v60 = vsel %vm8785_vm3, %v3193_v7, %v3129_v40 }
 0x254   : > { %v3575_v0 = vsel %vm8781_vm2, %v3319_v11, %v3255_v24  ;;  %v3577_v21 = vsel %vm8785_vm3, %v3321_v50, %v3257_v27  ;;  %v3639_v13 = vsel %vm8789_vm4, %v3447_v63, %v3383_v32  ;;  %v3641_v57 = vsel %vm8793_vm5, %v3449_v28, %v3385_v5 }
 0x255   : > { %v3703_v44 = vsel %vm8789_vm4, %v3575_v0, %v3511_v46  ;;  %v3705_v29 = vsel %vm8793_vm5, %v3577_v21, %v3513_v60  ;;  %v2358_v9 = vand.u32 1, %v8767_v42  ;;  %v2360_v14 = vand.u32 1, %v8769_v10 }
 0x256   : > { %v3767_v19 = vsel %vm8797_vm6, %v3703_v44, %v3639_v13  ;;  %v3769_v35 = vsel %vm8801_vm7, %v3705_v29, %v3641_v57  ;;  %v2486_v54 = vand.u32 2, %v8767_v42  ;;  %v2488_v39 = vand.u32 2, %v8769_v10 }
 0x257   : > { %v3896_v37 = vmul.f32 %v7244_v59, %v3767_v19  ;;  %v3898_v16 = vmul.f32 %v7244_v59, %v3769_v35  ;;  %vm8891_vm8 = vcmp.ne.s32.totalorder %v2358_v9, 0  ;;  %vm8895_vm9 = vcmp.ne.s32.totalorder %v2360_v14, 0  ;;  %v8994_v14 = vld [vmem:[%s5075_s11 + $0x40] sm:$0xff] }
 0x258   : > { %vm8899_vm10 = vcmp.ne.s32.totalorder %v2486_v54, 0  ;;  %vm8903_vm11 = vcmp.ne.s32.totalorder %v2488_v39, 0  ;;  %v2614_v53 = vand.u32 4, %v8767_v42  ;;  %v2616_v59 = vand.u32 4, %v8769_v10 }
 0x259   : > { %v3946_v25 = vpack.c.bf16 %v3898_v16, %v3896_v37  ;;  %v2742_v26 = vand.u32 8, %v8767_v42  ;;  %v2744_v22 = vand.u32 8, %v8769_v10  ;;  %v2870_v48 = vsel %vm8891_vm8, -0.6961928, %v4721_v38 }
 0x25a   : > { %vm8914_vm12 = vcmp.ne.s32.totalorder %v2614_v53, 0  ;;  %vm8918_vm13 = vcmp.ne.s32.totalorder %v2616_v59, 0  ;;  %v2872_v30 = vsel %vm8895_vm9, -0.6961928, %v4721_v38  ;;  %v2934_v42 = vsel %vm8891_vm8, -0.3949175, %v4722_v41 }
 0x25b   : > { %3988 = vmatprep.subr.bf16.mxu0 %v3946_v25  ;;  %vm8928_vm14 = vcmp.ne.s32.totalorder %v2742_v26, 0  ;;  %vm8932_vm15 = vcmp.ne.s32.totalorder %v2744_v22, 0  ;;  %v2936_v56 = vsel %vm8895_vm9, -0.3949175, %v4722_v41  ;;  %v2998_v20 = vsel %vm8891_vm8, -0.18477343, %v4723_v45 }
 0x25c   : > { %v3000_v11 = vsel %vm8895_vm9, -0.18477343, %v4723_v45  ;;  %v3062_v40 = vsel %vm8891_vm8, 0.0, %v4724_v49  ;;  %v3064_v4 = vsel %vm8895_vm9, 0.0, %v4724_v49  ;;  %v3126_v7 = vsel %vm8891_vm8, 0.1609302, %v4725_v52 }
 0x25d   : > { %v3128_v32 = vsel %vm8895_vm9, 0.1609302, %v4725_v52  ;;  %v3190_v24 = vsel %vm8891_vm8, 0.33791524, %v4726_v55  ;;  %v3192_v27 = vsel %vm8895_vm9, 0.33791524, %v4726_v55  ;;  %v3382_v50 = vsel %vm8899_vm10, %v2934_v42, %v2870_v48 }
 0x25e   : > { %v3254_v5 = vsel %vm8891_vm8, 0.562617, %v4727_v58  ;;  %v3256_v63 = vsel %vm8895_vm9, 0.562617, %v4727_v58  ;;  %v3318_v28 = vsel %vm8891_vm8, 1.0, %v4728_v62  ;;  %v3320_v46 = vsel %vm8895_vm9, 1.0, %v4728_v62 }
 0x25f   : > { %v3384_v60 = vsel %vm8903_vm11, %v2936_v56, %v2872_v30  ;;  %v3446_v0 = vsel %vm8899_vm10, %v3062_v40, %v2998_v20  ;;  %v3448_v21 = vsel %vm8903_vm11, %v3064_v4, %v3000_v11  ;;  %v3510_v13 = vsel %vm8899_vm10, %v3190_v24, %v3126_v7 }
 0x260   : > { %v3512_v57 = vsel %vm8903_vm11, %v3192_v27, %v3128_v32  ;;  %v3574_v44 = vsel %vm8899_vm10, %v3318_v28, %v3254_v5  ;;  %v3576_v29 = vsel %vm8903_vm11, %v3320_v46, %v3256_v63  ;;  %v3638_v9 = vsel %vm8914_vm12, %v3446_v0, %v3382_v50 }
 0x261   : > { %v3640_v19 = vsel %vm8918_vm13, %v3448_v21, %v3384_v60  ;;  %v3702_v35 = vsel %vm8914_vm12, %v3574_v44, %v3510_v13  ;;  %v3704_v54 = vsel %vm8918_vm13, %v3576_v29, %v3512_v57  ;;  %v9004_v39 = vand.u32 255, %v400_v33 }
 0x262   : > { %v3766_v37 = vsel %vm8928_vm14, %v3702_v35, %v3638_v9  ;;  %v3768_v16 = vsel %vm8932_vm15, %v3704_v54, %v3640_v19  ;;  %v9012_v61 = vand.u32 255, %v402_v3  ;;  %v9016_v12 = vrot.slane %v8825_v8, %v5127_v18 }
 0x263   : > { %v3895_v36 = vmul.f32 %v7426_v43, %v3766_v37  ;;  %v3897_v47 = vmul.f32 %v7426_v43, %v3768_v16  ;;  %v528_v33 = vand.u32 15, %v9004_v39  ;;  %v399_v53 = vunpack.c.0.s8 %v8994_v14 }
 0x264   : > { %v530_v59 = vand.u32 15, %v9012_v61  ;;  %v401_v25 = vunpack.c.1.s8 %v8994_v14  ;;  %v9026_v3 = vrot.slane %v8825_v8, %v5124_v17  ;;  %v592_v26 = vshra.s32 %v9004_v39, 4 }
 0x265   : > { %v3945_v22 = vpack.c.bf16 %v3897_v47, %v3895_v36  ;;  %v728_v48 = vand.u32 1, %v528_v33  ;;  %v856_v51 = vand.u32 2, %v528_v33  ;;  %v984_v1 = vand.u32 4, %v528_v33 }
 0x266   : > { %v730_v30 = vand.u32 1, %v530_v59  ;;  %v858_v43 = vand.u32 2, %v530_v59  ;;  %v986_v42 = vand.u32 4, %v530_v59  ;;  %v1112_v10 = vand.u32 8, %v528_v33 }
 0x267   : > { %3989 = vmatpush1.bf16.msra.mxu0 %v3945_v22  ;;  %vm9029_vm0 = vcmp.ne.s32.totalorder %v728_v48, 0  ;;  %vm9033_vm1 = vcmp.ne.s32.totalorder %v856_v51, 0  ;;  %vm9037_vm2 = vcmp.ne.s32.totalorder %v984_v1, 0  ;;  %v1114_v20 = vand.u32 8, %v530_v59 }
 0x268   : > { %vm9041_vm3 = vcmp.ne.s32.totalorder %v730_v30, 0  ;;  %vm9045_vm4 = vcmp.ne.s32.totalorder %v858_v43, 0  ;;  %vm9049_vm5 = vcmp.ne.s32.totalorder %v986_v42, 0  ;;  %vm9053_vm6 = vcmp.ne.s32.totalorder %v1112_v10, 0 }
 0x269   : > { %vm9057_vm7 = vcmp.ne.s32.totalorder %v1114_v20, 0  ;;  %v1240_v24 = vsel %vm9029_vm0, -0.6961928, %v4721_v38  ;;  %v1242_v27 = vsel %vm9041_vm3, -0.6961928, %v4721_v38  ;;  %v1432_v50 = vsel %vm9029_vm0, 0.0, %v4724_v49 }
 0x26a   : > { %v1304_v5 = vsel %vm9029_vm0, -0.3949175, %v4722_v41  ;;  %v1306_v63 = vsel %vm9041_vm3, -0.3949175, %v4722_v41  ;;  %v1368_v28 = vsel %vm9029_vm0, -0.18477343, %v4723_v45  ;;  %v9081_v46 = vcombine.high %v5506_v2, %v5506_v2 }
 0x26b   : > { %v1370_v60 = vsel %vm9041_vm3, -0.18477343, %v4723_v45  ;;  %v1434_v0 = vsel %vm9041_vm3, 0.0, %v4724_v49  ;;  %v1496_v21 = vsel %vm9029_vm0, 0.1609302, %v4725_v52  ;;  %v1688_v13 = vsel %vm9029_vm0, 1.0, %v4728_v62 }
 0x26c   : > { %v1498_v2 = vsel %vm9041_vm3, 0.1609302, %v4725_v52  ;;  %v1560_v57 = vsel %vm9029_vm0, 0.33791524, %v4726_v55  ;;  %v1562_v44 = vsel %vm9041_vm3, 0.33791524, %v4726_v55  ;;  %v1752_v29 = vsel %vm9033_vm1, %v1304_v5, %v1240_v24 }
 0x26d   : > { %v1624_v9 = vsel %vm9029_vm0, 0.562617, %v4727_v58  ;;  %v1626_v19 = vsel %vm9041_vm3, 0.562617, %v4727_v58  ;;  %v1690_v35 = vsel %vm9041_vm3, 1.0, %v4728_v62  ;;  %v1754_v54 = vsel %vm9045_vm4, %v1306_v63, %v1242_v27 }
 0x26e   : > { %v1816_v39 = vsel %vm9033_vm1, %v1432_v50, %v1368_v28  ;;  %v1818_v37 = vsel %vm9045_vm4, %v1434_v0, %v1370_v60  ;;  %v1880_v16 = vsel %vm9033_vm1, %v1560_v57, %v1496_v21  ;;  %v1882_v36 = vsel %vm9045_vm4, %v1562_v44, %v1498_v2 }
 0x26f   : > { %v1944_v47 = vsel %vm9033_vm1, %v1688_v13, %v1624_v9  ;;  %v1946_v33 = vsel %vm9045_vm4, %v1690_v35, %v1626_v19  ;;  %v2008_v59 = vsel %vm9037_vm2, %v1816_v39, %v1752_v29  ;;  %v2010_v22 = vsel %vm9049_vm5, %v1818_v37, %v1754_v54 }
 0x270   : > { %v2072_v48 = vsel %vm9037_vm2, %v1944_v47, %v1880_v16  ;;  %v2074_v51 = vsel %vm9049_vm5, %v1946_v33, %v1882_v36  ;;  %v9137_v1 = vand.u32 255, %v399_v53  ;;  %v9139_v30 = vand.u32 255, %v401_v25 }
 0x271   : > { %v2136_v43 = vsel %vm9053_vm6, %v2072_v48, %v2008_v59  ;;  %v2138_v42 = vsel %vm9057_vm7, %v2074_v51, %v2010_v22  ;;  %v594_v10 = vshra.s32 %v9012_v61, 4  ;;  %v9146_v34 = vand.u32 15, %v592_v26 }
 0x272   : > { %v2267_v56 = vmul.f32 %v9016_v12, %v2136_v43  ;;  %v2269_v8 = vmul.f32 %v9016_v12, %v2138_v42  ;;  %v527_v20 = vand.u32 15, %v9137_v1  ;;  %v529_v53 = vand.u32 15, %v9139_v30 }
 0x273   : > { %v9152_v25 = vand.u32 15, %v594_v10  ;;  %v2363_v11 = vand.u32 1, %v9146_v34  ;;  %v2491_v40 = vand.u32 2, %v9146_v34  ;;  %v2619_v4 = vand.u32 4, %v9146_v34 }
 0x274   : > { %v2315_v7 = vpack.c.bf16 %v2269_v8, %v2267_v56  ;;  %v727_v61 = vand.u32 1, %v527_v20  ;;  %v729_v26 = vand.u32 1, %v529_v53  ;;  %v855_v32 = vand.u32 2, %v527_v20 }
 0x275   : > { %v857_v24 = vand.u32 2, %v529_v53  ;;  %v983_v27 = vand.u32 4, %v527_v20  ;;  %v985_v50 = vand.u32 4, %v529_v53  ;;  %v1111_v5 = vand.u32 8, %v527_v20 }
 0x276   : > { %4038 = vmatprep.subr.bf16.mxu1 %v2315_v7  ;;  %vm9157_vm8 = vcmp.ne.s32.totalorder %v727_v61, 0  ;;  %vm9161_vm9 = vcmp.ne.s32.totalorder %v729_v26, 0  ;;  %vm9165_vm10 = vcmp.ne.s32.totalorder %v855_v32, 0  ;;  %v1113_v0 = vand.u32 8, %v529_v53 }
 0x277   : > { %vm9169_vm11 = vcmp.ne.s32.totalorder %v857_v24, 0  ;;  %vm9173_vm12 = vcmp.ne.s32.totalorder %v983_v27, 0  ;;  %vm9177_vm13 = vcmp.ne.s32.totalorder %v985_v50, 0  ;;  %vm9181_vm14 = vcmp.ne.s32.totalorder %v1111_v5, 0 }
 0x278   : > { %vm9185_vm15 = vcmp.ne.s32.totalorder %v1113_v0, 0  ;;  %v1239_v29 = vsel %vm9157_vm8, -0.6961928, %v4721_v38  ;;  %v1241_v9 = vsel %vm9161_vm9, -0.6961928, %v4721_v38  ;;  %v1431_v19 = vsel %vm9157_vm8, 0.0, %v4724_v49 }
 0x279   : > { %v1303_v35 = vsel %vm9157_vm8, -0.3949175, %v4722_v41  ;;  %v1305_v54 = vsel %vm9161_vm9, -0.3949175, %v4722_v41  ;;  %v1367_v39 = vsel %vm9157_vm8, -0.18477343, %v4723_v45  ;;  %v9209_v37 = vrot.slane %v9081_v46, %v5127_v18 }
 0x27a   : > { %v1369_v16 = vsel %vm9161_vm9, -0.18477343, %v4723_v45  ;;  %v1433_v36 = vsel %vm9161_vm9, 0.0, %v4724_v49  ;;  %v1495_v47 = vsel %vm9157_vm8, 0.1609302, %v4725_v52  ;;  %v1687_v33 = vsel %vm9157_vm8, 1.0, %v4728_v62 }
 0x27b   : > { %v1497_v59 = vsel %vm9161_vm9, 0.1609302, %v4725_v52  ;;  %v1559_v22 = vsel %vm9157_vm8, 0.33791524, %v4726_v55  ;;  %v1561_v48 = vsel %vm9161_vm9, 0.33791524, %v4726_v55  ;;  %v1751_v51 = vsel %vm9165_vm10, %v1303_v35, %v1239_v29 }
 0x27c   : > { %v1623_v43 = vsel %vm9157_vm8, 0.562617, %v4727_v58  ;;  %v1625_v42 = vsel %vm9161_vm9, 0.562617, %v4727_v58  ;;  %v1689_v10 = vsel %vm9161_vm9, 1.0, %v4728_v62  ;;  %v1753_v56 = vsel %vm9169_vm11, %v1305_v54, %v1241_v9 }
 0x27d   : > { %v1815_v8 = vsel %vm9165_vm10, %v1431_v19, %v1367_v39  ;;  %v1817_v20 = vsel %vm9169_vm11, %v1433_v36, %v1369_v16  ;;  %v1879_v53 = vsel %vm9165_vm10, %v1559_v22, %v1495_v47  ;;  %v1881_v7 = vsel %vm9169_vm11, %v1561_v48, %v1497_v59 }
 0x27e   : > { %v1943_v61 = vsel %vm9165_vm10, %v1687_v33, %v1623_v43  ;;  %v1945_v26 = vsel %vm9169_vm11, %v1689_v10, %v1625_v42  ;;  %v2007_v32 = vsel %vm9173_vm12, %v1815_v8, %v1751_v51  ;;  %v2009_v24 = vsel %vm9177_vm13, %v1817_v20, %v1753_v56 }
 0x27f   : > { %v2071_v27 = vsel %vm9173_vm12, %v1943_v61, %v1879_v53  ;;  %v2073_v50 = vsel %vm9177_vm13, %v1945_v26, %v1881_v7  ;;  %v2365_v5 = vand.u32 1, %v9152_v25  ;;  %vm9266_vm0 = vcmp.ne.s32.totalorder %v2363_v11, 0 }
 0x280   : > { %v2135_v28 = vsel %vm9181_vm14, %v2071_v27, %v2007_v32  ;;  %v2137_v60 = vsel %vm9185_vm15, %v2073_v50, %v2009_v24  ;;  %v2493_v0 = vand.u32 2, %v9152_v25  ;;  %vm9275_vm1 = vcmp.ne.s32.totalorder %v2491_v40, 0 }
 0x281   : > { %v2266_v13 = vmul.f32 %v9026_v3, %v2135_v28  ;;  %v2268_v2 = vmul.f32 %v9026_v3, %v2137_v60  ;;  %vm9281_vm2 = vcmp.ne.s32.totalorder %v2365_v5, 0  ;;  %v2621_v57 = vand.u32 4, %v9152_v25 }
 0x282   : > { %vm9286_vm3 = vcmp.ne.s32.totalorder %v2493_v0, 0  ;;  %vm9290_vm4 = vcmp.ne.s32.totalorder %v2619_v4, 0  ;;  %v2747_v40 = vand.u32 8, %v9146_v34  ;;  %v2749_v9 = vand.u32 8, %v9152_v25 }
 0x283   : > { %v2314_v19 = vpack.c.bf16 %v2268_v2, %v2266_v13  ;;  %vm9296_vm5 = vcmp.ne.s32.totalorder %v2621_v57, 0  ;;  %v2875_v54 = vsel %vm9266_vm0, -0.6961928, %v4721_v38  ;;  %v2877_v4 = vsel %vm9281_vm2, -0.6961928, %v4721_v38  ;;  %v9387_v2 = vld [vmem:[%s5075_s11 + $0x58] sm:$0xff] }
 0x284   : > { %vm9306_vm6 = vcmp.ne.s32.totalorder %v2747_v40, 0  ;;  %vm9310_vm7 = vcmp.ne.s32.totalorder %v2749_v9, 0  ;;  %v2939_v25 = vsel %vm9266_vm0, -0.3949175, %v4722_v41  ;;  %v2941_v16 = vsel %vm9281_vm2, -0.3949175, %v4722_v41 }
 0x285   : > { %4039 = vmatpush1.bf16.msra.mxu1 %v2314_v19  ;;  %v3003_v36 = vsel %vm9266_vm0, -0.18477343, %v4723_v45  ;;  %v3005_v47 = vsel %vm9281_vm2, -0.18477343, %v4723_v45  ;;  %v3067_v33 = vsel %vm9266_vm0, 0.0, %v4724_v49  ;;  %v3069_v59 = vsel %vm9281_vm2, 0.0, %v4724_v49 }
 0x286   : > { %v3131_v22 = vsel %vm9266_vm0, 0.1609302, %v4725_v52  ;;  %v3133_v48 = vsel %vm9281_vm2, 0.1609302, %v4725_v52  ;;  %v3195_v51 = vsel %vm9266_vm0, 0.33791524, %v4726_v55  ;;  %v3387_v43 = vsel %vm9275_vm1, %v2939_v25, %v2875_v54 }
 0x287   : > { %v3197_v42 = vsel %vm9281_vm2, 0.33791524, %v4726_v55  ;;  %v3259_v10 = vsel %vm9266_vm0, 0.562617, %v4727_v58  ;;  %v3261_v56 = vsel %vm9281_vm2, 0.562617, %v4727_v58  ;;  %v3389_v8 = vsel %vm9286_vm3, %v2941_v16, %v2877_v4 }
 0x288   : > { %v3323_v20 = vsel %vm9266_vm0, 1.0, %v4728_v62  ;;  %v3325_v53 = vsel %vm9281_vm2, 1.0, %v4728_v62  ;;  %v3451_v7 = vsel %vm9275_vm1, %v3067_v33, %v3003_v36  ;;  %v3453_v61 = vsel %vm9286_vm3, %v3069_v59, %v3005_v47 }
 0x289   : > { %v3515_v26 = vsel %vm9275_vm1, %v3195_v51, %v3131_v22  ;;  %v3517_v32 = vsel %vm9286_vm3, %v3197_v42, %v3133_v48  ;;  %v3579_v24 = vsel %vm9275_vm1, %v3323_v20, %v3259_v10  ;;  %v3581_v27 = vsel %vm9286_vm3, %v3325_v53, %v3261_v56 }
 0x28a   : > { %v3643_v50 = vsel %vm9290_vm4, %v3451_v7, %v3387_v43  ;;  %v3645_v5 = vsel %vm9296_vm5, %v3453_v61, %v3389_v8  ;;  %v3707_v63 = vsel %vm9290_vm4, %v3579_v24, %v3515_v26  ;;  %v3709_v28 = vsel %vm9296_vm5, %v3581_v27, %v3517_v32 }
 0x28b   : > { %v3771_v60 = vsel %vm9306_vm6, %v3707_v63, %v3643_v50  ;;  %v3773_v0 = vsel %vm9310_vm7, %v3709_v28, %v3645_v5  ;;  %v591_v21 = vshra.s32 %v9137_v1, 4  ;;  %v593_v13 = vshra.s32 %v9139_v30, 4 }
 0x28c   : > { %v3900_v11 = vmul.f32 %v9209_v37, %v3771_v60  ;;  %v3902_v57 = vmul.f32 %v9209_v37, %v3773_v0  ;;  %v9393_v29 = vrot.slane %v9081_v46, %v5124_v17  ;;  %v404_v44 = vunpack.c.2.s8 %v8757_v31 }
 0x28d   : > { %v655_v40 = vand.u32 15, %v591_v21  ;;  %v657_v9 = vand.u32 15, %v593_v13  ;;  %v406_v19 = vunpack.c.3.s8 %v8757_v31  ;;  %v403_v1 = vunpack.c.2.s8 %v8994_v14 }
 0x28e   : > { %v3948_v35 = vpack.c.bf16 %v3902_v57, %v3900_v11  ;;  %v9398_v30 = vand.u32 255, %v404_v44  ;;  %v405_v54 = vunpack.c.3.s8 %v8994_v14  ;;  %v408_v4 = vunpack.c.0.s8 %v9387_v2 }
 0x28f   : > { %v2362_v39 = vand.u32 1, %v655_v40  ;;  %v2364_v34 = vand.u32 1, %v657_v9  ;;  %v2490_v25 = vand.u32 2, %v655_v40  ;;  %v2492_v46 = vand.u32 2, %v657_v9 }
 0x290   : > { %3990 = vmatprep.subr.bf16.mxu0 %v3948_v35  ;;  %v2618_v16 = vand.u32 4, %v655_v40  ;;  %v2620_v36 = vand.u32 4, %v657_v9  ;;  %v2746_v47 = vand.u32 8, %v655_v40  ;;  %v2748_v33 = vand.u32 8, %v657_v9 }
 0x291   : > { %vm9402_vm8 = vcmp.ne.s32.totalorder %v2362_v39, 0  ;;  %vm9406_vm9 = vcmp.ne.s32.totalorder %v2364_v34, 0  ;;  %vm9410_vm10 = vcmp.ne.s32.totalorder %v2490_v25, 0  ;;  %vm9414_vm11 = vcmp.ne.s32.totalorder %v2492_v46, 0 }
 0x292   : > { %vm9418_vm12 = vcmp.ne.s32.totalorder %v2618_v16, 0  ;;  %vm9422_vm13 = vcmp.ne.s32.totalorder %v2620_v36, 0  ;;  %vm9426_vm14 = vcmp.ne.s32.totalorder %v2746_v47, 0  ;;  %vm9430_vm15 = vcmp.ne.s32.totalorder %v2748_v33, 0 }
 0x293   : > { %v2874_v10 = vsel %vm9402_vm8, -0.6961928, %v4721_v38  ;;  %v2876_v56 = vsel %vm9406_vm9, -0.6961928, %v4721_v38  ;;  %v2938_v8 = vsel %vm9402_vm8, -0.3949175, %v4722_v41  ;;  %v410_v20 = vunpack.c.1.s8 %v9387_v2 }
 0x294   : > { %v2940_v53 = vsel %vm9406_vm9, -0.3949175, %v4722_v41  ;;  %v3002_v7 = vsel %vm9402_vm8, -0.18477343, %v4723_v45  ;;  %v3004_v61 = vsel %vm9406_vm9, -0.18477343, %v4723_v45  ;;  %v3386_v26 = vsel %vm9410_vm10, %v2938_v8, %v2874_v10 }
 0x295   : > { %v3066_v32 = vsel %vm9402_vm8, 0.0, %v4724_v49  ;;  %v3068_v24 = vsel %vm9406_vm9, 0.0, %v4724_v49  ;;  %v3130_v27 = vsel %vm9402_vm8, 0.1609302, %v4725_v52  ;;  %v3132_v50 = vsel %vm9406_vm9, 0.1609302, %v4725_v52 }
 0x296   : > { %v3194_v5 = vsel %vm9402_vm8, 0.33791524, %v4726_v55  ;;  %v3196_v63 = vsel %vm9406_vm9, 0.33791524, %v4726_v55  ;;  %v3258_v28 = vsel %vm9402_vm8, 0.562617, %v4727_v58  ;;  %v3388_v60 = vsel %vm9414_vm11, %v2940_v53, %v2876_v56 }
 0x297   : > { %v3260_v0 = vsel %vm9406_vm9, 0.562617, %v4727_v58  ;;  %v3322_v21 = vsel %vm9402_vm8, 1.0, %v4728_v62  ;;  %v3324_v13 = vsel %vm9406_vm9, 1.0, %v4728_v62  ;;  %v3450_v11 = vsel %vm9410_vm10, %v3066_v32, %v3002_v7 }
 0x298   : > { %v3452_v57 = vsel %vm9414_vm11, %v3068_v24, %v3004_v61  ;;  %v3514_v44 = vsel %vm9410_vm10, %v3194_v5, %v3130_v27  ;;  %v3516_v40 = vsel %vm9414_vm11, %v3196_v63, %v3132_v50  ;;  %v3578_v9 = vsel %vm9410_vm10, %v3322_v21, %v3258_v28 }
 0x299   : > { %v3580_v35 = vsel %vm9414_vm11, %v3324_v13, %v3260_v0  ;;  %v3642_v39 = vsel %vm9418_vm12, %v3450_v11, %v3386_v26  ;;  %v3644_v34 = vsel %vm9422_vm13, %v3452_v57, %v3388_v60  ;;  %v3706_v25 = vsel %vm9418_vm12, %v3578_v9, %v3514_v44 }
 0x29a   : > { %v3708_v46 = vsel %vm9422_vm13, %v3580_v35, %v3516_v40  ;;  %v3770_v16 = vsel %vm9426_vm14, %v3706_v25, %v3642_v39  ;;  %v9509_v36 = vand.u32 255, %v406_v19  ;;  %v532_v47 = vand.u32 15, %v9398_v30 }
 0x29b   : > { %v3772_v33 = vsel %vm9430_vm15, %v3708_v46, %v3644_v34  ;;  %v3899_v31 = vmul.f32 %v9393_v29, %v3770_v16  ;;  %v9515_v59 = vand.u32 255, %v403_v1  ;;  %v9517_v14 = vand.u32 255, %v405_v54 }
 0x29c   : > { %v3901_v22 = vmul.f32 %v9393_v29, %v3772_v33  ;;  %v534_v48 = vand.u32 15, %v9509_v36  ;;  %v732_v51 = vand.u32 1, %v532_v47  ;;  %v860_v43 = vand.u32 2, %v532_v47 }
 0x29d   : > { %v988_v10 = vand.u32 4, %v532_v47  ;;  %v1116_v19 = vand.u32 8, %v532_v47  ;;  %v9522_v56 = vand.u32 15, %v9515_v59  ;;  %v9525_v42 = vand.u32 15, %v9517_v14 }
 0x29e   : > { %v3947_v8 = vpack.c.bf16 %v3901_v22, %v3899_v31  ;;  %v734_v53 = vand.u32 1, %v534_v48  ;;  %vm9527_vm0 = vcmp.ne.s32.totalorder %v732_v51, 0  ;;  %v862_v54 = vand.u32 2, %v534_v48 }
 0x29f   : > { %vm9531_vm1 = vcmp.ne.s32.totalorder %v860_v43, 0  ;;  %v990_v61 = vand.u32 4, %v534_v48  ;;  %vm9535_vm2 = vcmp.ne.s32.totalorder %v988_v10, 0  ;;  %v1118_v32 = vand.u32 8, %v534_v48 }
 0x2a0   : > { %3991 = vmatpush1.bf16.msra.mxu0 %v3947_v8  ;;  %vm9539_vm3 = vcmp.ne.s32.totalorder %v734_v53, 0  ;;  %vm9543_vm4 = vcmp.ne.s32.totalorder %v862_v54, 0  ;;  %vm9547_vm5 = vcmp.ne.s32.totalorder %v1116_v19, 0  ;;  %v1244_v5 = vsel %vm9527_vm0, -0.6961928, %v4721_v38 }
 0x2a1   : > { %vm9554_vm6 = vcmp.ne.s32.totalorder %v990_v61, 0  ;;  %vm9558_vm7 = vcmp.ne.s32.totalorder %v1118_v32, 0  ;;  %v1246_v60 = vsel %vm9539_vm3, -0.6961928, %v4721_v38  ;;  %v1308_v0 = vsel %vm9527_vm0, -0.3949175, %v4722_v41 }
 0x2a2   : > { %v1310_v21 = vsel %vm9539_vm3, -0.3949175, %v4722_v41  ;;  %v1372_v13 = vsel %vm9527_vm0, -0.18477343, %v4723_v45  ;;  %v1374_v11 = vsel %vm9539_vm3, -0.18477343, %v4723_v45  ;;  %v1756_v57 = vsel %vm9531_vm1, %v1308_v0, %v1244_v5 }
 0x2a3   : > { %v1436_v44 = vsel %vm9527_vm0, 0.0, %v4724_v49  ;;  %v1438_v40 = vsel %vm9539_vm3, 0.0, %v4724_v49  ;;  %v1500_v9 = vsel %vm9527_vm0, 0.1609302, %v4725_v52  ;;  %v1502_v35 = vsel %vm9539_vm3, 0.1609302, %v4725_v52 }
 0x2a4   : > { %v1564_v39 = vsel %vm9527_vm0, 0.33791524, %v4726_v55  ;;  %v1566_v34 = vsel %vm9539_vm3, 0.33791524, %v4726_v55  ;;  %v1628_v25 = vsel %vm9527_vm0, 0.562617, %v4727_v58  ;;  %v1758_v46 = vsel %vm9543_vm4, %v1310_v21, %v1246_v60 }
 0x2a5   : > { %v1630_v16 = vsel %vm9539_vm3, 0.562617, %v4727_v58  ;;  %v1692_v47 = vsel %vm9527_vm0, 1.0, %v4728_v62  ;;  %v1694_v33 = vsel %vm9539_vm3, 1.0, %v4728_v62  ;;  %v1820_v31 = vsel %vm9531_vm1, %v1436_v44, %v1372_v13 }
 0x2a6   : > { %v1822_v22 = vsel %vm9543_vm4, %v1438_v40, %v1374_v11  ;;  %v1884_v48 = vsel %vm9531_vm1, %v1564_v39, %v1500_v9  ;;  %v1886_v51 = vsel %vm9543_vm4, %v1566_v34, %v1502_v35  ;;  %v1948_v43 = vsel %vm9531_vm1, %v1692_v47, %v1628_v25 }
 0x2a7   : > { %v1950_v10 = vsel %vm9543_vm4, %v1694_v33, %v1630_v16  ;;  %v2012_v19 = vsel %vm9535_vm2, %v1820_v31, %v1756_v57  ;;  %v2014_v8 = vsel %vm9554_vm6, %v1822_v22, %v1758_v46  ;;  %v2076_v53 = vsel %vm9535_vm2, %v1948_v43, %v1884_v48 }
 0x2a8   : > { %v2078_v1 = vsel %vm9554_vm6, %v1950_v10, %v1886_v51  ;;  %v2140_v54 = vsel %vm9547_vm5, %v2076_v53, %v2012_v19  ;;  %v731_v7 = vand.u32 1, %v9522_v56  ;;  %v733_v61 = vand.u32 1, %v9525_v42 }
 0x2a9   : > { %v2142_v32 = vsel %vm9558_vm7, %v2078_v1, %v2014_v8  ;;  %v2271_v24 = vmul.f32 %v9016_v12, %v2140_v54  ;;  %v859_v27 = vand.u32 2, %v9522_v56  ;;  %v861_v26 = vand.u32 2, %v9525_v42 }
 0x2aa   : > { %v2273_v5 = vmul.f32 %v9016_v12, %v2142_v32  ;;  %vm9641_vm8 = vcmp.ne.s32.totalorder %v731_v7, 0  ;;  %vm9645_vm9 = vcmp.ne.s32.totalorder %v733_v61, 0  ;;  %v987_v60 = vand.u32 4, %v9522_v56 }
 0x2ab   : > { %vm9650_vm10 = vcmp.ne.s32.totalorder %v859_v27, 0  ;;  %vm9654_vm11 = vcmp.ne.s32.totalorder %v861_v26, 0  ;;  %v989_v21 = vand.u32 4, %v9525_v42  ;;  %v1115_v13 = vand.u32 8, %v9522_v56 }
 0x2ac   : > { %v2317_v11 = vpack.c.bf16 %v2273_v5, %v2271_v24  ;;  %vm9660_vm12 = vcmp.ne.s32.totalorder %v987_v60, 0  ;;  %v1117_v44 = vand.u32 8, %v9525_v42  ;;  %v1243_v40 = vsel %vm9641_vm8, -0.6961928, %v4721_v38 }
 0x2ad   : > { %vm9668_vm13 = vcmp.ne.s32.totalorder %v989_v21, 0  ;;  %vm9672_vm14 = vcmp.ne.s32.totalorder %v1115_v13, 0  ;;  %v1245_v56 = vsel %vm9645_vm9, -0.6961928, %v4721_v38  ;;  %v1307_v42 = vsel %vm9641_vm8, -0.3949175, %v4722_v41 }
 0x2ae   : > { %4040 = vmatprep.subr.bf16.mxu1 %v2317_v11  ;;  %vm9682_vm15 = vcmp.ne.s32.totalorder %v1117_v44, 0  ;;  %v1309_v34 = vsel %vm9645_vm9, -0.3949175, %v4722_v41  ;;  %v1371_v25 = vsel %vm9641_vm8, -0.18477343, %v4723_v45  ;;  %v1435_v46 = vsel %vm9641_vm8, 0.0, %v4724_v49 }
 0x2af   : > { %v1373_v16 = vsel %vm9645_vm9, -0.18477343, %v4723_v45  ;;  %v1437_v47 = vsel %vm9645_vm9, 0.0, %v4724_v49  ;;  %v1499_v33 = vsel %vm9641_vm8, 0.1609302, %v4725_v52  ;;  %v1691_v31 = vsel %vm9641_vm8, 1.0, %v4728_v62 }
 0x2b0   : > { %v1501_v22 = vsel %vm9645_vm9, 0.1609302, %v4725_v52  ;;  %v1563_v48 = vsel %vm9641_vm8, 0.33791524, %v4726_v55  ;;  %v1565_v51 = vsel %vm9645_vm9, 0.33791524, %v4726_v55  ;;  %v1755_v43 = vsel %vm9650_vm10, %v1307_v42, %v1243_v40 }
 0x2b1   : > { %v1627_v10 = vsel %vm9641_vm8, 0.562617, %v4727_v58  ;;  %v1629_v19 = vsel %vm9645_vm9, 0.562617, %v4727_v58  ;;  %v1693_v8 = vsel %vm9645_vm9, 1.0, %v4728_v62  ;;  %v1757_v53 = vsel %vm9654_vm11, %v1309_v34, %v1245_v56 }
 0x2b2   : > { %v1819_v1 = vsel %vm9650_vm10, %v1435_v46, %v1371_v25  ;;  %v1821_v54 = vsel %vm9654_vm11, %v1437_v47, %v1373_v16  ;;  %v1883_v7 = vsel %vm9650_vm10, %v1563_v48, %v1499_v33  ;;  %v1885_v61 = vsel %vm9654_vm11, %v1565_v51, %v1501_v22  ;;  %v9784_v33 = vld [vmem:[%s5075_s11 + $0x50] sm:$0xff] }
 0x2b3   : > { %v1947_v32 = vsel %vm9650_vm10, %v1691_v31, %v1627_v10  ;;  %v1949_v24 = vsel %vm9654_vm11, %v1693_v8, %v1629_v19  ;;  %v2011_v27 = vsel %vm9660_vm12, %v1819_v1, %v1755_v43  ;;  %v2013_v26 = vsel %vm9668_vm13, %v1821_v54, %v1757_v53 }
 0x2b4   : > { %v2075_v5 = vsel %vm9660_vm12, %v1947_v32, %v1883_v7  ;;  %v2077_v63 = vsel %vm9668_vm13, %v1949_v24, %v1885_v61  ;;  %v596_v50 = vshra.s32 %v9398_v30, 4  ;;  %v598_v60 = vshra.s32 %v9509_v36, 4 }
 0x2b5   : > { %v2139_v28 = vsel %vm9672_vm14, %v2075_v5, %v2011_v27  ;;  %v2141_v0 = vsel %vm9682_vm15, %v2077_v63, %v2013_v26  ;;  %v595_v21 = vshra.s32 %v9515_v59, 4  ;;  %v597_v13 = vshra.s32 %v9517_v14, 4 }
 0x2b6   : > { %v2270_v11 = vmul.f32 %v9026_v3, %v2139_v28  ;;  %v2272_v57 = vmul.f32 %v9026_v3, %v2141_v0  ;;  %v660_v44 = vand.u32 15, %v596_v50  ;;  %v662_v40 = vand.u32 15, %v598_v60 }
 0x2b7   : > { %v9759_v9 = vand.u32 15, %v595_v21  ;;  %v9761_v30 = vand.u32 15, %v597_v13  ;;  %v9765_v36 = vand.u32 255, %v408_v4  ;;  %v9769_v59 = vand.u32 255, %v410_v20 }
 0x2b8   : > { %v2316_v14 = vpack.c.bf16 %v2272_v57, %v2270_v11  ;;  %v2367_v35 = vand.u32 1, %v660_v44  ;;  %v2369_v56 = vand.u32 1, %v662_v40  ;;  %v2495_v42 = vand.u32 2, %v660_v44 }
 0x2b9   : > { %v2497_v39 = vand.u32 2, %v662_v40  ;;  %v2623_v34 = vand.u32 4, %v660_v44  ;;  %v2625_v25 = vand.u32 4, %v662_v40  ;;  %v2751_v46 = vand.u32 8, %v660_v44 }
 0x2ba   : > { %4041 = vmatpush1.bf16.msra.mxu1 %v2316_v14  ;;  %vm9771_vm0 = vcmp.ne.s32.totalorder %v2367_v35, 0  ;;  %vm9775_vm1 = vcmp.ne.s32.totalorder %v2369_v56, 0  ;;  %vm9779_vm2 = vcmp.ne.s32.totalorder %v2495_v42, 0  ;;  %v2753_v47 = vand.u32 8, %v662_v40 }
 0x2bb   : > { %vm9786_vm3 = vcmp.ne.s32.totalorder %v2497_v39, 0  ;;  %vm9790_vm4 = vcmp.ne.s32.totalorder %v2623_v34, 0  ;;  %vm9794_vm5 = vcmp.ne.s32.totalorder %v2625_v25, 0  ;;  %vm9798_vm6 = vcmp.ne.s32.totalorder %v2751_v46, 0 }
 0x2bc   : > { %vm9802_vm7 = vcmp.ne.s32.totalorder %v2753_v47, 0  ;;  %v2879_v10 = vsel %vm9771_vm0, -0.6961928, %v4721_v38  ;;  %v2881_v19 = vsel %vm9775_vm1, -0.6961928, %v4721_v38  ;;  %v3071_v8 = vsel %vm9771_vm0, 0.0, %v4724_v49 }
 0x2bd   : > { %v2943_v53 = vsel %vm9771_vm0, -0.3949175, %v4722_v41  ;;  %v2945_v1 = vsel %vm9775_vm1, -0.3949175, %v4722_v41  ;;  %v3007_v54 = vsel %vm9771_vm0, -0.18477343, %v4723_v45  ;;  %v407_v7 = vunpack.c.0.s8 %v9784_v33 }
 0x2be   : > { %v3009_v61 = vsel %vm9775_vm1, -0.18477343, %v4723_v45  ;;  %v3073_v32 = vsel %vm9775_vm1, 0.0, %v4724_v49  ;;  %v3135_v24 = vsel %vm9771_vm0, 0.1609302, %v4725_v52  ;;  %v3327_v27 = vsel %vm9771_vm0, 1.0, %v4728_v62 }
 0x2bf   : > { %v3137_v26 = vsel %vm9775_vm1, 0.1609302, %v4725_v52  ;;  %v3199_v5 = vsel %vm9771_vm0, 0.33791524, %v4726_v55  ;;  %v3201_v63 = vsel %vm9775_vm1, 0.33791524, %v4726_v55  ;;  %v3391_v50 = vsel %vm9779_vm2, %v2943_v53, %v2879_v10 }
 0x2c0   : > { %v3263_v60 = vsel %vm9771_vm0, 0.562617, %v4727_v58  ;;  %v3265_v28 = vsel %vm9775_vm1, 0.562617, %v4727_v58  ;;  %v3329_v0 = vsel %vm9775_vm1, 1.0, %v4728_v62  ;;  %v3393_v21 = vsel %vm9786_vm3, %v2945_v1, %v2881_v19 }
 0x2c1   : > { %v3455_v13 = vsel %vm9779_vm2, %v3071_v8, %v3007_v54  ;;  %v3457_v11 = vsel %vm9786_vm3, %v3073_v32, %v3009_v61  ;;  %v3519_v57 = vsel %vm9779_vm2, %v3199_v5, %v3135_v24  ;;  %v3521_v44 = vsel %vm9786_vm3, %v3201_v63, %v3137_v26 }
 0x2c2   : > { %v3583_v40 = vsel %vm9779_vm2, %v3327_v27, %v3263_v60  ;;  %v3585_v14 = vsel %vm9786_vm3, %v3329_v0, %v3265_v28  ;;  %v3647_v35 = vsel %vm9790_vm4, %v3455_v13, %v3391_v50  ;;  %v3649_v56 = vsel %vm9794_vm5, %v3457_v11, %v3393_v21 }
 0x2c3   : > { %v3711_v42 = vsel %vm9790_vm4, %v3583_v40, %v3519_v57  ;;  %v3713_v39 = vsel %vm9794_vm5, %v3585_v14, %v3521_v44  ;;  %v2366_v34 = vand.u32 1, %v9759_v9  ;;  %v2368_v25 = vand.u32 1, %v9761_v30 }
 0x2c4   : > { %v3775_v46 = vsel %vm9798_vm6, %v3711_v42, %v3647_v35  ;;  %v3777_v16 = vsel %vm9802_vm7, %v3713_v39, %v3649_v56  ;;  %v2494_v4 = vand.u32 2, %v9759_v9  ;;  %v2496_v20 = vand.u32 2, %v9761_v30 }
 0x2c5   : > { %v3904_v47 = vmul.f32 %v9209_v37, %v3775_v46  ;;  %v3906_v31 = vmul.f32 %v9209_v37, %v3777_v16  ;;  %vm9889_vm8 = vcmp.ne.s32.totalorder %v2366_v34, 0  ;;  %vm9893_vm9 = vcmp.ne.s32.totalorder %v2368_v25, 0 }
 0x2c6   : > { %vm9897_vm10 = vcmp.ne.s32.totalorder %v2494_v4, 0  ;;  %vm9901_vm11 = vcmp.ne.s32.totalorder %v2496_v20, 0  ;;  %v2622_v10 = vand.u32 4, %v9759_v9  ;;  %v2624_v19 = vand.u32 4, %v9761_v30 }
 0x2c7   : > { %v3950_v8 = vpack.c.bf16 %v3906_v31, %v3904_v47  ;;  %v2750_v53 = vand.u32 8, %v9759_v9  ;;  %v2752_v1 = vand.u32 8, %v9761_v30  ;;  %v2878_v54 = vsel %vm9889_vm8, -0.6961928, %v4721_v38 }
 0x2c8   : > { %vm9912_vm12 = vcmp.ne.s32.totalorder %v2622_v10, 0  ;;  %vm9916_vm13 = vcmp.ne.s32.totalorder %v2624_v19, 0  ;;  %v2880_v24 = vsel %vm9893_vm9, -0.6961928, %v4721_v38  ;;  %v2942_v9 = vsel %vm9889_vm8, -0.3949175, %v4722_v41 }
 0x2c9   : > { %3992 = vmatprep.subr.bf16.mxu0 %v3950_v8  ;;  %vm9926_vm14 = vcmp.ne.s32.totalorder %v2750_v53, 0  ;;  %vm9930_vm15 = vcmp.ne.s32.totalorder %v2752_v1, 0  ;;  %v2944_v26 = vsel %vm9893_vm9, -0.3949175, %v4722_v41  ;;  %v3006_v5 = vsel %vm9889_vm8, -0.18477343, %v4723_v45 }
 0x2ca   : > { %v3008_v63 = vsel %vm9893_vm9, -0.18477343, %v4723_v45  ;;  %v3070_v50 = vsel %vm9889_vm8, 0.0, %v4724_v49  ;;  %v3072_v60 = vsel %vm9893_vm9, 0.0, %v4724_v49  ;;  %v3134_v28 = vsel %vm9889_vm8, 0.1609302, %v4725_v52 }
 0x2cb   : > { %v3136_v0 = vsel %vm9893_vm9, 0.1609302, %v4725_v52  ;;  %v3198_v21 = vsel %vm9889_vm8, 0.33791524, %v4726_v55  ;;  %v3200_v13 = vsel %vm9893_vm9, 0.33791524, %v4726_v55  ;;  %v3390_v11 = vsel %vm9897_vm10, %v2942_v9, %v2878_v54 }
 0x2cc   : > { %v3262_v57 = vsel %vm9889_vm8, 0.562617, %v4727_v58  ;;  %v3264_v44 = vsel %vm9893_vm9, 0.562617, %v4727_v58  ;;  %v3326_v40 = vsel %vm9889_vm8, 1.0, %v4728_v62  ;;  %v3328_v14 = vsel %vm9893_vm9, 1.0, %v4728_v62 }
 0x2cd   : > { %v3392_v35 = vsel %vm9901_vm11, %v2944_v26, %v2880_v24  ;;  %v3454_v56 = vsel %vm9897_vm10, %v3070_v50, %v3006_v5  ;;  %v3456_v42 = vsel %vm9901_vm11, %v3072_v60, %v3008_v63  ;;  %v3518_v39 = vsel %vm9897_vm10, %v3198_v21, %v3134_v28 }
 0x2ce   : > { %v3520_v34 = vsel %vm9901_vm11, %v3200_v13, %v3136_v0  ;;  %v3582_v25 = vsel %vm9897_vm10, %v3326_v40, %v3262_v57  ;;  %v3584_v46 = vsel %vm9901_vm11, %v3328_v14, %v3264_v44  ;;  %v3646_v16 = vsel %vm9912_vm12, %v3454_v56, %v3390_v11 }
 0x2cf   : > { %v3648_v4 = vsel %vm9916_vm13, %v3456_v42, %v3392_v35  ;;  %v3710_v20 = vsel %vm9912_vm12, %v3582_v25, %v3518_v39  ;;  %v3712_v47 = vsel %vm9916_vm13, %v3584_v46, %v3520_v34  ;;  %v536_v31 = vand.u32 15, %v9765_v36 }
 0x2d0   : > { %v3774_v22 = vsel %vm9926_vm14, %v3710_v20, %v3646_v16  ;;  %v3776_v48 = vsel %vm9930_vm15, %v3712_v47, %v3648_v4  ;;  %v538_v51 = vand.u32 15, %v9769_v59  ;;  %v409_v43 = vunpack.c.1.s8 %v9784_v33 }
 0x2d1   : > { %v3903_v10 = vmul.f32 %v9393_v29, %v3774_v22  ;;  %v3905_v19 = vmul.f32 %v9393_v29, %v3776_v48  ;;  %v736_v8 = vand.u32 1, %v536_v31  ;;  %v864_v53 = vand.u32 2, %v536_v31 }
 0x2d2   : > { %v738_v1 = vand.u32 1, %v538_v51  ;;  %v866_v54 = vand.u32 2, %v538_v51  ;;  %v992_v61 = vand.u32 4, %v536_v31  ;;  %v994_v32 = vand.u32 4, %v538_v51 }
 0x2d3   : > { %v3949_v24 = vpack.c.bf16 %v3905_v19, %v3903_v10  ;;  %vm10006_vm0 = vcmp.ne.s32.totalorder %v736_v8, 0  ;;  %vm10010_vm1 = vcmp.ne.s32.totalorder %v864_v53, 0  ;;  %v1120_v27 = vand.u32 8, %v536_v31 }
 0x2d4   : > { %vm10014_vm2 = vcmp.ne.s32.totalorder %v738_v1, 0  ;;  %vm10018_vm3 = vcmp.ne.s32.totalorder %v866_v54, 0  ;;  %vm10022_vm4 = vcmp.ne.s32.totalorder %v992_v61, 0  ;;  %vm10026_vm5 = vcmp.ne.s32.totalorder %v994_v32, 0 }
 0x2d5   : > { %3993 = vmatpush1.bf16.msra.mxu0 %v3949_v24  ;;  %v1122_v60 = vand.u32 8, %v538_v51  ;;  %vm10030_vm6 = vcmp.ne.s32.totalorder %v1120_v27, 0  ;;  %v1248_v0 = vsel %vm10006_vm0, -0.6961928, %v4721_v38  ;;  %v1250_v21 = vsel %vm10014_vm2, -0.6961928, %v4721_v38 }
 0x2d6   : > { %v1312_v13 = vsel %vm10006_vm0, -0.3949175, %v4722_v41  ;;  %v1314_v11 = vsel %vm10014_vm2, -0.3949175, %v4722_v41  ;;  %v1376_v57 = vsel %vm10006_vm0, -0.18477343, %v4723_v45  ;;  %v412_v44 = vunpack.c.2.s8 %v9387_v2 }
 0x2d7   : > { %vm10050_vm7 = vcmp.ne.s32.totalorder %v1122_v60, 0  ;;  %v1378_v14 = vsel %vm10014_vm2, -0.18477343, %v4723_v45  ;;  %v1440_v35 = vsel %vm10006_vm0, 0.0, %v4724_v49  ;;  %v1442_v56 = vsel %vm10014_vm2, 0.0, %v4724_v49 }
 0x2d8   : > { %v1504_v42 = vsel %vm10006_vm0, 0.1609302, %v4725_v52  ;;  %v1506_v39 = vsel %vm10014_vm2, 0.1609302, %v4725_v52  ;;  %v1568_v34 = vsel %vm10006_vm0, 0.33791524, %v4726_v55  ;;  %v1760_v25 = vsel %vm10010_vm1, %v1312_v13, %v1248_v0 }
 0x2d9   : > { %v1570_v46 = vsel %vm10014_vm2, 0.33791524, %v4726_v55  ;;  %v1632_v16 = vsel %vm10006_vm0, 0.562617, %v4727_v58  ;;  %v1634_v4 = vsel %vm10014_vm2, 0.562617, %v4727_v58  ;;  %v1762_v20 = vsel %vm10018_vm3, %v1314_v11, %v1250_v21 }
 0x2da   : > { %v1696_v47 = vsel %vm10006_vm0, 1.0, %v4728_v62  ;;  %v1698_v31 = vsel %vm10014_vm2, 1.0, %v4728_v62  ;;  %v1824_v22 = vsel %vm10010_vm1, %v1440_v35, %v1376_v57  ;;  %v1826_v48 = vsel %vm10018_vm3, %v1442_v56, %v1378_v14 }
 0x2db   : > { %v1888_v51 = vsel %vm10010_vm1, %v1568_v34, %v1504_v42  ;;  %v1890_v10 = vsel %vm10018_vm3, %v1570_v46, %v1506_v39  ;;  %v1952_v19 = vsel %vm10010_vm1, %v1696_v47, %v1632_v16  ;;  %v1954_v8 = vsel %vm10018_vm3, %v1698_v31, %v1634_v4 }
 0x2dc   : > { %v2016_v53 = vsel %vm10022_vm4, %v1824_v22, %v1760_v25  ;;  %v2018_v1 = vsel %vm10026_vm5, %v1826_v48, %v1762_v20  ;;  %v2080_v54 = vsel %vm10022_vm4, %v1952_v19, %v1888_v51  ;;  %v2082_v61 = vsel %vm10026_vm5, %v1954_v8, %v1890_v10 }
 0x2dd   : > { %v2144_v32 = vsel %vm10030_vm6, %v2080_v54, %v2016_v53  ;;  %v2146_v24 = vsel %vm10050_vm7, %v2082_v61, %v2018_v1  ;;  %v10117_v9 = vand.u32 255, %v407_v7  ;;  %v10119_v30 = vand.u32 255, %v409_v43 }
 0x2de   : > { %v2275_v27 = vmul.f32 %v9016_v12, %v2144_v32  ;;  %v2277_v26 = vmul.f32 %v9016_v12, %v2146_v24  ;;  %v600_v5 = vshra.s32 %v9765_v36, 4  ;;  %v602_v63 = vshra.s32 %v9769_v59, 4 }
 0x2df   : > { %v535_v50 = vand.u32 15, %v10117_v9  ;;  %v537_v60 = vand.u32 15, %v10119_v30  ;;  %v599_v28 = vshra.s32 %v10117_v9, 4  ;;  %v601_v0 = vshra.s32 %v10119_v30, 4 }
 0x2e0   : > { %v2319_v7 = vpack.c.bf16 %v2277_v26, %v2275_v27  ;;  %v10129_v21 = vand.u32 15, %v600_v5  ;;  %v10131_v43 = vand.u32 15, %v602_v63  ;;  %v414_v13 = vunpack.c.3.s8 %v9387_v2 }
 0x2e1   : > { %v735_v11 = vand.u32 1, %v535_v50  ;;  %v737_v57 = vand.u32 1, %v537_v60  ;;  %v863_v36 = vand.u32 2, %v535_v50  ;;  %v865_v40 = vand.u32 2, %v537_v60 }
 0x2e2   : > { %4042 = vmatprep.subr.bf16.mxu1 %v2319_v7  ;;  %v991_v59 = vand.u32 4, %v535_v50  ;;  %v993_v14 = vand.u32 4, %v537_v60  ;;  %v1119_v35 = vand.u32 8, %v535_v50  ;;  %v1121_v56 = vand.u32 8, %v537_v60 }
 0x2e3   : > { %vm10134_vm8 = vcmp.ne.s32.totalorder %v735_v11, 0  ;;  %vm10138_vm9 = vcmp.ne.s32.totalorder %v737_v57, 0  ;;  %vm10142_vm10 = vcmp.ne.s32.totalorder %v863_v36, 0  ;;  %vm10146_vm11 = vcmp.ne.s32.totalorder %v865_v40, 0 }
 0x2e4   : > { %vm10150_vm12 = vcmp.ne.s32.totalorder %v991_v59, 0  ;;  %vm10154_vm13 = vcmp.ne.s32.totalorder %v993_v14, 0  ;;  %vm10158_vm14 = vcmp.ne.s32.totalorder %v1119_v35, 0  ;;  %vm10162_vm15 = vcmp.ne.s32.totalorder %v1121_v56, 0 }
 0x2e5   : > { %v1247_v47 = vsel %vm10134_vm8, -0.6961928, %v4721_v38  ;;  %v1249_v31 = vsel %vm10138_vm9, -0.6961928, %v4721_v38  ;;  %v1311_v22 = vsel %vm10134_vm8, -0.3949175, %v4722_v41  ;;  %v411_v48 = vunpack.c.2.s8 %v9784_v33 }
 0x2e6   : > { %v1313_v51 = vsel %vm10138_vm9, -0.3949175, %v4722_v41  ;;  %v1375_v10 = vsel %vm10134_vm8, -0.18477343, %v4723_v45  ;;  %v1377_v19 = vsel %vm10138_vm9, -0.18477343, %v4723_v45  ;;  %v1759_v8 = vsel %vm10142_vm10, %v1311_v22, %v1247_v47 }
 0x2e7   : > { %v1439_v53 = vsel %vm10134_vm8, 0.0, %v4724_v49  ;;  %v1441_v1 = vsel %vm10138_vm9, 0.0, %v4724_v49  ;;  %v1503_v54 = vsel %vm10134_vm8, 0.1609302, %v4725_v52  ;;  %v1505_v61 = vsel %vm10138_vm9, 0.1609302, %v4725_v52 }
 0x2e8   : > { %v1567_v32 = vsel %vm10134_vm8, 0.33791524, %v4726_v55  ;;  %v1569_v24 = vsel %vm10138_vm9, 0.33791524, %v4726_v55  ;;  %v1631_v27 = vsel %vm10134_vm8, 0.562617, %v4727_v58  ;;  %v1761_v26 = vsel %vm10146_vm11, %v1313_v51, %v1249_v31 }
 0x2e9   : > { %v1633_v5 = vsel %vm10138_vm9, 0.562617, %v4727_v58  ;;  %v1695_v63 = vsel %vm10134_vm8, 1.0, %v4728_v62  ;;  %v1697_v50 = vsel %vm10138_vm9, 1.0, %v4728_v62  ;;  %v1823_v60 = vsel %vm10142_vm10, %v1439_v53, %v1375_v10 }
 0x2ea   : > { %v1825_v7 = vsel %vm10146_vm11, %v1441_v1, %v1377_v19  ;;  %v1887_v11 = vsel %vm10142_vm10, %v1567_v32, %v1503_v54  ;;  %v1889_v57 = vsel %vm10146_vm11, %v1569_v24, %v1505_v61  ;;  %v1951_v36 = vsel %vm10142_vm10, %v1695_v63, %v1631_v27 }
 0x2eb   : > { %v1953_v40 = vsel %vm10146_vm11, %v1697_v50, %v1633_v5  ;;  %v2015_v59 = vsel %vm10150_vm12, %v1823_v60, %v1759_v8  ;;  %v2017_v14 = vsel %vm10154_vm13, %v1825_v7, %v1761_v26  ;;  %v2079_v35 = vsel %vm10150_vm12, %v1951_v36, %v1887_v11 }
 0x2ec   : > { %v2081_v56 = vsel %vm10154_vm13, %v1953_v40, %v1889_v57  ;;  %v2143_v42 = vsel %vm10158_vm14, %v2079_v35, %v2015_v59  ;;  %v2371_v39 = vand.u32 1, %v10129_v21  ;;  %v2373_v34 = vand.u32 1, %v10131_v43 }
 0x2ed   : > { %v2145_v25 = vsel %vm10162_vm15, %v2081_v56, %v2017_v14  ;;  %v2274_v47 = vmul.f32 %v9026_v3, %v2143_v42  ;;  %v2499_v31 = vand.u32 2, %v10129_v21  ;;  %v2501_v46 = vand.u32 2, %v10131_v43 }
 0x2ee   : > { %v2276_v22 = vmul.f32 %v9026_v3, %v2145_v25  ;;  %vm10249_vm0 = vcmp.ne.s32.totalorder %v2371_v39, 0  ;;  %vm10253_vm1 = vcmp.ne.s32.totalorder %v2373_v34, 0  ;;  %v2627_v51 = vand.u32 4, %v10129_v21 }
 0x2ef   : > { %vm10258_vm2 = vcmp.ne.s32.totalorder %v2499_v31, 0  ;;  %vm10262_vm3 = vcmp.ne.s32.totalorder %v2501_v46, 0  ;;  %v2629_v19 = vand.u32 4, %v10131_v43  ;;  %v2755_v8 = vand.u32 8, %v10129_v21 }
 0x2f0   : > { %v2318_v53 = vpack.c.bf16 %v2276_v22, %v2274_v47  ;;  %vm10268_vm4 = vcmp.ne.s32.totalorder %v2627_v51, 0  ;;  %v2757_v54 = vand.u32 8, %v10131_v43  ;;  %v2883_v61 = vsel %vm10249_vm0, -0.6961928, %v4721_v38 }
 0x2f1   : > { %vm10276_vm5 = vcmp.ne.s32.totalorder %v2629_v19, 0  ;;  %vm10280_vm6 = vcmp.ne.s32.totalorder %v2755_v8, 0  ;;  %v2885_v21 = vsel %vm10253_vm1, -0.6961928, %v4721_v38  ;;  %v2947_v43 = vsel %vm10249_vm0, -0.3949175, %v4722_v41 }
 0x2f2   : > { %4043 = vmatpush1.bf16.msra.mxu1 %v2318_v53  ;;  %vm10290_vm7 = vcmp.ne.s32.totalorder %v2757_v54, 0  ;;  %v2949_v26 = vsel %vm10253_vm1, -0.3949175, %v4722_v41  ;;  %v3011_v5 = vsel %vm10249_vm0, -0.18477343, %v4723_v45  ;;  %v3075_v63 = vsel %vm10249_vm0, 0.0, %v4724_v49 }
 0x2f3   : > { %v3013_v50 = vsel %vm10253_vm1, -0.18477343, %v4723_v45  ;;  %v3077_v60 = vsel %vm10253_vm1, 0.0, %v4724_v49  ;;  %v3139_v7 = vsel %vm10249_vm0, 0.1609302, %v4725_v52  ;;  %v3331_v11 = vsel %vm10249_vm0, 1.0, %v4728_v62 }
 0x2f4   : > { %v3141_v57 = vsel %vm10253_vm1, 0.1609302, %v4725_v52  ;;  %v3203_v36 = vsel %vm10249_vm0, 0.33791524, %v4726_v55  ;;  %v3205_v40 = vsel %vm10253_vm1, 0.33791524, %v4726_v55  ;;  %v3395_v59 = vsel %vm10258_vm2, %v2947_v43, %v2883_v61 }
 0x2f5   : > { %v3267_v14 = vsel %vm10249_vm0, 0.562617, %v4727_v58  ;;  %v3269_v35 = vsel %vm10253_vm1, 0.562617, %v4727_v58  ;;  %v3333_v56 = vsel %vm10253_vm1, 1.0, %v4728_v62  ;;  %v3397_v42 = vsel %vm10262_vm3, %v2949_v26, %v2885_v21 }
 0x2f6   : > { %v3459_v39 = vsel %vm10258_vm2, %v3075_v63, %v3011_v5  ;;  %v3461_v34 = vsel %vm10262_vm3, %v3077_v60, %v3013_v50  ;;  %v3523_v25 = vsel %vm10258_vm2, %v3203_v36, %v3139_v7  ;;  %v3525_v47 = vsel %vm10262_vm3, %v3205_v40, %v3141_v57 }
 0x2f7   : > { %v3587_v31 = vsel %vm10258_vm2, %v3331_v11, %v3267_v14  ;;  %v3589_v46 = vsel %vm10262_vm3, %v3333_v56, %v3269_v35  ;;  %v3651_v22 = vsel %vm10268_vm4, %v3459_v39, %v3395_v59  ;;  %v3653_v16 = vsel %vm10276_vm5, %v3461_v34, %v3397_v42 }
 0x2f8   : > { %v3715_v4 = vsel %vm10268_vm4, %v3587_v31, %v3523_v25  ;;  %v3717_v51 = vsel %vm10276_vm5, %v3589_v46, %v3525_v47  ;;  %v663_v19 = vand.u32 15, %v599_v28  ;;  %v665_v20 = vand.u32 15, %v601_v0 }
 0x2f9   : > { %v3779_v10 = vsel %vm10280_vm6, %v3715_v4, %v3651_v22  ;;  %v3781_v8 = vsel %vm10290_vm7, %v3717_v51, %v3653_v16  ;;  %v10367_v53 = vand.u32 255, %v412_v44  ;;  %v10371_v1 = vand.u32 255, %v414_v13 }
 0x2fa   : > { %v3908_v9 = vmul.f32 %v9209_v37, %v3779_v10  ;;  %v3910_v28 = vmul.f32 %v9209_v37, %v3781_v8  ;;  %v2370_v30 = vand.u32 1, %v663_v19  ;;  %v2372_v0 = vand.u32 1, %v665_v20 }
 0x2fb   : > { %v2498_v54 = vand.u32 2, %v663_v19  ;;  %v2500_v61 = vand.u32 2, %v665_v20  ;;  %v2626_v32 = vand.u32 4, %v663_v19  ;;  %v2628_v24 = vand.u32 4, %v665_v20 }
 0x2fc   : > { %v3952_v21 = vpack.c.bf16 %v3910_v28, %v3908_v9  ;;  %vm10375_vm8 = vcmp.ne.s32.totalorder %v2370_v30, 0  ;;  %vm10379_vm9 = vcmp.ne.s32.totalorder %v2372_v0, 0  ;;  %v2754_v2 = vand.u32 8, %v663_v19 }
 0x2fd   : > { %vm10383_vm10 = vcmp.ne.s32.totalorder %v2498_v54, 0  ;;  %vm10387_vm11 = vcmp.ne.s32.totalorder %v2500_v61, 0  ;;  %vm10391_vm12 = vcmp.ne.s32.totalorder %v2626_v32, 0  ;;  %vm10395_vm13 = vcmp.ne.s32.totalorder %v2628_v24, 0 }
 0x2fe   : > { %3994 = vmatprep.subr.bf16.mxu0 %v3952_v21  ;;  %v2756_v63 = vand.u32 8, %v665_v20  ;;  %vm10399_vm14 = vcmp.ne.s32.totalorder %v2754_v2, 0  ;;  %v2882_v60 = vsel %vm10375_vm8, -0.6961928, %v4721_v38  ;;  %v2884_v7 = vsel %vm10379_vm9, -0.6961928, %v4721_v38 }
 0x2ff   : > { %v2946_v11 = vsel %vm10375_vm8, -0.3949175, %v4722_v41  ;;  %v2948_v57 = vsel %vm10379_vm9, -0.3949175, %v4722_v41  ;;  %v3010_v36 = vsel %vm10375_vm8, -0.18477343, %v4723_v45  ;;  %v413_v40 = vunpack.c.3.s8 %v9784_v33 }
 0x300   : > { %vm10419_vm15 = vcmp.ne.s32.totalorder %v2756_v63, 0  ;;  %v3012_v14 = vsel %vm10379_vm9, -0.18477343, %v4723_v45  ;;  %v3074_v35 = vsel %vm10375_vm8, 0.0, %v4724_v49  ;;  %v3076_v56 = vsel %vm10379_vm9, 0.0, %v4724_v49 }
 0x301   : > { %v3138_v42 = vsel %vm10375_vm8, 0.1609302, %v4725_v52  ;;  %v3140_v39 = vsel %vm10379_vm9, 0.1609302, %v4725_v52  ;;  %v3202_v34 = vsel %vm10375_vm8, 0.33791524, %v4726_v55  ;;  %v3394_v25 = vsel %vm10383_vm10, %v2946_v11, %v2882_v60 }
 0x302   : > { %v3204_v47 = vsel %vm10379_vm9, 0.33791524, %v4726_v55  ;;  %v3266_v31 = vsel %vm10375_vm8, 0.562617, %v4727_v58  ;;  %v3268_v46 = vsel %vm10379_vm9, 0.562617, %v4727_v58  ;;  %v3396_v22 = vsel %vm10387_vm11, %v2948_v57, %v2884_v7 }
 0x303   : > { %v3330_v16 = vsel %vm10375_vm8, 1.0, %v4728_v62  ;;  %v3332_v4 = vsel %vm10379_vm9, 1.0, %v4728_v62  ;;  %v3458_v51 = vsel %vm10383_vm10, %v3074_v35, %v3010_v36  ;;  %v3460_v19 = vsel %vm10387_vm11, %v3076_v56, %v3012_v14  ;;  %v10495_v57 = vld [vmem:[%s5075_s11 + $0x68] sm:$0xff] }
 0x304   : > { %v3522_v20 = vsel %vm10383_vm10, %v3202_v34, %v3138_v42  ;;  %v3524_v10 = vsel %vm10387_vm11, %v3204_v47, %v3140_v39  ;;  %v3586_v8 = vsel %vm10383_vm10, %v3330_v16, %v3266_v31  ;;  %v3588_v9 = vsel %vm10387_vm11, %v3332_v4, %v3268_v46 }
 0x305   : > { %v3650_v28 = vsel %vm10391_vm12, %v3458_v51, %v3394_v25  ;;  %v3652_v30 = vsel %vm10395_vm13, %v3460_v19, %v3396_v22  ;;  %v3714_v0 = vsel %vm10391_vm12, %v3586_v8, %v3522_v20  ;;  %v3716_v54 = vsel %vm10395_vm13, %v3588_v9, %v3524_v10 }
 0x306   : > { %v3778_v61 = vsel %vm10399_vm14, %v3714_v0, %v3650_v28  ;;  %v3780_v32 = vsel %vm10419_vm15, %v3716_v54, %v3652_v30  ;;  %v540_v24 = vand.u32 15, %v10367_v53  ;;  %v542_v21 = vand.u32 15, %v10371_v1 }
 0x307   : > { %v3907_v43 = vmul.f32 %v9393_v29, %v3778_v61  ;;  %v3909_v44 = vmul.f32 %v9393_v29, %v3780_v32  ;;  %v10490_v2 = vand.u32 255, %v411_v48  ;;  %v10492_v13 = vand.u32 255, %v413_v40 }
 0x308   : > { %v740_v27 = vand.u32 1, %v540_v24  ;;  %v742_v26 = vand.u32 1, %v542_v21  ;;  %v868_v5 = vand.u32 2, %v540_v24  ;;  %v870_v63 = vand.u32 2, %v542_v21 }
 0x309   : > { %v3951_v50 = vpack.c.bf16 %v3909_v44, %v3907_v43  ;;  %v996_v60 = vand.u32 4, %v540_v24  ;;  %v998_v7 = vand.u32 4, %v542_v21  ;;  %v1124_v11 = vand.u32 8, %v540_v24 }
 0x30a   : > { %vm10497_vm0 = vcmp.ne.s32.totalorder %v740_v27, 0  ;;  %vm10501_vm1 = vcmp.ne.s32.totalorder %v742_v26, 0  ;;  %vm10505_vm2 = vcmp.ne.s32.totalorder %v868_v5, 0  ;;  %vm10509_vm3 = vcmp.ne.s32.totalorder %v870_v63, 0 }
 0x30b   : > { %3995 = vmatpush1.bf16.msra.mxu0 %v3951_v50  ;;  %vm10513_vm4 = vcmp.ne.s32.totalorder %v996_v60, 0  ;;  %vm10517_vm5 = vcmp.ne.s32.totalorder %v998_v7, 0  ;;  %v1126_v35 = vand.u32 8, %v542_v21  ;;  %vm10521_vm6 = vcmp.ne.s32.totalorder %v1124_v11, 0 }
 0x30c   : > { %v1252_v42 = vsel %vm10497_vm0, -0.6961928, %v4721_v38  ;;  %v1254_v39 = vsel %vm10501_vm1, -0.6961928, %v4721_v38  ;;  %v1316_v34 = vsel %vm10497_vm0, -0.3949175, %v4722_v41  ;;  %v416_v25 = vunpack.c.0.s8 %v10495_v57 }
 0x30d   : > { %vm10535_vm7 = vcmp.ne.s32.totalorder %v1126_v35, 0  ;;  %v1318_v31 = vsel %vm10501_vm1, -0.3949175, %v4722_v41  ;;  %v1380_v46 = vsel %vm10497_vm0, -0.18477343, %v4723_v45  ;;  %v1444_v22 = vsel %vm10497_vm0, 0.0, %v4724_v49 }
 0x30e   : > { %v1382_v16 = vsel %vm10501_vm1, -0.18477343, %v4723_v45  ;;  %v1446_v4 = vsel %vm10501_vm1, 0.0, %v4724_v49  ;;  %v1508_v51 = vsel %vm10497_vm0, 0.1609302, %v4725_v52  ;;  %v1700_v19 = vsel %vm10497_vm0, 1.0, %v4728_v62 }
 0x30f   : > { %v1510_v20 = vsel %vm10501_vm1, 0.1609302, %v4725_v52  ;;  %v1572_v10 = vsel %vm10497_vm0, 0.33791524, %v4726_v55  ;;  %v1574_v8 = vsel %vm10501_vm1, 0.33791524, %v4726_v55  ;;  %v1764_v9 = vsel %vm10505_vm2, %v1316_v34, %v1252_v42 }
 0x310   : > { %v1636_v28 = vsel %vm10497_vm0, 0.562617, %v4727_v58  ;;  %v1638_v30 = vsel %vm10501_vm1, 0.562617, %v4727_v58  ;;  %v1702_v0 = vsel %vm10501_vm1, 1.0, %v4728_v62  ;;  %v1766_v54 = vsel %vm10509_vm3, %v1318_v31, %v1254_v39 }
 0x311   : > { %v1828_v61 = vsel %vm10505_vm2, %v1444_v22, %v1380_v46  ;;  %v1830_v32 = vsel %vm10509_vm3, %v1446_v4, %v1382_v16  ;;  %v1892_v24 = vsel %vm10505_vm2, %v1572_v10, %v1508_v51  ;;  %v1894_v21 = vsel %vm10509_vm3, %v1574_v8, %v1510_v20 }
 0x312   : > { %v1956_v43 = vsel %vm10505_vm2, %v1700_v19, %v1636_v28  ;;  %v1958_v44 = vsel %vm10509_vm3, %v1702_v0, %v1638_v30  ;;  %v2020_v27 = vsel %vm10513_vm4, %v1828_v61, %v1764_v9  ;;  %v2022_v26 = vsel %vm10517_vm5, %v1830_v32, %v1766_v54 }
 0x313   : > { %v2084_v5 = vsel %vm10513_vm4, %v1956_v43, %v1892_v24  ;;  %v2086_v63 = vsel %vm10517_vm5, %v1958_v44, %v1894_v21  ;;  %v539_v50 = vand.u32 15, %v10490_v2  ;;  %v541_v60 = vand.u32 15, %v10492_v13 }
 0x314   : > { %v2148_v7 = vsel %vm10521_vm6, %v2084_v5, %v2020_v27  ;;  %v2150_v11 = vsel %vm10535_vm7, %v2086_v63, %v2022_v26  ;;  %v604_v36 = vshra.s32 %v10367_v53, 4  ;;  %v606_v33 = vshra.s32 %v10371_v1, 4 }
 0x315   : > { %v2279_v48 = vmul.f32 %v9016_v12, %v2148_v7  ;;  %v2281_v40 = vmul.f32 %v9016_v12, %v2150_v11  ;;  %v739_v59 = vand.u32 1, %v539_v50  ;;  %v741_v14 = vand.u32 1, %v541_v60 }
 0x316   : > { %v867_v35 = vand.u32 2, %v539_v50  ;;  %v869_v42 = vand.u32 2, %v541_v60  ;;  %v995_v39 = vand.u32 4, %v539_v50  ;;  %v997_v34 = vand.u32 4, %v541_v60 }
 0x317   : > { %v2321_v31 = vpack.c.bf16 %v2281_v40, %v2279_v48  ;;  %vm10612_vm8 = vcmp.ne.s32.totalorder %v739_v59, 0  ;;  %vm10616_vm9 = vcmp.ne.s32.totalorder %v741_v14, 0  ;;  %v1123_v53 = vand.u32 8, %v539_v50 }
 0x318   : > { %vm10620_vm10 = vcmp.ne.s32.totalorder %v867_v35, 0  ;;  %vm10624_vm11 = vcmp.ne.s32.totalorder %v869_v42, 0  ;;  %vm10628_vm12 = vcmp.ne.s32.totalorder %v995_v39, 0  ;;  %vm10632_vm13 = vcmp.ne.s32.totalorder %v997_v34, 0 }
 0x319   : > { %4044 = vmatprep.subr.bf16.mxu1 %v2321_v31  ;;  %v1125_v16 = vand.u32 8, %v541_v60  ;;  %vm10636_vm14 = vcmp.ne.s32.totalorder %v1123_v53, 0  ;;  %v1251_v51 = vsel %vm10612_vm8, -0.6961928, %v4721_v38  ;;  %v1253_v19 = vsel %vm10616_vm9, -0.6961928, %v4721_v38 }
 0x31a   : > { %v1315_v20 = vsel %vm10612_vm8, -0.3949175, %v4722_v41  ;;  %v1317_v10 = vsel %vm10616_vm9, -0.3949175, %v4722_v41  ;;  %v1379_v8 = vsel %vm10612_vm8, -0.18477343, %v4723_v45  ;;  %v418_v9 = vunpack.c.1.s8 %v10495_v57 }
 0x31b   : > { %vm10656_vm15 = vcmp.ne.s32.totalorder %v1125_v16, 0  ;;  %v1381_v30 = vsel %vm10616_vm9, -0.18477343, %v4723_v45  ;;  %v1443_v0 = vsel %vm10612_vm8, 0.0, %v4724_v49  ;;  %v1445_v54 = vsel %vm10616_vm9, 0.0, %v4724_v49 }
 0x31c   : > { %v1507_v61 = vsel %vm10612_vm8, 0.1609302, %v4725_v52  ;;  %v1509_v32 = vsel %vm10616_vm9, 0.1609302, %v4725_v52  ;;  %v1571_v24 = vsel %vm10612_vm8, 0.33791524, %v4726_v55  ;;  %v1763_v21 = vsel %vm10620_vm10, %v1315_v20, %v1251_v51 }
 0x31d   : > { %v1573_v43 = vsel %vm10616_vm9, 0.33791524, %v4726_v55  ;;  %v1635_v44 = vsel %vm10612_vm8, 0.562617, %v4727_v58  ;;  %v1637_v27 = vsel %vm10616_vm9, 0.562617, %v4727_v58  ;;  %v1765_v26 = vsel %vm10624_vm11, %v1317_v10, %v1253_v19 }
 0x31e   : > { %v1699_v5 = vsel %vm10612_vm8, 1.0, %v4728_v62  ;;  %v1701_v63 = vsel %vm10616_vm9, 1.0, %v4728_v62  ;;  %v1827_v50 = vsel %vm10620_vm10, %v1443_v0, %v1379_v8  ;;  %v1829_v60 = vsel %vm10624_vm11, %v1445_v54, %v1381_v30 }
 0x31f   : > { %v1891_v7 = vsel %vm10620_vm10, %v1571_v24, %v1507_v61  ;;  %v1893_v11 = vsel %vm10624_vm11, %v1573_v43, %v1509_v32  ;;  %v1955_v48 = vsel %vm10620_vm10, %v1699_v5, %v1635_v44  ;;  %v1957_v40 = vsel %vm10624_vm11, %v1701_v63, %v1637_v27 }
 0x320   : > { %v2019_v59 = vsel %vm10628_vm12, %v1827_v50, %v1763_v21  ;;  %v2021_v14 = vsel %vm10632_vm13, %v1829_v60, %v1765_v26  ;;  %v2083_v35 = vsel %vm10628_vm12, %v1955_v48, %v1891_v7  ;;  %v2085_v42 = vsel %vm10632_vm13, %v1957_v40, %v1893_v11 }
 0x321   : > { %v2147_v39 = vsel %vm10636_vm14, %v2083_v35, %v2019_v59  ;;  %v2149_v34 = vsel %vm10656_vm15, %v2085_v42, %v2021_v14  ;;  %v668_v31 = vand.u32 15, %v604_v36  ;;  %v670_v56 = vand.u32 15, %v606_v33 }
 0x322   : > { %v2278_v47 = vmul.f32 %v9026_v3, %v2147_v39  ;;  %v2280_v53 = vmul.f32 %v9026_v3, %v2149_v34  ;;  %v603_v1 = vshra.s32 %v10490_v2, 4  ;;  %v605_v12 = vshra.s32 %v10492_v13, 4 }
 0x323   : > { %v2375_v46 = vand.u32 1, %v668_v31  ;;  %v2377_v16 = vand.u32 1, %v670_v56  ;;  %v2503_v22 = vand.u32 2, %v668_v31  ;;  %v2505_v51 = vand.u32 2, %v670_v56 }
 0x324   : > { %v2320_v19 = vpack.c.bf16 %v2280_v53, %v2278_v47  ;;  %v2631_v4 = vand.u32 4, %v668_v31  ;;  %v2633_v20 = vand.u32 4, %v670_v56  ;;  %v2759_v10 = vand.u32 8, %v668_v31 }
 0x325   : > { %vm10725_vm0 = vcmp.ne.s32.totalorder %v2375_v46, 0  ;;  %vm10729_vm1 = vcmp.ne.s32.totalorder %v2377_v16, 0  ;;  %vm10733_vm2 = vcmp.ne.s32.totalorder %v2503_v22, 0  ;;  %vm10737_vm3 = vcmp.ne.s32.totalorder %v2505_v51, 0 }
 0x326   : > { %4045 = vmatpush1.bf16.msra.mxu1 %v2320_v19  ;;  %vm10741_vm4 = vcmp.ne.s32.totalorder %v2631_v4, 0  ;;  %vm10745_vm5 = vcmp.ne.s32.totalorder %v2633_v20, 0  ;;  %v2761_v28 = vand.u32 8, %v670_v56  ;;  %vm10749_vm6 = vcmp.ne.s32.totalorder %v2759_v10, 0 }
 0x327   : > { %v2887_v0 = vsel %vm10725_vm0, -0.6961928, %v4721_v38  ;;  %v2889_v54 = vsel %vm10729_vm1, -0.6961928, %v4721_v38  ;;  %v2951_v61 = vsel %vm10725_vm0, -0.3949175, %v4722_v41  ;;  %v10764_v32 = vcombine.high %v6972_v23, %v6972_v23 }
 0x328   : > { %vm10766_vm7 = vcmp.ne.s32.totalorder %v2761_v28, 0  ;;  %v2953_v21 = vsel %vm10729_vm1, -0.3949175, %v4722_v41  ;;  %v3015_v43 = vsel %vm10725_vm0, -0.18477343, %v4723_v45  ;;  %v3079_v44 = vsel %vm10725_vm0, 0.0, %v4724_v49 }
 0x329   : > { %v3017_v23 = vsel %vm10729_vm1, -0.18477343, %v4723_v45  ;;  %v3081_v27 = vsel %vm10729_vm1, 0.0, %v4724_v49  ;;  %v3143_v26 = vsel %vm10725_vm0, 0.1609302, %v4725_v52  ;;  %v3335_v5 = vsel %vm10725_vm0, 1.0, %v4728_v62 }
 0x32a   : > { %v3145_v63 = vsel %vm10729_vm1, 0.1609302, %v4725_v52  ;;  %v3207_v50 = vsel %vm10725_vm0, 0.33791524, %v4726_v55  ;;  %v3209_v60 = vsel %vm10729_vm1, 0.33791524, %v4726_v55  ;;  %v3399_v7 = vsel %vm10733_vm2, %v2951_v61, %v2887_v0 }
 0x32b   : > { %v3271_v11 = vsel %vm10725_vm0, 0.562617, %v4727_v58  ;;  %v3273_v48 = vsel %vm10729_vm1, 0.562617, %v4727_v58  ;;  %v3337_v40 = vsel %vm10729_vm1, 1.0, %v4728_v62  ;;  %v3401_v59 = vsel %vm10737_vm3, %v2953_v21, %v2889_v54 }
 0x32c   : > { %v3463_v14 = vsel %vm10733_vm2, %v3079_v44, %v3015_v43  ;;  %v3465_v35 = vsel %vm10737_vm3, %v3081_v27, %v3017_v23  ;;  %v3527_v42 = vsel %vm10733_vm2, %v3207_v50, %v3143_v26  ;;  %v3529_v39 = vsel %vm10737_vm3, %v3209_v60, %v3145_v63 }
 0x32d   : > { %v3591_v34 = vsel %vm10733_vm2, %v3335_v5, %v3271_v11  ;;  %v3593_v31 = vsel %vm10737_vm3, %v3337_v40, %v3273_v48  ;;  %v3655_v56 = vsel %vm10741_vm4, %v3463_v14, %v3399_v7  ;;  %v3657_v47 = vsel %vm10745_vm5, %v3465_v35, %v3401_v59 }
 0x32e   : > { %v3719_v53 = vsel %vm10741_vm4, %v3591_v34, %v3527_v42  ;;  %v3721_v46 = vsel %vm10745_vm5, %v3593_v31, %v3529_v39  ;;  %v667_v16 = vand.u32 15, %v603_v1  ;;  %v669_v22 = vand.u32 15, %v605_v12 }
 0x32f   : > { %v3783_v51 = vsel %vm10749_vm6, %v3719_v53, %v3655_v56  ;;  %v3785_v19 = vsel %vm10766_vm7, %v3721_v46, %v3657_v47  ;;  %v10839_v4 = vand.u32 255, %v416_v25  ;;  %v10843_v20 = vand.u32 255, %v418_v9 }
 0x330   : > { %v3912_v10 = vmul.f32 %v9209_v37, %v3783_v51  ;;  %v3914_v8 = vmul.f32 %v9209_v37, %v3785_v19  ;;  %v2374_v1 = vand.u32 1, %v667_v16  ;;  %v2376_v12 = vand.u32 1, %v669_v22 }
 0x331   : > { %v2502_v36 = vand.u32 2, %v667_v16  ;;  %v2504_v3 = vand.u32 2, %v669_v22  ;;  %v2630_v2 = vand.u32 4, %v667_v16  ;;  %v2632_v13 = vand.u32 4, %v669_v22 }
 0x332   : > { %v3954_v33 = vpack.c.bf16 %v3914_v8, %v3912_v10  ;;  %vm10847_vm8 = vcmp.ne.s32.totalorder %v2374_v1, 0  ;;  %vm10851_vm9 = vcmp.ne.s32.totalorder %v2376_v12, 0  ;;  %v2758_v9 = vand.u32 8, %v667_v16 }
 0x333   : > { %vm10855_vm10 = vcmp.ne.s32.totalorder %v2502_v36, 0  ;;  %vm10859_vm11 = vcmp.ne.s32.totalorder %v2504_v3, 0  ;;  %vm10863_vm12 = vcmp.ne.s32.totalorder %v2630_v2, 0  ;;  %vm10867_vm13 = vcmp.ne.s32.totalorder %v2632_v13, 0 }
 0x334   : > { %3996 = vmatprep.subr.bf16.mxu0 %v3954_v33  ;;  %v2760_v61 = vand.u32 8, %v669_v22  ;;  %vm10871_vm14 = vcmp.ne.s32.totalorder %v2758_v9, 0  ;;  %v2886_v21 = vsel %vm10847_vm8, -0.6961928, %v4721_v38  ;;  %v2888_v43 = vsel %vm10851_vm9, -0.6961928, %v4721_v38 }
 0x335   : > { %v2950_v44 = vsel %vm10847_vm8, -0.3949175, %v4722_v41  ;;  %v2952_v23 = vsel %vm10851_vm9, -0.3949175, %v4722_v41  ;;  %v3014_v27 = vsel %vm10847_vm8, -0.18477343, %v4723_v45  ;;  %v10892_v26 = vrot.slane %v10764_v32, %v5127_v18 }
 0x336   : > { %vm10894_vm15 = vcmp.ne.s32.totalorder %v2760_v61, 0  ;;  %v3016_v63 = vsel %vm10851_vm9, -0.18477343, %v4723_v45  ;;  %v3078_v50 = vsel %vm10847_vm8, 0.0, %v4724_v49  ;;  %v3080_v60 = vsel %vm10851_vm9, 0.0, %v4724_v49  ;;  %v10948_v22 = vld [vmem:[%s5075_s11 + $0x60] sm:$0xff] }
 0x337   : > { %v3142_v7 = vsel %vm10847_vm8, 0.1609302, %v4725_v52  ;;  %v3144_v11 = vsel %vm10851_vm9, 0.1609302, %v4725_v52  ;;  %v3206_v48 = vsel %vm10847_vm8, 0.33791524, %v4726_v55  ;;  %v3398_v40 = vsel %vm10855_vm10, %v2950_v44, %v2886_v21 }
 0x338   : > { %v3208_v59 = vsel %vm10851_vm9, 0.33791524, %v4726_v55  ;;  %v3270_v14 = vsel %vm10847_vm8, 0.562617, %v4727_v58  ;;  %v3272_v35 = vsel %vm10851_vm9, 0.562617, %v4727_v58  ;;  %v3400_v42 = vsel %vm10859_vm11, %v2952_v23, %v2888_v43 }
 0x339   : > { %v3334_v39 = vsel %vm10847_vm8, 1.0, %v4728_v62  ;;  %v3336_v34 = vsel %vm10851_vm9, 1.0, %v4728_v62  ;;  %v3462_v31 = vsel %vm10855_vm10, %v3078_v50, %v3014_v27  ;;  %v3464_v56 = vsel %vm10859_vm11, %v3080_v60, %v3016_v63 }
 0x33a   : > { %v3526_v47 = vsel %vm10855_vm10, %v3206_v48, %v3142_v7  ;;  %v3528_v53 = vsel %vm10859_vm11, %v3208_v59, %v3144_v11  ;;  %v3590_v46 = vsel %vm10855_vm10, %v3334_v39, %v3270_v14  ;;  %v3592_v16 = vsel %vm10859_vm11, %v3336_v34, %v3272_v35 }
 0x33b   : > { %v3654_v51 = vsel %vm10863_vm12, %v3462_v31, %v3398_v40  ;;  %v3656_v19 = vsel %vm10867_vm13, %v3464_v56, %v3400_v42  ;;  %v3718_v10 = vsel %vm10863_vm12, %v3590_v46, %v3526_v47  ;;  %v3720_v8 = vsel %vm10867_vm13, %v3592_v16, %v3528_v53 }
 0x33c   : > { %v3782_v1 = vsel %vm10871_vm14, %v3718_v10, %v3654_v51  ;;  %v3784_v12 = vsel %vm10894_vm15, %v3720_v8, %v3656_v19  ;;  %v544_v36 = vand.u32 15, %v10839_v4  ;;  %v546_v3 = vand.u32 15, %v10843_v20 }
 0x33d   : > { %v3911_v2 = vmul.f32 %v9393_v29, %v3782_v1  ;;  %v3913_v13 = vmul.f32 %v9393_v29, %v3784_v12  ;;  %v415_v33 = vunpack.c.0.s8 %v10948_v22  ;;  %v417_v28 = vunpack.c.1.s8 %v10948_v22 }
 0x33e   : > { %v744_v25 = vand.u32 1, %v544_v36  ;;  %v746_v9 = vand.u32 1, %v546_v3  ;;  %v872_v30 = vand.u32 2, %v544_v36  ;;  %v874_v37 = vand.u32 2, %v546_v3 }
 0x33f   : > { %v3953_v0 = vpack.c.bf16 %v3913_v13, %v3911_v2  ;;  %v1000_v54 = vand.u32 4, %v544_v36  ;;  %v1002_v61 = vand.u32 4, %v546_v3  ;;  %v1128_v24 = vand.u32 8, %v544_v36 }
 0x340   : > { %vm10968_vm0 = vcmp.ne.s32.totalorder %v744_v25, 0  ;;  %vm10972_vm1 = vcmp.ne.s32.totalorder %v746_v9, 0  ;;  %vm10976_vm2 = vcmp.ne.s32.totalorder %v872_v30, 0  ;;  %vm10980_vm3 = vcmp.ne.s32.totalorder %v874_v37, 0 }
 0x341   : > { %3997 = vmatpush1.bf16.msra.mxu0 %v3953_v0  ;;  %vm10984_vm4 = vcmp.ne.s32.totalorder %v1000_v54, 0  ;;  %vm10988_vm5 = vcmp.ne.s32.totalorder %v1002_v61, 0  ;;  %v1130_v5 = vand.u32 8, %v546_v3  ;;  %vm10992_vm6 = vcmp.ne.s32.totalorder %v1128_v24, 0 }
 0x342   : > { %v1256_v50 = vsel %vm10968_vm0, -0.6961928, %v4721_v38  ;;  %v1258_v60 = vsel %vm10972_vm1, -0.6961928, %v4721_v38  ;;  %v1320_v7 = vsel %vm10968_vm0, -0.3949175, %v4722_v41  ;;  %v11007_v11 = vrot.slane %v10764_v32, %v5124_v17 }
 0x343   : > { %vm11009_vm7 = vcmp.ne.s32.totalorder %v1130_v5, 0  ;;  %v1322_v40 = vsel %vm10972_vm1, -0.3949175, %v4722_v41  ;;  %v1384_v59 = vsel %vm10968_vm0, -0.18477343, %v4723_v45  ;;  %v1448_v14 = vsel %vm10968_vm0, 0.0, %v4724_v49 }
 0x344   : > { %v1386_v32 = vsel %vm10972_vm1, -0.18477343, %v4723_v45  ;;  %v1450_v35 = vsel %vm10972_vm1, 0.0, %v4724_v49  ;;  %v1512_v42 = vsel %vm10968_vm0, 0.1609302, %v4725_v52  ;;  %v1704_v39 = vsel %vm10968_vm0, 1.0, %v4728_v62 }
 0x345   : > { %v1514_v34 = vsel %vm10972_vm1, 0.1609302, %v4725_v52  ;;  %v1576_v31 = vsel %vm10968_vm0, 0.33791524, %v4726_v55  ;;  %v1578_v56 = vsel %vm10972_vm1, 0.33791524, %v4726_v55  ;;  %v1768_v47 = vsel %vm10976_vm2, %v1320_v7, %v1256_v50 }
 0x346   : > { %v1640_v53 = vsel %vm10968_vm0, 0.562617, %v4727_v58  ;;  %v1642_v46 = vsel %vm10972_vm1, 0.562617, %v4727_v58  ;;  %v1706_v16 = vsel %vm10972_vm1, 1.0, %v4728_v62  ;;  %v1770_v51 = vsel %vm10980_vm3, %v1322_v40, %v1258_v60 }
 0x347   : > { %v1832_v19 = vsel %vm10976_vm2, %v1448_v14, %v1384_v59  ;;  %v1834_v10 = vsel %vm10980_vm3, %v1450_v35, %v1386_v32  ;;  %v1896_v8 = vsel %vm10976_vm2, %v1576_v31, %v1512_v42  ;;  %v1898_v1 = vsel %vm10980_vm3, %v1578_v56, %v1514_v34 }
 0x348   : > { %v1960_v12 = vsel %vm10976_vm2, %v1704_v39, %v1640_v53  ;;  %v1962_v36 = vsel %vm10980_vm3, %v1706_v16, %v1642_v46  ;;  %v2024_v3 = vsel %vm10984_vm4, %v1832_v19, %v1768_v47  ;;  %v2026_v2 = vsel %vm10988_vm5, %v1834_v10, %v1770_v51 }
 0x349   : > { %v2088_v13 = vsel %vm10984_vm4, %v1960_v12, %v1896_v8  ;;  %v2090_v25 = vsel %vm10988_vm5, %v1962_v36, %v1898_v1  ;;  %v11076_v9 = vand.u32 255, %v415_v33  ;;  %v11078_v30 = vand.u32 255, %v417_v28 }
 0x34a   : > { %v2152_v37 = vsel %vm10992_vm6, %v2088_v13, %v2024_v3  ;;  %v2154_v0 = vsel %vm11009_vm7, %v2090_v25, %v2026_v2  ;;  %v608_v54 = vshra.s32 %v10839_v4, 4  ;;  %v610_v61 = vshra.s32 %v10843_v20, 4 }
 0x34b   : > { %v2283_v24 = vmul.f32 %v10892_v26, %v2152_v37  ;;  %v2285_v21 = vmul.f32 %v10892_v26, %v2154_v0  ;;  %v543_v43 = vand.u32 15, %v11076_v9  ;;  %v545_v33 = vand.u32 15, %v11078_v30 }
 0x34c   : > { %v11090_v28 = vand.u32 15, %v608_v54  ;;  %v11092_v29 = vand.u32 15, %v610_v61  ;;  %v11096_v44 = vcombine.high %v7188_v15, %v7188_v15  ;;  %v607_v4 = vshra.s32 %v11076_v9, 4 }
 0x34d   : > { %v2323_v23 = vpack.c.bf16 %v2285_v21, %v2283_v24  ;;  %v743_v20 = vand.u32 1, %v543_v43  ;;  %v745_v27 = vand.u32 1, %v545_v33  ;;  %v871_v5 = vand.u32 2, %v543_v43 }
 0x34e   : > { %v873_v63 = vand.u32 2, %v545_v33  ;;  %v999_v50 = vand.u32 4, %v543_v43  ;;  %v1001_v60 = vand.u32 4, %v545_v33  ;;  %v1127_v7 = vand.u32 8, %v543_v43 }
 0x34f   : > { %4046 = vmatprep.subr.bf16.mxu1 %v2323_v23  ;;  %vm11099_vm8 = vcmp.ne.s32.totalorder %v743_v20, 0  ;;  %vm11103_vm9 = vcmp.ne.s32.totalorder %v745_v27, 0  ;;  %vm11107_vm10 = vcmp.ne.s32.totalorder %v871_v5, 0  ;;  %v1129_v59 = vand.u32 8, %v545_v33 }
 0x350   : > { %vm11111_vm11 = vcmp.ne.s32.totalorder %v873_v63, 0  ;;  %vm11115_vm12 = vcmp.ne.s32.totalorder %v999_v50, 0  ;;  %vm11119_vm13 = vcmp.ne.s32.totalorder %v1001_v60, 0  ;;  %vm11123_vm14 = vcmp.ne.s32.totalorder %v1127_v7, 0 }
 0x351   : > { %vm11127_vm15 = vcmp.ne.s32.totalorder %v1129_v59, 0  ;;  %v1255_v34 = vsel %vm11099_vm8, -0.6961928, %v4721_v38  ;;  %v1257_v31 = vsel %vm11103_vm9, -0.6961928, %v4721_v38  ;;  %v1447_v56 = vsel %vm11099_vm8, 0.0, %v4724_v49 }
 0x352   : > { %v1319_v47 = vsel %vm11099_vm8, -0.3949175, %v4722_v41  ;;  %v1321_v53 = vsel %vm11103_vm9, -0.3949175, %v4722_v41  ;;  %v1383_v46 = vsel %vm11099_vm8, -0.18477343, %v4723_v45  ;;  %v11151_v16 = vrot.slane %v11096_v44, %v5127_v18 }
 0x353   : > { %v1385_v51 = vsel %vm11103_vm9, -0.18477343, %v4723_v45  ;;  %v1449_v19 = vsel %vm11103_vm9, 0.0, %v4724_v49  ;;  %v1511_v10 = vsel %vm11099_vm8, 0.1609302, %v4725_v52  ;;  %v1703_v8 = vsel %vm11099_vm8, 1.0, %v4728_v62 }
 0x354   : > { %v1513_v18 = vsel %vm11103_vm9, 0.1609302, %v4725_v52  ;;  %v1575_v1 = vsel %vm11099_vm8, 0.33791524, %v4726_v55  ;;  %v1577_v12 = vsel %vm11103_vm9, 0.33791524, %v4726_v55  ;;  %v1767_v36 = vsel %vm11107_vm10, %v1319_v47, %v1255_v34 }
 0x355   : > { %v1639_v3 = vsel %vm11099_vm8, 0.562617, %v4727_v58  ;;  %v1641_v2 = vsel %vm11103_vm9, 0.562617, %v4727_v58  ;;  %v1705_v13 = vsel %vm11103_vm9, 1.0, %v4728_v62  ;;  %v1769_v25 = vsel %vm11111_vm11, %v1321_v53, %v1257_v31 }
 0x356   : > { %v1831_v37 = vsel %vm11107_vm10, %v1447_v56, %v1383_v46  ;;  %v1833_v0 = vsel %vm11111_vm11, %v1449_v19, %v1385_v51  ;;  %v1895_v54 = vsel %vm11107_vm10, %v1575_v1, %v1511_v10  ;;  %v1897_v61 = vsel %vm11111_vm11, %v1577_v12, %v1513_v18 }
 0x357   : > { %v1959_v24 = vsel %vm11107_vm10, %v1703_v8, %v1639_v3  ;;  %v1961_v21 = vsel %vm11111_vm11, %v1705_v13, %v1641_v2  ;;  %v2023_v43 = vsel %vm11115_vm12, %v1831_v37, %v1767_v36  ;;  %v2025_v33 = vsel %vm11119_vm13, %v1833_v0, %v1769_v25 }
 0x358   : > { %v2087_v23 = vsel %vm11115_vm12, %v1959_v24, %v1895_v54  ;;  %v2089_v20 = vsel %vm11119_vm13, %v1961_v21, %v1897_v61  ;;  %v2379_v27 = vand.u32 1, %v11090_v28  ;;  %v2381_v5 = vand.u32 1, %v11092_v29 }
 0x359   : > { %v2151_v63 = vsel %vm11123_vm14, %v2087_v23, %v2023_v43  ;;  %v2153_v50 = vsel %vm11127_vm15, %v2089_v20, %v2025_v33  ;;  %v2507_v60 = vand.u32 2, %v11090_v28  ;;  %v2509_v7 = vand.u32 2, %v11092_v29 }
 0x35a   : > { %v2282_v48 = vmul.f32 %v11007_v11, %v2151_v63  ;;  %v2284_v40 = vmul.f32 %v11007_v11, %v2153_v50  ;;  %vm11217_vm0 = vcmp.ne.s32.totalorder %v2379_v27, 0  ;;  %vm11221_vm1 = vcmp.ne.s32.totalorder %v2381_v5, 0 }
 0x35b   : > { %vm11225_vm2 = vcmp.ne.s32.totalorder %v2507_v60, 0  ;;  %vm11229_vm3 = vcmp.ne.s32.totalorder %v2509_v7, 0  ;;  %v2635_v35 = vand.u32 4, %v11090_v28  ;;  %v2637_v42 = vand.u32 4, %v11092_v29 }
 0x35c   : > { %v2322_v39 = vpack.c.bf16 %v2284_v40, %v2282_v48  ;;  %v2763_v34 = vand.u32 8, %v11090_v28  ;;  %v2765_v31 = vand.u32 8, %v11092_v29  ;;  %v2891_v56 = vsel %vm11217_vm0, -0.6961928, %v4721_v38 }
 0x35d   : > { %vm11240_vm4 = vcmp.ne.s32.totalorder %v2635_v35, 0  ;;  %vm11244_vm5 = vcmp.ne.s32.totalorder %v2637_v42, 0  ;;  %v2893_v46 = vsel %vm11221_vm1, -0.6961928, %v4721_v38  ;;  %v2955_v28 = vsel %vm11217_vm0, -0.3949175, %v4722_v41 }
 0x35e   : > { %4047 = vmatpush1.bf16.msra.mxu1 %v2322_v39  ;;  %vm11254_vm6 = vcmp.ne.s32.totalorder %v2763_v34, 0  ;;  %vm11258_vm7 = vcmp.ne.s32.totalorder %v2765_v31, 0  ;;  %v2957_v19 = vsel %vm11221_vm1, -0.3949175, %v4722_v41  ;;  %v3019_v10 = vsel %vm11217_vm0, -0.18477343, %v4723_v45 }
 0x35f   : > { %v3021_v8 = vsel %vm11221_vm1, -0.18477343, %v4723_v45  ;;  %v3083_v18 = vsel %vm11217_vm0, 0.0, %v4724_v49  ;;  %v3085_v1 = vsel %vm11221_vm1, 0.0, %v4724_v49  ;;  %v3147_v12 = vsel %vm11217_vm0, 0.1609302, %v4725_v52 }
 0x360   : > { %v3149_v36 = vsel %vm11221_vm1, 0.1609302, %v4725_v52  ;;  %v3211_v3 = vsel %vm11217_vm0, 0.33791524, %v4726_v55  ;;  %v3213_v2 = vsel %vm11221_vm1, 0.33791524, %v4726_v55  ;;  %v3403_v13 = vsel %vm11225_vm2, %v2955_v28, %v2891_v56 }
 0x361   : > { %v3275_v25 = vsel %vm11217_vm0, 0.562617, %v4727_v58  ;;  %v3277_v37 = vsel %vm11221_vm1, 0.562617, %v4727_v58  ;;  %v3339_v0 = vsel %vm11217_vm0, 1.0, %v4728_v62  ;;  %v3341_v54 = vsel %vm11221_vm1, 1.0, %v4728_v62 }
 0x362   : > { %v3405_v61 = vsel %vm11229_vm3, %v2957_v19, %v2893_v46  ;;  %v3467_v24 = vsel %vm11225_vm2, %v3083_v18, %v3019_v10  ;;  %v3469_v21 = vsel %vm11229_vm3, %v3085_v1, %v3021_v8  ;;  %v3531_v43 = vsel %vm11225_vm2, %v3211_v3, %v3147_v12 }
 0x363   : > { %v3533_v33 = vsel %vm11229_vm3, %v3213_v2, %v3149_v36  ;;  %v3595_v23 = vsel %vm11225_vm2, %v3339_v0, %v3275_v25  ;;  %v3597_v20 = vsel %vm11229_vm3, %v3341_v54, %v3277_v37  ;;  %v3659_v27 = vsel %vm11240_vm4, %v3467_v24, %v3403_v13 }
 0x364   : > { %v3661_v5 = vsel %vm11244_vm5, %v3469_v21, %v3405_v61  ;;  %v3723_v63 = vsel %vm11240_vm4, %v3595_v23, %v3531_v43  ;;  %v3725_v50 = vsel %vm11244_vm5, %v3597_v20, %v3533_v33  ;;  %v609_v60 = vshra.s32 %v11078_v30, 4 }
 0x365   : > { %v3787_v7 = vsel %vm11254_vm6, %v3723_v63, %v3659_v27  ;;  %v3789_v48 = vsel %vm11258_vm7, %v3725_v50, %v3661_v5  ;;  %v671_v40 = vand.u32 15, %v607_v4  ;;  %v11334_v15 = vrot.slane %v11096_v44, %v5124_v17 }
 0x366   : > { %v3916_v59 = vmul.f32 %v11151_v16, %v3787_v7  ;;  %v3918_v14 = vmul.f32 %v11151_v16, %v3789_v48  ;;  %v673_v32 = vand.u32 15, %v609_v60  ;;  %v420_v30 = vunpack.c.2.s8 %v10495_v57 }
 0x367   : > { %v2378_v35 = vand.u32 1, %v671_v40  ;;  %v2506_v42 = vand.u32 2, %v671_v40  ;;  %v2634_v39 = vand.u32 4, %v671_v40  ;;  %v2762_v34 = vand.u32 8, %v671_v40 }
 0x368   : > { %v3956_v31 = vpack.c.bf16 %v3918_v14, %v3916_v59  ;;  %v2380_v56 = vand.u32 1, %v673_v32  ;;  %v2508_v47 = vand.u32 2, %v673_v32  ;;  %v2636_v9 = vand.u32 4, %v673_v32 }
 0x369   : > { %vm11339_vm8 = vcmp.ne.s32.totalorder %v2378_v35, 0  ;;  %vm11343_vm9 = vcmp.ne.s32.totalorder %v2506_v42, 0  ;;  %vm11347_vm10 = vcmp.ne.s32.totalorder %v2634_v39, 0  ;;  %v2764_v46 = vand.u32 8, %v673_v32 }
 0x36a   : > { %3998 = vmatprep.subr.bf16.mxu0 %v3956_v31  ;;  %vm11351_vm11 = vcmp.ne.s32.totalorder %v2380_v56, 0  ;;  %vm11355_vm12 = vcmp.ne.s32.totalorder %v2508_v47, 0  ;;  %vm11359_vm13 = vcmp.ne.s32.totalorder %v2636_v9, 0  ;;  %vm11363_vm14 = vcmp.ne.s32.totalorder %v2762_v34, 0 }
 0x36b   : > { %vm11367_vm15 = vcmp.ne.s32.totalorder %v2764_v46, 0  ;;  %v2890_v8 = vsel %vm11339_vm8, -0.6961928, %v4721_v38  ;;  %v2892_v18 = vsel %vm11351_vm11, -0.6961928, %v4721_v38  ;;  %v3082_v1 = vsel %vm11339_vm8, 0.0, %v4724_v49 }
 0x36c   : > { %v2954_v12 = vsel %vm11339_vm8, -0.3949175, %v4722_v41  ;;  %v2956_v36 = vsel %vm11351_vm11, -0.3949175, %v4722_v41  ;;  %v3018_v3 = vsel %vm11339_vm8, -0.18477343, %v4723_v45  ;;  %v422_v2 = vunpack.c.3.s8 %v10495_v57 }
 0x36d   : > { %v3020_v13 = vsel %vm11351_vm11, -0.18477343, %v4723_v45  ;;  %v3084_v25 = vsel %vm11351_vm11, 0.0, %v4724_v49  ;;  %v3146_v37 = vsel %vm11339_vm8, 0.1609302, %v4725_v52  ;;  %v3338_v0 = vsel %vm11339_vm8, 1.0, %v4728_v62 }
 0x36e   : > { %v3148_v57 = vsel %vm11351_vm11, 0.1609302, %v4725_v52  ;;  %v3210_v54 = vsel %vm11339_vm8, 0.33791524, %v4726_v55  ;;  %v3212_v61 = vsel %vm11351_vm11, 0.33791524, %v4726_v55  ;;  %v3402_v24 = vsel %vm11343_vm9, %v2954_v12, %v2890_v8 }
 0x36f   : > { %v3274_v21 = vsel %vm11339_vm8, 0.562617, %v4727_v58  ;;  %v3276_v43 = vsel %vm11351_vm11, 0.562617, %v4727_v58  ;;  %v3340_v33 = vsel %vm11351_vm11, 1.0, %v4728_v62  ;;  %v3404_v23 = vsel %vm11355_vm12, %v2956_v36, %v2892_v18 }
 0x370   : > { %v3466_v20 = vsel %vm11343_vm9, %v3082_v1, %v3018_v3  ;;  %v3468_v27 = vsel %vm11355_vm12, %v3084_v25, %v3020_v13  ;;  %v3530_v5 = vsel %vm11343_vm9, %v3210_v54, %v3146_v37  ;;  %v3532_v63 = vsel %vm11355_vm12, %v3212_v61, %v3148_v57  ;;  %v11477_v3 = vld [vmem:[%s5075_s11 + $0x78] sm:$0xff] }
 0x371   : > { %v3594_v50 = vsel %vm11343_vm9, %v3338_v0, %v3274_v21  ;;  %v3596_v60 = vsel %vm11355_vm12, %v3340_v33, %v3276_v43  ;;  %v3658_v7 = vsel %vm11347_vm10, %v3466_v20, %v3402_v24  ;;  %v3660_v48 = vsel %vm11359_vm13, %v3468_v27, %v3404_v23 }
 0x372   : > { %v3722_v40 = vsel %vm11347_vm10, %v3594_v50, %v3530_v5  ;;  %v3724_v59 = vsel %vm11359_vm13, %v3596_v60, %v3532_v63  ;;  %v11444_v14 = vand.u32 255, %v420_v30  ;;  %v11446_v32 = vand.u32 255, %v422_v2 }
 0x373   : > { %v3786_v35 = vsel %vm11363_vm14, %v3722_v40, %v3658_v7  ;;  %v3788_v42 = vsel %vm11367_vm15, %v3724_v59, %v3660_v48  ;;  %v419_v39 = vunpack.c.2.s8 %v10948_v22  ;;  %v421_v34 = vunpack.c.3.s8 %v10948_v22 }
 0x374   : > { %v3915_v31 = vmul.f32 %v11334_v15, %v3786_v35  ;;  %v3917_v56 = vmul.f32 %v11334_v15, %v3788_v42  ;;  %v548_v47 = vand.u32 15, %v11444_v14  ;;  %v550_v30 = vand.u32 15, %v11446_v32 }
 0x375   : > { %v11458_v9 = vand.u32 255, %v419_v39  ;;  %v11460_v4 = vand.u32 255, %v421_v34  ;;  %v612_v44 = vshra.s32 %v11444_v14, 4  ;;  %v614_v53 = vshra.s32 %v11446_v32, 4 }
 0x376   : > { %v3955_v46 = vpack.c.bf16 %v3917_v56, %v3915_v31  ;;  %v748_v28 = vand.u32 1, %v548_v47  ;;  %v750_v22 = vand.u32 1, %v550_v30  ;;  %v876_v29 = vand.u32 2, %v548_v47 }
 0x377   : > { %v878_v51 = vand.u32 2, %v550_v30  ;;  %v1004_v19 = vand.u32 4, %v548_v47  ;;  %v1006_v10 = vand.u32 4, %v550_v30  ;;  %v1132_v8 = vand.u32 8, %v548_v47 }
 0x378   : > { %3999 = vmatpush1.bf16.msra.mxu0 %v3955_v46  ;;  %vm11464_vm0 = vcmp.ne.s32.totalorder %v748_v28, 0  ;;  %vm11468_vm1 = vcmp.ne.s32.totalorder %v750_v22, 0  ;;  %vm11472_vm2 = vcmp.ne.s32.totalorder %v876_v29, 0  ;;  %v1134_v36 = vand.u32 8, %v550_v30 }
 0x379   : > { %vm11479_vm3 = vcmp.ne.s32.totalorder %v878_v51, 0  ;;  %vm11483_vm4 = vcmp.ne.s32.totalorder %v1004_v19, 0  ;;  %vm11487_vm5 = vcmp.ne.s32.totalorder %v1006_v10, 0  ;;  %vm11491_vm6 = vcmp.ne.s32.totalorder %v1132_v8, 0 }
 0x37a   : > { %vm11495_vm7 = vcmp.ne.s32.totalorder %v1134_v36, 0  ;;  %v1260_v57 = vsel %vm11464_vm0, -0.6961928, %v4721_v38  ;;  %v1262_v54 = vsel %vm11468_vm1, -0.6961928, %v4721_v38  ;;  %v1452_v61 = vsel %vm11464_vm0, 0.0, %v4724_v49 }
 0x37b   : > { %v1324_v24 = vsel %vm11464_vm0, -0.3949175, %v4722_v41  ;;  %v1326_v21 = vsel %vm11468_vm1, -0.3949175, %v4722_v41  ;;  %v1388_v43 = vsel %vm11464_vm0, -0.18477343, %v4723_v45  ;;  %v424_v33 = vunpack.c.0.s8 %v11477_v3 }
 0x37c   : > { %v1390_v23 = vsel %vm11468_vm1, -0.18477343, %v4723_v45  ;;  %v1454_v20 = vsel %vm11468_vm1, 0.0, %v4724_v49  ;;  %v1516_v27 = vsel %vm11464_vm0, 0.1609302, %v4725_v52  ;;  %v1708_v5 = vsel %vm11464_vm0, 1.0, %v4728_v62 }
 0x37d   : > { %v1518_v63 = vsel %vm11468_vm1, 0.1609302, %v4725_v52  ;;  %v1580_v50 = vsel %vm11464_vm0, 0.33791524, %v4726_v55  ;;  %v1582_v60 = vsel %vm11468_vm1, 0.33791524, %v4726_v55  ;;  %v1772_v7 = vsel %vm11472_vm2, %v1324_v24, %v1260_v57 }
 0x37e   : > { %v1644_v48 = vsel %vm11464_vm0, 0.562617, %v4727_v58  ;;  %v1646_v40 = vsel %vm11468_vm1, 0.562617, %v4727_v58  ;;  %v1710_v59 = vsel %vm11468_vm1, 1.0, %v4728_v62  ;;  %v1774_v14 = vsel %vm11479_vm3, %v1326_v21, %v1262_v54 }
 0x37f   : > { %v1836_v32 = vsel %vm11472_vm2, %v1452_v61, %v1388_v43  ;;  %v1838_v35 = vsel %vm11479_vm3, %v1454_v20, %v1390_v23  ;;  %v1900_v42 = vsel %vm11472_vm2, %v1580_v50, %v1516_v27  ;;  %v1902_v39 = vsel %vm11479_vm3, %v1582_v60, %v1518_v63 }
 0x380   : > { %v1964_v34 = vsel %vm11472_vm2, %v1708_v5, %v1644_v48  ;;  %v1966_v31 = vsel %vm11479_vm3, %v1710_v59, %v1646_v40  ;;  %v2028_v56 = vsel %vm11483_vm4, %v1836_v32, %v1772_v7  ;;  %v2030_v47 = vsel %vm11487_vm5, %v1838_v35, %v1774_v14 }
 0x381   : > { %v2092_v30 = vsel %vm11483_vm4, %v1964_v34, %v1900_v42  ;;  %v2094_v46 = vsel %vm11487_vm5, %v1966_v31, %v1902_v39  ;;  %v547_v28 = vand.u32 15, %v11458_v9  ;;  %v549_v22 = vand.u32 15, %v11460_v4 }
 0x382   : > { %v2156_v29 = vsel %vm11491_vm6, %v2092_v30, %v2028_v56  ;;  %v2158_v51 = vsel %vm11495_vm7, %v2094_v46, %v2030_v47  ;;  %v11578_v19 = vand.u32 15, %v612_v44  ;;  %v11580_v10 = vand.u32 15, %v614_v53 }
 0x383   : > { %v2287_v8 = vmul.f32 %v10892_v26, %v2156_v29  ;;  %v2289_v18 = vmul.f32 %v10892_v26, %v2158_v51  ;;  %v747_v1 = vand.u32 1, %v547_v28  ;;  %v749_v12 = vand.u32 1, %v549_v22 }
 0x384   : > { %v875_v36 = vand.u32 2, %v547_v28  ;;  %v877_v2 = vand.u32 2, %v549_v22  ;;  %v1003_v13 = vand.u32 4, %v547_v28  ;;  %v1005_v25 = vand.u32 4, %v549_v22 }
 0x385   : > { %v2325_v57 = vpack.c.bf16 %v2289_v18, %v2287_v8  ;;  %vm11584_vm8 = vcmp.ne.s32.totalorder %v747_v1, 0  ;;  %vm11588_vm9 = vcmp.ne.s32.totalorder %v749_v12, 0  ;;  %v1131_v53 = vand.u32 8, %v547_v28 }
 0x386   : > { %vm11592_vm10 = vcmp.ne.s32.totalorder %v875_v36, 0  ;;  %vm11596_vm11 = vcmp.ne.s32.totalorder %v877_v2, 0  ;;  %vm11600_vm12 = vcmp.ne.s32.totalorder %v1003_v13, 0  ;;  %vm11604_vm13 = vcmp.ne.s32.totalorder %v1005_v25, 0 }
 0x387   : > { %4048 = vmatprep.subr.bf16.mxu1 %v2325_v57  ;;  %v1133_v21 = vand.u32 8, %v549_v22  ;;  %vm11608_vm14 = vcmp.ne.s32.totalorder %v1131_v53, 0  ;;  %v1259_v23 = vsel %vm11584_vm8, -0.6961928, %v4721_v38  ;;  %v1261_v20 = vsel %vm11588_vm9, -0.6961928, %v4721_v38 }
 0x388   : > { %v1323_v27 = vsel %vm11584_vm8, -0.3949175, %v4722_v41  ;;  %v1325_v5 = vsel %vm11588_vm9, -0.3949175, %v4722_v41  ;;  %v1387_v63 = vsel %vm11584_vm8, -0.18477343, %v4723_v45  ;;  %v426_v50 = vunpack.c.1.s8 %v11477_v3 }
 0x389   : > { %vm11628_vm15 = vcmp.ne.s32.totalorder %v1133_v21, 0  ;;  %v1389_v7 = vsel %vm11588_vm9, -0.18477343, %v4723_v45  ;;  %v1451_v48 = vsel %vm11584_vm8, 0.0, %v4724_v49  ;;  %v1453_v40 = vsel %vm11588_vm9, 0.0, %v4724_v49 }
 0x38a   : > { %v1515_v59 = vsel %vm11584_vm8, 0.1609302, %v4725_v52  ;;  %v1517_v14 = vsel %vm11588_vm9, 0.1609302, %v4725_v52  ;;  %v1579_v32 = vsel %vm11584_vm8, 0.33791524, %v4726_v55  ;;  %v1771_v35 = vsel %vm11592_vm10, %v1323_v27, %v1259_v23 }
 0x38b   : > { %v1581_v42 = vsel %vm11588_vm9, 0.33791524, %v4726_v55  ;;  %v1643_v39 = vsel %vm11584_vm8, 0.562617, %v4727_v58  ;;  %v1645_v34 = vsel %vm11588_vm9, 0.562617, %v4727_v58  ;;  %v1773_v31 = vsel %vm11596_vm11, %v1325_v5, %v1261_v20 }
 0x38c   : > { %v1707_v56 = vsel %vm11584_vm8, 1.0, %v4728_v62  ;;  %v1709_v47 = vsel %vm11588_vm9, 1.0, %v4728_v62  ;;  %v1835_v30 = vsel %vm11592_vm10, %v1451_v48, %v1387_v63  ;;  %v1837_v46 = vsel %vm11596_vm11, %v1453_v40, %v1389_v7 }
 0x38d   : > { %v1899_v28 = vsel %vm11592_vm10, %v1579_v32, %v1515_v59  ;;  %v1901_v22 = vsel %vm11596_vm11, %v1581_v42, %v1517_v14  ;;  %v1963_v29 = vsel %vm11592_vm10, %v1707_v56, %v1643_v39  ;;  %v1965_v51 = vsel %vm11596_vm11, %v1709_v47, %v1645_v34 }
 0x38e   : > { %v2027_v8 = vsel %vm11600_vm12, %v1835_v30, %v1771_v35  ;;  %v2029_v18 = vsel %vm11604_vm13, %v1837_v46, %v1773_v31  ;;  %v2091_v1 = vsel %vm11600_vm12, %v1963_v29, %v1899_v28  ;;  %v2093_v12 = vsel %vm11604_vm13, %v1965_v51, %v1901_v22 }
 0x38f   : > { %v2155_v36 = vsel %vm11608_vm14, %v2091_v1, %v2027_v8  ;;  %v2157_v2 = vsel %vm11628_vm15, %v2093_v12, %v2029_v18  ;;  %v2383_v13 = vand.u32 1, %v11578_v19  ;;  %v2385_v25 = vand.u32 1, %v11580_v10 }
 0x390   : > { %v2286_v57 = vmul.f32 %v11007_v11, %v2155_v36  ;;  %v2288_v37 = vmul.f32 %v11007_v11, %v2157_v2  ;;  %v2511_v44 = vand.u32 2, %v11578_v19  ;;  %v2513_v53 = vand.u32 2, %v11580_v10 }
 0x391   : > { %vm11699_vm0 = vcmp.ne.s32.totalorder %v2383_v13, 0  ;;  %vm11703_vm1 = vcmp.ne.s32.totalorder %v2385_v25, 0  ;;  %v2639_v61 = vand.u32 4, %v11578_v19  ;;  %v2641_v24 = vand.u32 4, %v11580_v10  ;;  %v11806_v25 = vld [vmem:[%s5075_s11 + $0x70] sm:$0xff] }
 0x392   : > { %v2324_v21 = vpack.c.bf16 %v2288_v37, %v2286_v57  ;;  %vm11709_vm2 = vcmp.ne.s32.totalorder %v2511_v44, 0  ;;  %vm11713_vm3 = vcmp.ne.s32.totalorder %v2513_v53, 0  ;;  %v2767_v20 = vand.u32 8, %v11578_v19 }
 0x393   : > { %vm11718_vm4 = vcmp.ne.s32.totalorder %v2639_v61, 0  ;;  %vm11722_vm5 = vcmp.ne.s32.totalorder %v2641_v24, 0  ;;  %v2769_v63 = vand.u32 8, %v11580_v10  ;;  %v2895_v60 = vsel %vm11699_vm0, -0.6961928, %v4721_v38 }
 0x394   : > { %4049 = vmatpush1.bf16.msra.mxu1 %v2324_v21  ;;  %vm11730_vm6 = vcmp.ne.s32.totalorder %v2767_v20, 0  ;;  %v2897_v19 = vsel %vm11703_vm1, -0.6961928, %v4721_v38  ;;  %v2959_v48 = vsel %vm11699_vm0, -0.3949175, %v4722_v41  ;;  %v3087_v10 = vsel %vm11699_vm0, 0.0, %v4724_v49 }
 0x395   : > { %vm11743_vm7 = vcmp.ne.s32.totalorder %v2769_v63, 0  ;;  %v2961_v59 = vsel %vm11703_vm1, -0.3949175, %v4722_v41  ;;  %v3023_v14 = vsel %vm11699_vm0, -0.18477343, %v4723_v45  ;;  %v3089_v32 = vsel %vm11703_vm1, 0.0, %v4724_v49 }
 0x396   : > { %v3025_v35 = vsel %vm11703_vm1, -0.18477343, %v4723_v45  ;;  %v3151_v42 = vsel %vm11699_vm0, 0.1609302, %v4725_v52  ;;  %v3153_v39 = vsel %vm11703_vm1, 0.1609302, %v4725_v52  ;;  %v3407_v34 = vsel %vm11709_vm2, %v2959_v48, %v2895_v60 }
 0x397   : > { %v3215_v31 = vsel %vm11699_vm0, 0.33791524, %v4726_v55  ;;  %v3217_v56 = vsel %vm11703_vm1, 0.33791524, %v4726_v55  ;;  %v3279_v47 = vsel %vm11699_vm0, 0.562617, %v4727_v58  ;;  %v3409_v30 = vsel %vm11713_vm3, %v2961_v59, %v2897_v19 }
 0x398   : > { %v3281_v46 = vsel %vm11703_vm1, 0.562617, %v4727_v58  ;;  %v3343_v28 = vsel %vm11699_vm0, 1.0, %v4728_v62  ;;  %v3345_v22 = vsel %vm11703_vm1, 1.0, %v4728_v62  ;;  %v3471_v29 = vsel %vm11709_vm2, %v3087_v10, %v3023_v14 }
 0x399   : > { %v3473_v51 = vsel %vm11713_vm3, %v3089_v32, %v3025_v35  ;;  %v3535_v8 = vsel %vm11709_vm2, %v3215_v31, %v3151_v42  ;;  %v3537_v18 = vsel %vm11713_vm3, %v3217_v56, %v3153_v39  ;;  %v3599_v1 = vsel %vm11709_vm2, %v3343_v28, %v3279_v47 }
 0x39a   : > { %v3601_v12 = vsel %vm11713_vm3, %v3345_v22, %v3281_v46  ;;  %v3663_v36 = vsel %vm11718_vm4, %v3471_v29, %v3407_v34  ;;  %v3665_v2 = vsel %vm11722_vm5, %v3473_v51, %v3409_v30  ;;  %v3727_v13 = vsel %vm11718_vm4, %v3599_v1, %v3535_v8 }
 0x39b   : > { %v3729_v57 = vsel %vm11722_vm5, %v3601_v12, %v3537_v18  ;;  %v3791_v37 = vsel %vm11730_vm6, %v3727_v13, %v3663_v36  ;;  %v611_v44 = vshra.s32 %v11458_v9, 4  ;;  %v613_v53 = vshra.s32 %v11460_v4, 4 }
 0x39c   : > { %v3793_v0 = vsel %vm11743_vm7, %v3729_v57, %v3665_v2  ;;  %v3920_v54 = vmul.f32 %v11151_v16, %v3791_v37  ;;  %v11819_v61 = vand.u32 255, %v424_v33  ;;  %v11823_v24 = vand.u32 255, %v426_v50 }
 0x39d   : > { %v3922_v21 = vmul.f32 %v11151_v16, %v3793_v0  ;;  %v675_v43 = vand.u32 15, %v611_v44  ;;  %v677_v23 = vand.u32 15, %v613_v53  ;;  %v423_v9 = vunpack.c.0.s8 %v11806_v25 }
 0x39e   : > { %v11828_v4 = vand.u32 15, %v11819_v61  ;;  %v11831_v20 = vand.u32 15, %v11823_v24  ;;  %v425_v27 = vunpack.c.1.s8 %v11806_v25  ;;  %v616_v33 = vshra.s32 %v11819_v61, 4 }
 0x39f   : > { %v3958_v5 = vpack.c.bf16 %v3922_v21, %v3920_v54  ;;  %v2382_v63 = vand.u32 1, %v675_v43  ;;  %v2384_v50 = vand.u32 1, %v677_v23  ;;  %v2510_v60 = vand.u32 2, %v675_v43 }
 0x3a0   : > { %v2512_v7 = vand.u32 2, %v677_v23  ;;  %v2638_v19 = vand.u32 4, %v675_v43  ;;  %v2640_v48 = vand.u32 4, %v677_v23  ;;  %v2766_v10 = vand.u32 8, %v675_v43 }
 0x3a1   : > { %4000 = vmatprep.subr.bf16.mxu0 %v3958_v5  ;;  %vm11835_vm8 = vcmp.ne.s32.totalorder %v2382_v63, 0  ;;  %vm11839_vm9 = vcmp.ne.s32.totalorder %v2384_v50, 0  ;;  %vm11843_vm10 = vcmp.ne.s32.totalorder %v2510_v60, 0  ;;  %v2768_v32 = vand.u32 8, %v677_v23 }
 0x3a2   : > { %vm11847_vm11 = vcmp.ne.s32.totalorder %v2512_v7, 0  ;;  %vm11851_vm12 = vcmp.ne.s32.totalorder %v2638_v19, 0  ;;  %vm11855_vm13 = vcmp.ne.s32.totalorder %v2640_v48, 0  ;;  %vm11859_vm14 = vcmp.ne.s32.totalorder %v2766_v10, 0 }
 0x3a3   : > { %vm11863_vm15 = vcmp.ne.s32.totalorder %v2768_v32, 0  ;;  %v2894_v56 = vsel %vm11835_vm8, -0.6961928, %v4721_v38  ;;  %v2896_v47 = vsel %vm11839_vm9, -0.6961928, %v4721_v38  ;;  %v3086_v30 = vsel %vm11835_vm8, 0.0, %v4724_v49 }
 0x3a4   : > { %v2958_v46 = vsel %vm11835_vm8, -0.3949175, %v4722_v41  ;;  %v2960_v28 = vsel %vm11839_vm9, -0.3949175, %v4722_v41  ;;  %v3022_v22 = vsel %vm11835_vm8, -0.18477343, %v4723_v45  ;;  %v428_v29 = vunpack.c.2.s8 %v11477_v3 }
 0x3a5   : > { %v3024_v51 = vsel %vm11839_vm9, -0.18477343, %v4723_v45  ;;  %v3088_v8 = vsel %vm11839_vm9, 0.0, %v4724_v49  ;;  %v3150_v18 = vsel %vm11835_vm8, 0.1609302, %v4725_v52  ;;  %v3342_v1 = vsel %vm11835_vm8, 1.0, %v4728_v62 }
 0x3a6   : > { %v3152_v12 = vsel %vm11839_vm9, 0.1609302, %v4725_v52  ;;  %v3214_v36 = vsel %vm11835_vm8, 0.33791524, %v4726_v55  ;;  %v3216_v2 = vsel %vm11839_vm9, 0.33791524, %v4726_v55  ;;  %v3406_v13 = vsel %vm11843_vm10, %v2958_v46, %v2894_v56 }
 0x3a7   : > { %v3278_v57 = vsel %vm11835_vm8, 0.562617, %v4727_v58  ;;  %v3280_v37 = vsel %vm11839_vm9, 0.562617, %v4727_v58  ;;  %v3344_v44 = vsel %vm11839_vm9, 1.0, %v4728_v62  ;;  %v3408_v53 = vsel %vm11847_vm11, %v2960_v28, %v2896_v47 }
 0x3a8   : > { %v3470_v0 = vsel %vm11843_vm10, %v3086_v30, %v3022_v22  ;;  %v3472_v54 = vsel %vm11847_vm11, %v3088_v8, %v3024_v51  ;;  %v3534_v21 = vsel %vm11843_vm10, %v3214_v36, %v3150_v18  ;;  %v3536_v43 = vsel %vm11847_vm11, %v3216_v2, %v3152_v12 }
 0x3a9   : > { %v3598_v23 = vsel %vm11843_vm10, %v3342_v1, %v3278_v57  ;;  %v3600_v5 = vsel %vm11847_vm11, %v3344_v44, %v3280_v37  ;;  %v3662_v63 = vsel %vm11851_vm12, %v3470_v0, %v3406_v13  ;;  %v3664_v50 = vsel %vm11855_vm13, %v3472_v54, %v3408_v53 }
 0x3aa   : > { %v3726_v60 = vsel %vm11851_vm12, %v3598_v23, %v3534_v21  ;;  %v3728_v7 = vsel %vm11855_vm13, %v3600_v5, %v3536_v43  ;;  %v752_v19 = vand.u32 1, %v11828_v4  ;;  %v754_v48 = vand.u32 1, %v11831_v20 }
 0x3ab   : > { %v3790_v10 = vsel %vm11859_vm14, %v3726_v60, %v3662_v63  ;;  %v3792_v40 = vsel %vm11863_vm15, %v3728_v7, %v3664_v50  ;;  %v880_v59 = vand.u32 2, %v11828_v4  ;;  %v882_v14 = vand.u32 2, %v11831_v20 }
 0x3ac   : > { %v3919_v32 = vmul.f32 %v11334_v15, %v3790_v10  ;;  %v3921_v35 = vmul.f32 %v11334_v15, %v3792_v40  ;;  %vm11950_vm0 = vcmp.ne.s32.totalorder %v752_v19, 0  ;;  %vm11954_vm1 = vcmp.ne.s32.totalorder %v754_v48, 0 }
 0x3ad   : > { %vm11958_vm2 = vcmp.ne.s32.totalorder %v880_v59, 0  ;;  %vm11962_vm3 = vcmp.ne.s32.totalorder %v882_v14, 0  ;;  %v1008_v56 = vand.u32 4, %v11828_v4  ;;  %v1010_v47 = vand.u32 4, %v11831_v20 }
 0x3ae   : > { %v3957_v30 = vpack.c.bf16 %v3921_v35, %v3919_v32  ;;  %v1136_v46 = vand.u32 8, %v11828_v4  ;;  %v1138_v28 = vand.u32 8, %v11831_v20  ;;  %v1264_v22 = vsel %vm11950_vm0, -0.6961928, %v4721_v38 }
 0x3af   : > { %vm11973_vm4 = vcmp.ne.s32.totalorder %v1008_v56, 0  ;;  %vm11977_vm5 = vcmp.ne.s32.totalorder %v1010_v47, 0  ;;  %v1266_v18 = vsel %vm11954_vm1, -0.6961928, %v4721_v38  ;;  %v1328_v4 = vsel %vm11950_vm0, -0.3949175, %v4722_v41 }
 0x3b0   : > { %4001 = vmatpush1.bf16.msra.mxu0 %v3957_v30  ;;  %vm11987_vm6 = vcmp.ne.s32.totalorder %v1136_v46, 0  ;;  %vm11991_vm7 = vcmp.ne.s32.totalorder %v1138_v28, 0  ;;  %v1330_v12 = vsel %vm11954_vm1, -0.3949175, %v4722_v41  ;;  %v1392_v36 = vsel %vm11950_vm0, -0.18477343, %v4723_v45 }
 0x3b1   : > { %v1394_v2 = vsel %vm11954_vm1, -0.18477343, %v4723_v45  ;;  %v1456_v13 = vsel %vm11950_vm0, 0.0, %v4724_v49  ;;  %v1458_v57 = vsel %vm11954_vm1, 0.0, %v4724_v49  ;;  %v1520_v37 = vsel %vm11950_vm0, 0.1609302, %v4725_v52 }
 0x3b2   : > { %v1522_v44 = vsel %vm11954_vm1, 0.1609302, %v4725_v52  ;;  %v1584_v53 = vsel %vm11950_vm0, 0.33791524, %v4726_v55  ;;  %v1586_v0 = vsel %vm11954_vm1, 0.33791524, %v4726_v55  ;;  %v1776_v54 = vsel %vm11958_vm2, %v1328_v4, %v1264_v22 }
 0x3b3   : > { %v1648_v21 = vsel %vm11950_vm0, 0.562617, %v4727_v58  ;;  %v1650_v43 = vsel %vm11954_vm1, 0.562617, %v4727_v58  ;;  %v1712_v23 = vsel %vm11950_vm0, 1.0, %v4728_v62  ;;  %v1714_v5 = vsel %vm11954_vm1, 1.0, %v4728_v62 }
 0x3b4   : > { %v1778_v63 = vsel %vm11962_vm3, %v1330_v12, %v1266_v18  ;;  %v1840_v50 = vsel %vm11958_vm2, %v1456_v13, %v1392_v36  ;;  %v1842_v60 = vsel %vm11962_vm3, %v1458_v57, %v1394_v2  ;;  %v1904_v7 = vsel %vm11958_vm2, %v1584_v53, %v1520_v37 }
 0x3b5   : > { %v1906_v19 = vsel %vm11962_vm3, %v1586_v0, %v1522_v44  ;;  %v1968_v48 = vsel %vm11958_vm2, %v1712_v23, %v1648_v21  ;;  %v1970_v10 = vsel %vm11962_vm3, %v1714_v5, %v1650_v43  ;;  %v2032_v40 = vsel %vm11973_vm4, %v1840_v50, %v1776_v54 }
 0x3b6   : > { %v2034_v59 = vsel %vm11977_vm5, %v1842_v60, %v1778_v63  ;;  %v2096_v14 = vsel %vm11973_vm4, %v1968_v48, %v1904_v7  ;;  %v2098_v32 = vsel %vm11977_vm5, %v1970_v10, %v1906_v19  ;;  %v12060_v35 = vand.u32 255, %v423_v9 }
 0x3b7   : > { %v2160_v42 = vsel %vm11987_vm6, %v2096_v14, %v2032_v40  ;;  %v2162_v39 = vsel %vm11991_vm7, %v2098_v32, %v2034_v59  ;;  %v12068_v34 = vand.u32 255, %v425_v27  ;;  %v618_v31 = vshra.s32 %v11823_v24, 4 }
 0x3b8   : > { %v2291_v56 = vmul.f32 %v10892_v26, %v2160_v42  ;;  %v2293_v47 = vmul.f32 %v10892_v26, %v2162_v39  ;;  %v551_v30 = vand.u32 15, %v12060_v35  ;;  %v12076_v9 = vand.u32 15, %v616_v33 }
 0x3b9   : > { %v553_v46 = vand.u32 15, %v12068_v34  ;;  %v12079_v28 = vand.u32 15, %v618_v31  ;;  %v615_v22 = vshra.s32 %v12060_v35, 4  ;;  %v617_v27 = vshra.s32 %v12068_v34, 4 }
 0x3ba   : > { %v2327_v51 = vpack.c.bf16 %v2293_v47, %v2291_v56  ;;  %v751_v24 = vand.u32 1, %v551_v30  ;;  %v879_v8 = vand.u32 2, %v551_v30  ;;  %v1007_v18 = vand.u32 4, %v551_v30 }
 0x3bb   : > { %v753_v4 = vand.u32 1, %v553_v46  ;;  %v881_v20 = vand.u32 2, %v553_v46  ;;  %v1009_v1 = vand.u32 4, %v553_v46  ;;  %v1135_v12 = vand.u32 8, %v551_v30 }
 0x3bc   : > { %4050 = vmatprep.subr.bf16.mxu1 %v2327_v51  ;;  %vm12083_vm8 = vcmp.ne.s32.totalorder %v751_v24, 0  ;;  %vm12087_vm9 = vcmp.ne.s32.totalorder %v879_v8, 0  ;;  %vm12091_vm10 = vcmp.ne.s32.totalorder %v1007_v18, 0  ;;  %v1137_v2 = vand.u32 8, %v553_v46 }
 0x3bd   : > { %vm12095_vm11 = vcmp.ne.s32.totalorder %v753_v4, 0  ;;  %vm12099_vm12 = vcmp.ne.s32.totalorder %v881_v20, 0  ;;  %vm12103_vm13 = vcmp.ne.s32.totalorder %v1009_v1, 0  ;;  %vm12107_vm14 = vcmp.ne.s32.totalorder %v1135_v12, 0 }
 0x3be   : > { %vm12111_vm15 = vcmp.ne.s32.totalorder %v1137_v2, 0  ;;  %v1263_v0 = vsel %vm12083_vm8, -0.6961928, %v4721_v38  ;;  %v1265_v54 = vsel %vm12095_vm11, -0.6961928, %v4721_v38  ;;  %v1455_v21 = vsel %vm12083_vm8, 0.0, %v4724_v49 }
 0x3bf   : > { %v1327_v43 = vsel %vm12083_vm8, -0.3949175, %v4722_v41  ;;  %v1329_v23 = vsel %vm12095_vm11, -0.3949175, %v4722_v41  ;;  %v1391_v5 = vsel %vm12083_vm8, -0.18477343, %v4723_v45  ;;  %v430_v63 = vunpack.c.3.s8 %v11477_v3 }
 0x3c0   : > { %v1393_v50 = vsel %vm12095_vm11, -0.18477343, %v4723_v45  ;;  %v1457_v60 = vsel %vm12095_vm11, 0.0, %v4724_v49  ;;  %v1519_v7 = vsel %vm12083_vm8, 0.1609302, %v4725_v52  ;;  %v1711_v19 = vsel %vm12083_vm8, 1.0, %v4728_v62 }
 0x3c1   : > { %v1521_v48 = vsel %vm12095_vm11, 0.1609302, %v4725_v52  ;;  %v1583_v10 = vsel %vm12083_vm8, 0.33791524, %v4726_v55  ;;  %v1585_v40 = vsel %vm12095_vm11, 0.33791524, %v4726_v55  ;;  %v1775_v59 = vsel %vm12087_vm9, %v1327_v43, %v1263_v0 }
 0x3c2   : > { %v1647_v14 = vsel %vm12083_vm8, 0.562617, %v4727_v58  ;;  %v1649_v32 = vsel %vm12095_vm11, 0.562617, %v4727_v58  ;;  %v1713_v42 = vsel %vm12095_vm11, 1.0, %v4728_v62  ;;  %v1777_v39 = vsel %vm12099_vm12, %v1329_v23, %v1265_v54 }
 0x3c3   : > { %v1839_v31 = vsel %vm12087_vm9, %v1455_v21, %v1391_v5  ;;  %v1841_v56 = vsel %vm12099_vm12, %v1457_v60, %v1393_v50  ;;  %v1903_v47 = vsel %vm12087_vm9, %v1583_v10, %v1519_v7  ;;  %v1905_v30 = vsel %vm12099_vm12, %v1585_v40, %v1521_v48 }
 0x3c4   : > { %v1967_v46 = vsel %vm12087_vm9, %v1711_v19, %v1647_v14  ;;  %v1969_v51 = vsel %vm12099_vm12, %v1713_v42, %v1649_v32  ;;  %v2031_v24 = vsel %vm12091_vm10, %v1839_v31, %v1775_v59  ;;  %v2033_v8 = vsel %vm12103_vm13, %v1841_v56, %v1777_v39 }
 0x3c5   : > { %v2095_v18 = vsel %vm12091_vm10, %v1967_v46, %v1903_v47  ;;  %v2097_v4 = vsel %vm12103_vm13, %v1969_v51, %v1905_v30  ;;  %v2387_v20 = vand.u32 1, %v12076_v9  ;;  %v2389_v1 = vand.u32 1, %v12079_v28 }
 0x3c6   : > { %v2159_v12 = vsel %vm12107_vm14, %v2095_v18, %v2031_v24  ;;  %v2161_v61 = vsel %vm12111_vm15, %v2097_v4, %v2033_v8  ;;  %v2515_v33 = vand.u32 2, %v12076_v9  ;;  %v2517_v2 = vand.u32 2, %v12079_v28 }
 0x3c7   : > { %v2290_v36 = vmul.f32 %v11007_v11, %v2159_v12  ;;  %v2292_v13 = vmul.f32 %v11007_v11, %v2161_v61  ;;  %vm12198_vm0 = vcmp.ne.s32.totalorder %v2387_v20, 0  ;;  %vm12202_vm1 = vcmp.ne.s32.totalorder %v2389_v1, 0 }
 0x3c8   : > { %vm12206_vm2 = vcmp.ne.s32.totalorder %v2515_v33, 0  ;;  %vm12210_vm3 = vcmp.ne.s32.totalorder %v2517_v2, 0  ;;  %v2643_v0 = vand.u32 4, %v12076_v9  ;;  %v2645_v54 = vand.u32 4, %v12079_v28 }
 0x3c9   : > { %v2326_v21 = vpack.c.bf16 %v2292_v13, %v2290_v36  ;;  %v2771_v43 = vand.u32 8, %v12076_v9  ;;  %v2773_v23 = vand.u32 8, %v12079_v28  ;;  %v2899_v5 = vsel %vm12198_vm0, -0.6961928, %v4721_v38 }
 0x3ca   : > { %vm12221_vm4 = vcmp.ne.s32.totalorder %v2643_v0, 0  ;;  %vm12225_vm5 = vcmp.ne.s32.totalorder %v2645_v54, 0  ;;  %v2901_v7 = vsel %vm12202_vm1, -0.6961928, %v4721_v38  ;;  %v2963_v9 = vsel %vm12198_vm0, -0.3949175, %v4722_v41 }
 0x3cb   : > { %4051 = vmatpush1.bf16.msra.mxu1 %v2326_v21  ;;  %vm12235_vm6 = vcmp.ne.s32.totalorder %v2771_v43, 0  ;;  %vm12239_vm7 = vcmp.ne.s32.totalorder %v2773_v23, 0  ;;  %v2965_v48 = vsel %vm12202_vm1, -0.3949175, %v4722_v41  ;;  %v3027_v10 = vsel %vm12198_vm0, -0.18477343, %v4723_v45 }
 0x3cc   : > { %v3029_v40 = vsel %vm12202_vm1, -0.18477343, %v4723_v45  ;;  %v3091_v59 = vsel %vm12198_vm0, 0.0, %v4724_v49  ;;  %v3093_v14 = vsel %vm12202_vm1, 0.0, %v4724_v49  ;;  %v3155_v32 = vsel %vm12198_vm0, 0.1609302, %v4725_v52 }
 0x3cd   : > { %v3157_v42 = vsel %vm12202_vm1, 0.1609302, %v4725_v52  ;;  %v3219_v39 = vsel %vm12198_vm0, 0.33791524, %v4726_v55  ;;  %v3221_v31 = vsel %vm12202_vm1, 0.33791524, %v4726_v55  ;;  %v3411_v56 = vsel %vm12206_vm2, %v2963_v9, %v2899_v5 }
 0x3ce   : > { %v3283_v47 = vsel %vm12198_vm0, 0.562617, %v4727_v58  ;;  %v3285_v30 = vsel %vm12202_vm1, 0.562617, %v4727_v58  ;;  %v3347_v46 = vsel %vm12198_vm0, 1.0, %v4728_v62  ;;  %v3349_v51 = vsel %vm12202_vm1, 1.0, %v4728_v62 }
 0x3cf   : > { %v3413_v24 = vsel %vm12210_vm3, %v2965_v48, %v2901_v7  ;;  %v3475_v8 = vsel %vm12206_vm2, %v3091_v59, %v3027_v10  ;;  %v3477_v18 = vsel %vm12210_vm3, %v3093_v14, %v3029_v40  ;;  %v3539_v4 = vsel %vm12206_vm2, %v3219_v39, %v3155_v32 }
 0x3d0   : > { %v3541_v20 = vsel %vm12210_vm3, %v3221_v31, %v3157_v42  ;;  %v3603_v1 = vsel %vm12206_vm2, %v3347_v46, %v3283_v47  ;;  %v3605_v12 = vsel %vm12210_vm3, %v3349_v51, %v3285_v30  ;;  %v3667_v61 = vsel %vm12221_vm4, %v3475_v8, %v3411_v56 }
 0x3d1   : > { %v3669_v33 = vsel %vm12225_vm5, %v3477_v18, %v3413_v24  ;;  %v3731_v2 = vsel %vm12221_vm4, %v3603_v1, %v3539_v4  ;;  %v3733_v36 = vsel %vm12225_vm5, %v3605_v12, %v3541_v20  ;;  %v679_v13 = vand.u32 15, %v615_v22 }
 0x3d2   : > { %v3795_v57 = vsel %vm12235_vm6, %v3731_v2, %v3667_v61  ;;  %v3797_v37 = vsel %vm12239_vm7, %v3733_v36, %v3669_v33  ;;  %v681_v44 = vand.u32 15, %v617_v27  ;;  %v12316_v53 = vand.u32 255, %v428_v29 }
 0x3d3   : > { %v3924_v0 = vmul.f32 %v11151_v16, %v3795_v57  ;;  %v3926_v54 = vmul.f32 %v11151_v16, %v3797_v37  ;;  %v2386_v21 = vand.u32 1, %v679_v13  ;;  %v2514_v35 = vand.u32 2, %v679_v13 }
 0x3d4   : > { %v2388_v22 = vand.u32 1, %v681_v44  ;;  %v2516_v43 = vand.u32 2, %v681_v44  ;;  %v2642_v23 = vand.u32 4, %v679_v13  ;;  %v2644_v5 = vand.u32 4, %v681_v44 }
 0x3d5   : > { %v3960_v50 = vpack.c.bf16 %v3926_v54, %v3924_v0  ;;  %vm12320_vm8 = vcmp.ne.s32.totalorder %v2386_v21, 0  ;;  %vm12324_vm9 = vcmp.ne.s32.totalorder %v2514_v35, 0  ;;  %v2770_v29 = vand.u32 8, %v679_v13 }
 0x3d6   : > { %vm12328_vm10 = vcmp.ne.s32.totalorder %v2388_v22, 0  ;;  %vm12332_vm11 = vcmp.ne.s32.totalorder %v2516_v43, 0  ;;  %vm12336_vm12 = vcmp.ne.s32.totalorder %v2642_v23, 0  ;;  %vm12340_vm13 = vcmp.ne.s32.totalorder %v2644_v5, 0 }
 0x3d7   : > { %4002 = vmatprep.subr.bf16.mxu0 %v3960_v50  ;;  %v2772_v19 = vand.u32 8, %v681_v44  ;;  %vm12344_vm14 = vcmp.ne.s32.totalorder %v2770_v29, 0  ;;  %v2898_v10 = vsel %vm12320_vm8, -0.6961928, %v4721_v38  ;;  %v2900_v40 = vsel %vm12328_vm10, -0.6961928, %v4721_v38 }
 0x3d8   : > { %v2962_v59 = vsel %vm12320_vm8, -0.3949175, %v4722_v41  ;;  %v2964_v14 = vsel %vm12328_vm10, -0.3949175, %v4722_v41  ;;  %v3026_v32 = vsel %vm12320_vm8, -0.18477343, %v4723_v45  ;;  %v427_v42 = vunpack.c.2.s8 %v11806_v25 }
 0x3d9   : > { %vm12364_vm15 = vcmp.ne.s32.totalorder %v2772_v19, 0  ;;  %v3028_v31 = vsel %vm12328_vm10, -0.18477343, %v4723_v45  ;;  %v3090_v56 = vsel %vm12320_vm8, 0.0, %v4724_v49  ;;  %v3092_v47 = vsel %vm12328_vm10, 0.0, %v4724_v49 }
 0x3da   : > { %v3154_v30 = vsel %vm12320_vm8, 0.1609302, %v4725_v52  ;;  %v3156_v46 = vsel %vm12328_vm10, 0.1609302, %v4725_v52  ;;  %v3218_v51 = vsel %vm12320_vm8, 0.33791524, %v4726_v55  ;;  %v3410_v24 = vsel %vm12324_vm9, %v2962_v59, %v2898_v10 }
 0x3db   : > { %v3220_v8 = vsel %vm12328_vm10, 0.33791524, %v4726_v55  ;;  %v3282_v18 = vsel %vm12320_vm8, 0.562617, %v4727_v58  ;;  %v3284_v4 = vsel %vm12328_vm10, 0.562617, %v4727_v58  ;;  %v3412_v20 = vsel %vm12332_vm11, %v2964_v14, %v2900_v40 }
 0x3dc   : > { %v3346_v1 = vsel %vm12320_vm8, 1.0, %v4728_v62  ;;  %v3348_v12 = vsel %vm12328_vm10, 1.0, %v4728_v62  ;;  %v3474_v61 = vsel %vm12324_vm9, %v3090_v56, %v3026_v32  ;;  %v3476_v33 = vsel %vm12332_vm11, %v3092_v47, %v3028_v31 }
 0x3dd   : > { %v3538_v2 = vsel %vm12324_vm9, %v3218_v51, %v3154_v30  ;;  %v3540_v36 = vsel %vm12332_vm11, %v3220_v8, %v3156_v46  ;;  %v3602_v13 = vsel %vm12324_vm9, %v3346_v1, %v3282_v18  ;;  %v3604_v57 = vsel %vm12332_vm11, %v3348_v12, %v3284_v4 }
 0x3de   : > { %v3666_v37 = vsel %vm12336_vm12, %v3474_v61, %v3410_v24  ;;  %v3668_v44 = vsel %vm12340_vm13, %v3476_v33, %v3412_v20  ;;  %v3730_v0 = vsel %vm12336_vm12, %v3602_v13, %v3538_v2  ;;  %v3732_v54 = vsel %vm12340_vm13, %v3604_v57, %v3540_v36 }
 0x3df   : > { %v3794_v21 = vsel %vm12344_vm14, %v3730_v0, %v3666_v37  ;;  %v3796_v35 = vsel %vm12364_vm15, %v3732_v54, %v3668_v44  ;;  %v12431_v22 = vand.u32 255, %v430_v63  ;;  %v556_v43 = vand.u32 15, %v12316_v53 }
 0x3e0   : > { %v3923_v23 = vmul.f32 %v11334_v15, %v3794_v21  ;;  %v3925_v5 = vmul.f32 %v11334_v15, %v3796_v35  ;;  %v429_v50 = vunpack.c.3.s8 %v11806_v25  ;;  %v12437_v60 = vand.u32 255, %v427_v42 }
 0x3e1   : > { %v558_v34 = vand.u32 15, %v12431_v22  ;;  %v756_v29 = vand.u32 1, %v556_v43  ;;  %v884_v27 = vand.u32 2, %v556_v43  ;;  %v1012_v7 = vand.u32 4, %v556_v43 }
 0x3e2   : > { %v3959_v9 = vpack.c.bf16 %v3925_v5, %v3923_v23  ;;  %v1140_v28 = vand.u32 8, %v556_v43  ;;  %v12440_v3 = vand.u32 255, %v429_v50  ;;  %v12443_v63 = vand.u32 15, %v12437_v60 }
 0x3e3   : > { %v758_v19 = vand.u32 1, %v558_v34  ;;  %vm12445_vm0 = vcmp.ne.s32.totalorder %v756_v29, 0  ;;  %v886_v25 = vand.u32 2, %v558_v34  ;;  %vm12449_vm1 = vcmp.ne.s32.totalorder %v884_v27, 0 }
 0x3e4   : > { %4003 = vmatpush1.bf16.msra.mxu0 %v3959_v9  ;;  %v1014_v40 = vand.u32 4, %v558_v34  ;;  %vm12453_vm2 = vcmp.ne.s32.totalorder %v1012_v7, 0  ;;  %v1142_v14 = vand.u32 8, %v558_v34  ;;  %vm12457_vm3 = vcmp.ne.s32.totalorder %v1140_v28, 0 }
 0x3e5   : > { %vm12461_vm4 = vcmp.ne.s32.totalorder %v758_v19, 0  ;;  %vm12465_vm5 = vcmp.ne.s32.totalorder %v886_v25, 0  ;;  %v1268_v31 = vsel %vm12445_vm0, -0.6961928, %v4721_v38  ;;  %v1332_v56 = vsel %vm12445_vm0, -0.3949175, %v4722_v41 }
 0x3e6   : > { %vm12475_vm6 = vcmp.ne.s32.totalorder %v1014_v40, 0  ;;  %vm12479_vm7 = vcmp.ne.s32.totalorder %v1142_v14, 0  ;;  %v1270_v46 = vsel %vm12461_vm4, -0.6961928, %v4721_v38  ;;  %v1334_v51 = vsel %vm12461_vm4, -0.3949175, %v4722_v41 }
 0x3e7   : > { %v1396_v24 = vsel %vm12445_vm0, -0.18477343, %v4723_v45  ;;  %v1398_v8 = vsel %vm12461_vm4, -0.18477343, %v4723_v45  ;;  %v1460_v18 = vsel %vm12445_vm0, 0.0, %v4724_v49  ;;  %v1462_v4 = vsel %vm12461_vm4, 0.0, %v4724_v49 }
 0x3e8   : > { %v1524_v20 = vsel %vm12445_vm0, 0.1609302, %v4725_v52  ;;  %v1526_v1 = vsel %vm12461_vm4, 0.1609302, %v4725_v52  ;;  %v1588_v12 = vsel %vm12445_vm0, 0.33791524, %v4726_v55  ;;  %v1780_v61 = vsel %vm12449_vm1, %v1332_v56, %v1268_v31 }
 0x3e9   : > { %v1590_v33 = vsel %vm12461_vm4, 0.33791524, %v4726_v55  ;;  %v1652_v2 = vsel %vm12445_vm0, 0.562617, %v4727_v58  ;;  %v1654_v36 = vsel %vm12461_vm4, 0.562617, %v4727_v58  ;;  %v1782_v13 = vsel %vm12465_vm5, %v1334_v51, %v1270_v46 }
 0x3ea   : > { %v1716_v57 = vsel %vm12445_vm0, 1.0, %v4728_v62  ;;  %v1718_v37 = vsel %vm12461_vm4, 1.0, %v4728_v62  ;;  %v1844_v44 = vsel %vm12449_vm1, %v1460_v18, %v1396_v24  ;;  %v1846_v0 = vsel %vm12465_vm5, %v1462_v4, %v1398_v8 }
 0x3eb   : > { %v1908_v54 = vsel %vm12449_vm1, %v1588_v12, %v1524_v20  ;;  %v1910_v21 = vsel %vm12465_vm5, %v1590_v33, %v1526_v1  ;;  %v1972_v35 = vsel %vm12449_vm1, %v1716_v57, %v1652_v2  ;;  %v1974_v43 = vsel %vm12465_vm5, %v1718_v37, %v1654_v36 }
 0x3ec   : > { %v2036_v23 = vsel %vm12453_vm2, %v1844_v44, %v1780_v61  ;;  %v2038_v5 = vsel %vm12475_vm6, %v1846_v0, %v1782_v13  ;;  %v2100_v50 = vsel %vm12453_vm2, %v1972_v35, %v1908_v54  ;;  %v2102_v34 = vsel %vm12475_vm6, %v1974_v43, %v1910_v21 }
 0x3ed   : > { %v2164_v29 = vsel %vm12457_vm3, %v2100_v50, %v2036_v23  ;;  %v2166_v27 = vsel %vm12479_vm7, %v2102_v34, %v2038_v5  ;;  %v557_v7 = vand.u32 15, %v12440_v3  ;;  %v755_v9 = vand.u32 1, %v12443_v63 }
 0x3ee   : > { %v2295_v28 = vmul.f32 %v10892_v26, %v2164_v29  ;;  %v2297_v19 = vmul.f32 %v10892_v26, %v2166_v27  ;;  %v883_v48 = vand.u32 2, %v12443_v63  ;;  %v1011_v25 = vand.u32 4, %v12443_v63 }
 0x3ef   : > { %v757_v10 = vand.u32 1, %v557_v7  ;;  %vm12559_vm8 = vcmp.ne.s32.totalorder %v755_v9, 0  ;;  %v885_v59 = vand.u32 2, %v557_v7  ;;  %v1013_v14 = vand.u32 4, %v557_v7 }
 0x3f0   : > { %v2329_v32 = vpack.c.bf16 %v2297_v19, %v2295_v28  ;;  %vm12563_vm9 = vcmp.ne.s32.totalorder %v883_v48, 0  ;;  %vm12567_vm10 = vcmp.ne.s32.totalorder %v1011_v25, 0  ;;  %v1139_v26 = vand.u32 8, %v12443_v63  ;;  %v3963_v19 = vld [vmem:[%s278_s24] sm:$0xff] }
 0x3f1   : > { %vm12572_vm11 = vcmp.ne.s32.totalorder %v757_v10, 0  ;;  %vm12576_vm12 = vcmp.ne.s32.totalorder %v885_v59, 0  ;;  %vm12580_vm13 = vcmp.ne.s32.totalorder %v1013_v14, 0  ;;  %v1141_v30 = vand.u32 8, %v557_v7 }
 0x3f2   : > { %4052 = vmatprep.subr.bf16.mxu1 %v2329_v32  ;;  %vm12584_vm14 = vcmp.ne.s32.totalorder %v1139_v26, 0  ;;  %v1267_v63 = vsel %vm12559_vm8, -0.6961928, %v4721_v38  ;;  %v1269_v51 = vsel %vm12572_vm11, -0.6961928, %v4721_v38  ;;  %v1459_v24 = vsel %vm12559_vm8, 0.0, %v4724_v49 }
 0x3f3   : > { %vm12597_vm15 = vcmp.ne.s32.totalorder %v1141_v30, 0  ;;  %v1331_v18 = vsel %vm12559_vm8, -0.3949175, %v4722_v41  ;;  %v1333_v4 = vsel %vm12572_vm11, -0.3949175, %v4722_v41  ;;  %v1461_v20 = vsel %vm12572_vm11, 0.0, %v4724_v49 }
 0x3f4   : > { %v1395_v1 = vsel %vm12559_vm8, -0.18477343, %v4723_v45  ;;  %v1397_v12 = vsel %vm12572_vm11, -0.18477343, %v4723_v45  ;;  %v1523_v61 = vsel %vm12559_vm8, 0.1609302, %v4725_v52  ;;  %v1779_v33 = vsel %vm12563_vm9, %v1331_v18, %v1267_v63 }
 0x3f5   : > { %v1525_v2 = vsel %vm12572_vm11, 0.1609302, %v4725_v52  ;;  %v1587_v36 = vsel %vm12559_vm8, 0.33791524, %v4726_v55  ;;  %v1589_v13 = vsel %vm12572_vm11, 0.33791524, %v4726_v55  ;;  %v1781_v57 = vsel %vm12576_vm12, %v1333_v4, %v1269_v51 }
 0x3f6   : > { %v1651_v37 = vsel %vm12559_vm8, 0.562617, %v4727_v58  ;;  %v1653_v44 = vsel %vm12572_vm11, 0.562617, %v4727_v58  ;;  %v1715_v0 = vsel %vm12559_vm8, 1.0, %v4728_v62  ;;  %v1717_v54 = vsel %vm12572_vm11, 1.0, %v4728_v62 }
 0x3f7   : > { %v1843_v21 = vsel %vm12563_vm9, %v1459_v24, %v1395_v1  ;;  %v1845_v35 = vsel %vm12576_vm12, %v1461_v20, %v1397_v12  ;;  %v1907_v43 = vsel %vm12563_vm9, %v1587_v36, %v1523_v61  ;;  %v1909_v23 = vsel %vm12576_vm12, %v1589_v13, %v1525_v2 }
 0x3f8   : > { %v1971_v5 = vsel %vm12563_vm9, %v1715_v0, %v1651_v37  ;;  %v1973_v50 = vsel %vm12576_vm12, %v1717_v54, %v1653_v44  ;;  %v2035_v34 = vsel %vm12567_vm10, %v1843_v21, %v1779_v33  ;;  %v2037_v29 = vsel %vm12580_vm13, %v1845_v35, %v1781_v57 }
 0x3f9   : > { %v2099_v27 = vsel %vm12567_vm10, %v1971_v5, %v1907_v43  ;;  %v2101_v7 = vsel %vm12580_vm13, %v1973_v50, %v1909_v23  ;;  %v620_v9 = vshra.s32 %v12316_v53, 4  ;;  %v622_v28 = vshra.s32 %v12431_v22, 4 }
 0x3fa   : > { %v2163_v48 = vsel %vm12584_vm14, %v2099_v27, %v2035_v34  ;;  %v2165_v25 = vsel %vm12597_vm15, %v2101_v7, %v2037_v29  ;;  %v619_v10 = vshra.s32 %v12437_v60, 4  ;;  %v621_v40 = vshra.s32 %v12440_v3, 4 }
 0x3fb   : > { %v2294_v59 = vmul.f32 %v11007_v11, %v2163_v48  ;;  %v2296_v14 = vmul.f32 %v11007_v11, %v2165_v25  ;;  %v684_v32 = vand.u32 15, %v620_v9  ;;  %v686_v53 = vand.u32 15, %v622_v28 }
 0x3fc   : > { %v12676_v42 = vand.u32 15, %v619_v10  ;;  %v12678_v22 = vand.u32 15, %v621_v40  ;;  %v4296_v39 = vcombine.low %v3963_v19, %v3963_v19  ;;  %v4297_v26 = vcombine.high %v3963_v19, %v3963_v19 }
 0x3fd   : > { %v2328_v31 = vpack.c.bf16 %v2296_v14, %v2294_v59  ;;  %v2391_v56 = vand.u32 1, %v684_v32  ;;  %v2393_v47 = vand.u32 1, %v686_v53  ;;  %v2519_v30 = vand.u32 2, %v684_v32 }
 0x3fe   : > { %v2521_v46 = vand.u32 2, %v686_v53  ;;  %v2647_v60 = vand.u32 4, %v684_v32  ;;  %v2649_v63 = vand.u32 4, %v686_v53  ;;  %v2775_v3 = vand.u32 8, %v684_v32  ;;  %4054 = vmatprep.mubr.bf16.mxu1 %v4297_v26 }
 0x3ff   : > { %4053 = vmatpush1.bf16.msra.mxu1 %v2328_v31  ;;  %vm12680_vm0 = vcmp.ne.s32.totalorder %v2391_v56, 0  ;;  %vm12684_vm1 = vcmp.ne.s32.totalorder %v2393_v47, 0  ;;  %vm12688_vm2 = vcmp.ne.s32.totalorder %v2519_v30, 0  ;;  %v2777_v8 = vand.u32 8, %v686_v53 }
 0x400   : > { %vm12692_vm3 = vcmp.ne.s32.totalorder %v2521_v46, 0  ;;  %vm12696_vm4 = vcmp.ne.s32.totalorder %v2647_v60, 0  ;;  %vm12700_vm5 = vcmp.ne.s32.totalorder %v2649_v63, 0  ;;  %vm12704_vm6 = vcmp.ne.s32.totalorder %v2775_v3, 0 }
 0x401   : > { %vm12708_vm7 = vcmp.ne.s32.totalorder %v2777_v8, 0  ;;  %v2903_v61 = vsel %vm12680_vm0, -0.6961928, %v4721_v38  ;;  %v2905_v33 = vsel %vm12684_vm1, -0.6961928, %v4721_v38  ;;  %v3095_v2 = vsel %vm12680_vm0, 0.0, %v4724_v49 }
 0x402   : > { %v2967_v36 = vsel %vm12680_vm0, -0.3949175, %v4722_v41  ;;  %v2969_v13 = vsel %vm12684_vm1, -0.3949175, %v4722_v41  ;;  %v3031_v57 = vsel %vm12680_vm0, -0.18477343, %v4723_v45  ;;  %4055 = vmatmul.mubr.bf16.vlgmr.msra.gmra.mrb[0].mxu1 %v4296_v39 }
 0x403   : > { %v3033_v37 = vsel %vm12684_vm1, -0.18477343, %v4723_v45  ;;  %v3097_v44 = vsel %vm12684_vm1, 0.0, %v4724_v49  ;;  %v3159_v0 = vsel %vm12680_vm0, 0.1609302, %v4725_v52  ;;  %v3351_v54 = vsel %vm12680_vm0, 1.0, %v4728_v62 }
 0x404   : > { %v3161_v21 = vsel %vm12684_vm1, 0.1609302, %v4725_v52  ;;  %v3223_v35 = vsel %vm12680_vm0, 0.33791524, %v4726_v55  ;;  %v3225_v43 = vsel %vm12684_vm1, 0.33791524, %v4726_v55  ;;  %v3415_v23 = vsel %vm12688_vm2, %v2967_v36, %v2903_v61 }
 0x405   : > { %v3287_v5 = vsel %vm12680_vm0, 0.562617, %v4727_v58  ;;  %v3289_v50 = vsel %vm12684_vm1, 0.562617, %v4727_v58  ;;  %v3353_v34 = vsel %vm12684_vm1, 1.0, %v4728_v62  ;;  %v3417_v29 = vsel %vm12692_vm3, %v2969_v13, %v2905_v33  ;;  %v3964_v36 = vld [vmem:[%s278_s24 + $0x8] sm:$0xff] }
 0x406   : > { %v3479_v27 = vsel %vm12688_vm2, %v3095_v2, %v3031_v57  ;;  %v3481_v7 = vsel %vm12692_vm3, %v3097_v44, %v3033_v37  ;;  %v3543_v9 = vsel %vm12688_vm2, %v3223_v35, %v3159_v0  ;;  %v3545_v28 = vsel %vm12692_vm3, %v3225_v43, %v3161_v21 }
 0x407   : > { %v3607_v19 = vsel %vm12688_vm2, %v3351_v54, %v3287_v5  ;;  %v3609_v48 = vsel %vm12692_vm3, %v3353_v34, %v3289_v50  ;;  %v3671_v25 = vsel %vm12696_vm4, %v3479_v27, %v3415_v23  ;;  %v3673_v10 = vsel %vm12700_vm5, %v3481_v7, %v3417_v29 }
 0x408   : > { %v3735_v40 = vsel %vm12696_vm4, %v3607_v19, %v3543_v9  ;;  %v3737_v59 = vsel %vm12700_vm5, %v3609_v48, %v3545_v28  ;;  %v2390_v14 = vand.u32 1, %v12676_v42  ;;  %v2392_v32 = vand.u32 1, %v12678_v22 }
 0x409   : > { %v3799_v53 = vsel %vm12704_vm6, %v3735_v40, %v3671_v25  ;;  %v3801_v39 = vsel %vm12708_vm7, %v3737_v59, %v3673_v10  ;;  %v2518_v26 = vand.u32 2, %v12676_v42  ;;  %v2520_v31 = vand.u32 2, %v12678_v22 }
 0x40a   : > { %v3928_v56 = vmul.f32 %v11151_v16, %v3799_v53  ;;  %v3930_v47 = vmul.f32 %v11151_v16, %v3801_v39  ;;  %vm12794_vm8 = vcmp.ne.s32.totalorder %v2390_v14, 0  ;;  %vm12798_vm9 = vcmp.ne.s32.totalorder %v2392_v32, 0  ;;  %v3965_v14 = vld [vmem:[#allocation2] sm:$0xff]  ;;  %v3966_v39 = vld [vmem:[#allocation2 + $0x8] sm:$0xff] }
 0x40b   : > { %vm12802_vm10 = vcmp.ne.s32.totalorder %v2518_v26, 0  ;;  %vm12806_vm11 = vcmp.ne.s32.totalorder %v2520_v31, 0  ;;  %v2646_v3 = vand.u32 4, %v12676_v42  ;;  %v2648_v16 = vand.u32 4, %v12678_v22 }
 0x40c   : > { %v3962_v11 = vpack.c.bf16 %v3930_v47, %v3928_v56  ;;  %v2774_v51 = vand.u32 8, %v12676_v42  ;;  %v2776_v24 = vand.u32 8, %v12678_v22  ;;  %v2902_v8 = vsel %vm12794_vm8, -0.6961928, %v4721_v38 }
 0x40d   : > { %vm12817_vm12 = vcmp.ne.s32.totalorder %v2646_v3, 0  ;;  %vm12821_vm13 = vcmp.ne.s32.totalorder %v2648_v16, 0  ;;  %v2904_v20 = vsel %vm12798_vm9, -0.6961928, %v4721_v38  ;;  %v2966_v42 = vsel %vm12794_vm8, -0.3949175, %v4722_v41 }
 0x40e   : > { %4004 = vmatprep.subr.bf16.mxu0 %v3962_v11  ;;  %vm12831_vm14 = vcmp.ne.s32.totalorder %v2774_v51, 0  ;;  %vm12835_vm15 = vcmp.ne.s32.totalorder %v2776_v24, 0  ;;  %v2968_v12 = vsel %vm12798_vm9, -0.3949175, %v4722_v41  ;;  %v3030_v38 = vsel %vm12794_vm8, -0.18477343, %v4723_v45 }
 0x40f   : > { %v3032_v61 = vsel %vm12798_vm9, -0.18477343, %v4723_v45  ;;  %v3094_v33 = vsel %vm12794_vm8, 0.0, %v4724_v49  ;;  %v3096_v2 = vsel %vm12798_vm9, 0.0, %v4724_v49  ;;  %v3158_v41 = vsel %vm12794_vm8, 0.1609302, %v4725_v52 }
 0x410   : > { %v3160_v13 = vsel %vm12798_vm9, 0.1609302, %v4725_v52  ;;  %v3222_v45 = vsel %vm12794_vm8, 0.33791524, %v4726_v55  ;;  %v3224_v57 = vsel %vm12798_vm9, 0.33791524, %v4726_v55  ;;  %v3414_v49 = vsel %vm12802_vm10, %v2966_v42, %v2902_v8 }
 0x411   : > { %v3286_v37 = vsel %vm12794_vm8, 0.562617, %v4727_v58  ;;  %v3288_v44 = vsel %vm12798_vm9, 0.562617, %v4727_v58  ;;  %v3350_v52 = vsel %vm12794_vm8, 1.0, %v4728_v62  ;;  %v3352_v0 = vsel %vm12798_vm9, 1.0, %v4728_v62 }
 0x412   : > { %v3416_v55 = vsel %vm12806_vm11, %v2968_v12, %v2904_v20  ;;  %v3478_v54 = vsel %vm12802_vm10, %v3094_v33, %v3030_v38  ;;  %v3480_v21 = vsel %vm12806_vm11, %v3096_v2, %v3032_v61  ;;  %v3542_v58 = vsel %vm12802_vm10, %v3222_v45, %v3158_v41 }
 0x413   : > { %v3544_v35 = vsel %vm12806_vm11, %v3224_v57, %v3160_v13  ;;  %v3606_v43 = vsel %vm12802_vm10, %v3350_v52, %v3286_v37  ;;  %v3608_v62 = vsel %vm12806_vm11, %v3352_v0, %v3288_v44  ;;  %v3670_v23 = vsel %vm12817_vm12, %v3478_v54, %v3414_v49 }
 0x414   : > { %v3672_v5 = vsel %vm12821_vm13, %v3480_v21, %v3416_v55  ;;  %v3734_v50 = vsel %vm12817_vm12, %v3606_v43, %v3542_v58  ;;  %v3736_v34 = vsel %vm12821_vm13, %v3608_v62, %v3544_v35  ;;  %v4295_v29 = vcombine.high %v3964_v36, %v3964_v36 }
 0x415   : > { %v3798_v27 = vsel %vm12831_vm14, %v3734_v50, %v3670_v23  ;;  %v3800_v7 = vsel %vm12835_vm15, %v3736_v34, %v3672_v5  ;;  %v4294_v48 = vcombine.low %v3964_v36, %v3964_v36  ;;  %v4082_v60 = vsub.s32 (!%p4298_p12), 2, %v5109_v6 }
 0x416   : > { %v3927_v9 = vmul.f32 %v11334_v15, %v3798_v27  ;;  %v3929_v28 = vmul.f32 %v11334_v15, %v3800_v7  ;;  %4006 = vmatprep.mubr.bf16.mxu0 %v4295_v29  ;;  %v4073_v15 = vld [vmem:[%s342_s14] sm:$0x3] (!%p4298_p12) }
 0x417   : > { %v4074_v63 = vunpack.c.l.bf16 (!%p4298_p12), %v4073_v15 }
 0x418   : > { %v3961_v19 = vpack.c.bf16 %v3929_v28, %v3927_v9 }
 0x419   : > { %v4079_v3 = vrot.slane (!%p4298_p12), %v4074_v63, %v5124_v17  ;;  %v4083_v16 = vrot.slane (!%p4298_p12), %v4074_v63, %v4082_v60 }
 0x41a   : > { %4005 = vmatpush1.bf16.msra.mxu0 %v3961_v19 }
 0x41b   : > { %v4089_v24 = vrot.slane (!%p4298_p12), %v4079_v3, %v5124_v17  ;;  %v4093_v8 = vrot.slane (!%p4298_p12), %v4083_v16, %v5124_v17 }
 0x41d   : > { %4007 = vmatmul.mubr.bf16.vlgmr.msra.gmra.mrb[0].mxu0 %v4294_v48 }
 0x4d5   : > { %v4056_v25 = vpop.f32.mrb[0].mxu1 }
 0x4d6   : > { %v4058_v10 = vpop.f32.mrb[1].mxu1 }
 0x4d7   : > { %v4060_v40 = vpop.f32.mrb[2].mxu1 }
 0x4d8   : > { %v4061_v59 = vpop.f32.mrb[3].mxu1 }
 0x4f0   : > { %v4008_v32 = vpop.f32.mrb[0].mxu0  ;;  %4070 = sbr.rel (%p4298_p12) target bundleno = 1283 (0x503), region = 56 }
 0x4f1   : > { %v4057_v53 = vadd.f32 %v4056_v25, %v4008_v32  ;;  %v4010_v26 = vpop.f32.mrb[1].mxu0 }
 0x4f2   : > { %v4059_v31 = vadd.f32 %v4058_v10, %v4010_v26  ;;  %v4012_v56 = vpop.f32.mrb[2].mxu0 }
 0x4f3   : > { %v4063_v47 = vadd.f32 %v4057_v53, %v3965_v14  ;;  %v4013_v30 = vpop.f32.mrb[3].mxu0 }
 0x4f4   : > { %v4064_v46 = vadd.f32 %v4059_v31, %v3966_v39 }
 0x4f5   : > { %4065 = vst [vmem:[#allocation2] sm:$0xff] %v4063_v47 }
 0x4f6   : > { %4066 = vst [vmem:[#allocation2 + $0x8] sm:$0xff] %v4064_v46 }
 0x4fc   : > { %v4071_v11 = vld [vmem:[#allocation2] sm:$0xff] }
 0x4fd   : > { %v4072_v51 = vld [vmem:[#allocation2 + $0x8] sm:$0xff]  ;;  %v4094_v18 = vadd.f32 %v4089_v24, %v4071_v11 }
 0x4fe   : > { %v4095_v4 = vadd.f32 %v4093_v8, %v4072_v51 }
 0x500   : > { %v4309_v20 = vpack.c.bf16 %v4095_v4, %v4094_v18 }
 0x502   : > { %4104 = vst [vmem:[%s5097_s6] sm:$0xff] %v4309_v20 }
 0x503 PF: > { %s4310_s23 = sshll.u32 %s4699_s25, 7  ;;  %s14083_s3 = sld [smem:[#allocation23_spill]] }
 0x504   : > { %s4122_s14 = sshll.u32 %s5097_s6, 4  ;;  %s4106_s7 = scalar_lea.sflag [#allocation5], %s5082_s5  ;;  %s4123_s14 = int_to_ptr.vmem [resolvable:$true] %s4122_s14 }
 0x505   : > { %s4557_s18 = scalar_lea.vmem %s4123_s14, 128  ;;  %p14084_p3 = scmp.ne.s32.totalorder %s13046_s12, 0 }
 0x506   : > { %p4558_p6 = scmp.ne.s32.totalorder %s4123_s14, %s4557_s18  ;;  %s4729_s9 = smov [#allocation9]  }
 0x507   : > { %s4561_s30 = sshll.u32 %s4729_s9, 4  ;;  %s4562_s30 = int_to_ptr.vmem [resolvable:$false] %s4561_s30 }
 0x508   : > { %p4559_p10 = pnand %p4558_p6, %p14084_p3  ;;  %s4563_s21 = scalar_lea.vmem %s4562_s30, 256 }
 0x509   : > { %s12925_s8 = scalar_lea.hbm %s14083_s3, %s4310_s23  ;;  %p4564_p1 = scmp.lt.s32.totalorder %s4123_s14, %s4562_s30 }
 0x50a   : > { %p4560_p7 = pneg %p4559_p10  ;;  %p4565_p0 = scmp.lt.s32.totalorder %s4563_s21, %s4557_s18 }
 0x50c   : > { %p4566_p5 = por %p4565_p0, %p4564_p1 }
 0x50e   : > { %p4567_p9 = pnand %p4566_p5, %p4560_p7 }
 0x510   : > { %4570 = shalt.err (!%p4567_p9)
}
 0x511   : > { %s4571_s25 = scalar_lea.hbm %s12925_s8, 128  ;;  %s4575_s10 = scalar_lea.hbm %s14083_s3, 256 }
 0x512   : > { %p4572_p13 = scmp.ne.s32.totalorder %s12925_s8, %s4571_s25  ;;  %p4576_p4 = scmp.lt.u32.totalorder %s12925_s8, %s14083_s3 }
 0x513   : > { %p4577_p8 = scmp.lt.u32.totalorder %s4575_s10, %s4571_s25  ;;  %p4579_p6 = scmp.lt.u32.totalorder %s4571_s25, %s12925_s8 }
 0x514   : > { %p4573_p2 = pnand %p4572_p13, %p14084_p3 }
 0x515   : > { %p4578_p12 = por %p4577_p8, %p4576_p4 }
 0x516   : > { %p4574_p11 = pneg %p4573_p2 }
 0x517   : > { %p4580_p10 = por %p4579_p6, %p4578_p12 }
 0x519   : > { %p4581_p7 = pnand %p4580_p10, %p4574_p11 }
 0x51b   : > { %4584 = shalt.err (!%p4581_p7)
}
 0x51c   : > { %4317 = dma.vmem_to_hbm [thread:$0]  (%p14084_p3), %s4123_s14, 128, %s12925_s8, %s4106_s7  }
 0x51d PF: > { %s14085_s11 = sld [smem:[#allocation14_spill]]  ;;  %p4334_p1 = scmp.ge.s32.totalorder %s4711_s28, 2 }
 0x51e   : > { %p14086_p0 = scmp.ne.s32.totalorder %s13040_s4, 0 }
 0x520   : > { %p4330_p5 = pnand %p4334_p1, %p14086_p0 }
 0x523   : > { %s4134_s23 = sand.u32 1, %s14085_s11  }
 0x524   : > { %s4135_s26 = scalar_lea.sflag [#allocation5], %s4134_s23 }
 0x525   : > { %4654 = dma.done.wait (!%p4330_p5), %s4135_s26, 128  }
 0x526   : > { %4656 = vsyncadd (!%p4330_p5), %s4135_s26, 4294967168  ;;  %s23_s28 = sadd.s32 1, %s4711_s28   ;;  %s14088_s12 = sld [smem:[#allocation15_spill]] }
 0x527   : > { %p12951_p9 = scmp.ge.s32.totalorder %s23_s28, 6   ;;  %s14089_s23 = sld [smem:[#allocation20_spill]] }
 0x528   : > { %s14090_s24 = sld [smem:[#allocation17_spill]]  ;;  %s14091_s26 = sld [smem:[#allocation18_spill]] }
 0x529   : > { %s14092_s4 = sld [smem:[#allocation19_spill]]  ;;  %s14093_s15 = smov %s4663_s16 }
 0x52a   : > { %s14094_s16 = smov %s4667_s17  ;;  %s14095_s17 = smov %s5008_s13 }
 0x52b   : > { %s14096_s18 = smov %s4675_s19  ;;  %s14097_s19 = smov %s4679_s20 }
 0x52c   : > { %s14098_s20 = smov %s4953_s1  ;;  %s14099_s21 = smov %s4687_s22 }
 0x52d   : > { %s14100_s22 = smov %s14088_s12  ;;  %s14101_s25 = smov %s4707_s27 }
 0x52e   :  { %22 = sbr.rel (!%p12951_p9) target bundleno = 16 (0x10), region = 117 }
 0x52f   : > { %s14102_s27 = smov %s14092_s4 }
 0x535   :  { %4140 = vsyncpa [#allocation4], 1 }
 0x536   :  { %4142 = vsyncpa [#allocation4 + $0x1], 1 }
 0x537   :  { %4143 = vsyncpa [#allocation7], 1 }
 0x538   :  { %4145 = vsyncpa [#allocation7 + $0x1], 1 }
 0x539   :  { %4146 = vsyncpa [#allocation5], 1 }
 0x53a   :  { %4148 = vsyncpa [#allocation5 + $0x1], 1 }

</bundles_post_ra>
